<compile_context>
chip_gen: v5e
topology: v5e:2x2
jax: 0.10.0
libtpu: 0.0.40
codegen_flags: <defaults>
</compile_context>

<pallas_src>
import numpy as np
import jax
import jax.numpy as jnp
from jax.experimental import pallas as pl
from jax.experimental.pallas import tpu as pltpu

# Static architecture constants (fixed by the module / Connect-4 board).
H, W = 6, 7          # board
KH, KW = 3, 3        # conv kernels
H1, W1S = 4, 5       # conv1 output spatial (valid padding)
H2, W2S = 2, 3       # conv2 output spatial (valid padding)
C1, C2 = 64, 128     # conv channels
FC = 128             # fc_block width == head hidden width
NOUT = 7             # Q-values (one per column)

NPOS1 = H1 * W1S     # 20 conv1 output positions
NPOS2 = H2 * W2S     # 6  conv2 output positions
Z1 = NPOS1 * C1      # 1280 = flattened conv1 activation
Z2 = NPOS2 * C2      # 768  = flattened conv2 activation (NCHW order)

K1 = 2 * H * W + 1   # 85 = [active plane | opponent plane | bias lane]
MAX_BT = 512         # max batch rows per block


def dqn_kernel(x_ref, t1_ref, t2_ref, b2_ref, wfc_ref, bfc_ref,
               wh1_ref, bh1_ref, wh2_ref, bh2_ref, q_ref):
    """Forward for one batch block: one compare + four MXU matmuls."""
    f32 = jnp.float32

    # xcat = [board, -board, 1]; a single whole-tile compare yields the two
    # one-hot planes AND the constant bias lane (exact equality matches the
    # PyTorch module; inputs are guaranteed to be exactly {1, 0, -1}).
    lhs = (x_ref[...] == 1.0).astype(f32)                       # (Bt, 85)

    # conv1 as ONE merged Toeplitz matmul (bias folded into row 84) + ReLU.
    z1 = jnp.maximum(
        jnp.dot(lhs, t1_ref[...], preferred_element_type=f32), 0.0)   # (Bt,1280)

    # conv2 as one Toeplitz matmul; output columns are already in PyTorch's
    # NCHW flatten order (c*6 + h*3 + w), so fc consumes it directly.
    z2 = jnp.maximum(
        jnp.dot(z1, t2_ref[...], preferred_element_type=f32) + b2_ref[...],
        0.0)                                                    # (Bt, 768)

    # fc_block: Linear(768->128) + ReLU.
    feat = jnp.maximum(
        jnp.dot(z2, wfc_ref[...], preferred_element_type=f32) + bfc_ref[...],
        0.0)                                                    # (Bt, 128)

    # first_head: Linear(128->128) + ReLU -> Linear(128->128 zero-padded).
    hdn = jnp.maximum(
        jnp.dot(feat, wh1_ref[...], preferred_element_type=f32) + bh1_ref[...],
        0.0)
    # Lane-dense (Bt, 128) store; columns 7..127 are zero (weight zero-padded).
    q_ref[...] = (jnp.dot(hdn, wh2_ref[...], preferred_element_type=f32)
                  + bh2_ref[...])
    # TODO(synk): second_head exists in the module's __init__ but is never used
    # in forward(); it is intentionally not implemented.


def pack_params(params):
    """One-time parameter re-layout (runs once, outside the per-call jit).

    Builds dense Toeplitz matrices so both convs become single MXU matmuls,
    folds the conv1 bias into the merged conv1 weight (row 84), expands the
    conv2 bias to the flattened layout, and zero-pads the last head
    weight/bias to 128 output lanes for a lane-dense output store.
    """
    w1 = np.asarray(params["conv1_w"], np.float32)   # (64, 2, 3, 3)  OIHW
    w2 = np.asarray(params["conv2_w"], np.float32)   # (128, 64, 3, 3)

    # Merged conv1 Toeplitz: rows 0..41 active plane, 42..83 opponent plane,
    # row 84 = tiled conv1 bias.  z1 layout: col = pos*64 + c, pos = i*W1S + j.
    t1 = np.zeros((K1, Z1), np.float32)              # (85, 1280)
    for i in range(H1):
        for j in range(W1S):
            pos = i * W1S + j
            for kh in range(KH):
                for kw in range(KW):
                    row = (i + kh) * W + (j + kw)
                    t1[row, pos * C1:(pos + 1) * C1] = w1[:, 0, kh, kw]
                    t1[H * W + row, pos * C1:(pos + 1) * C1] = w1[:, 1, kh, kw]
    t1[2 * H * W, :] = np.tile(np.asarray(params["conv1_b"], np.float32), NPOS1)

    # conv2 Toeplitz.  Output column layout = PyTorch NCHW flatten:
    # col = c*(H2*W2S) + oh*W2S + ow, so fc_w.T applies directly.
    t2 = np.zeros((Z1, Z2), np.float32)
    cols_base = np.arange(C2) * NPOS2
    for oh in range(H2):
        for ow in range(W2S):
            cols = cols_base + (oh * W2S + ow)
            for kh in range(KH):
                for kw in range(KW):
                    rpos = (oh + kh) * W1S + (ow + kw)
                    rs = rpos * C1
                    # rows = input channel ci, cols = output channel co
                    t2[rs:rs + C1, cols] = w2[:, :, kh, kw].T
    b2_exp = np.repeat(np.asarray(params["conv2_b"], np.float32), NPOS2)

    wfc = np.asarray(params["fc_w"], np.float32).T             # (768, 128)
    wh1 = np.asarray(params["h1_w"], np.float32).T             # (128, 128)
    # Zero-pad the final head to 128 output lanes (lane-dense output store).
    wh2 = np.zeros((FC, FC), np.float32)
    wh2[:, :NOUT] = np.asarray(params["h2_w"], np.float32).T   # (128, 7)
    bh2 = np.zeros((1, FC), np.float32)
    bh2[0, :NOUT] = np.asarray(params["h2_b"], np.float32)

    return dict(
        t1=jnp.asarray(t1),
        t2=jnp.asarray(t2),
        b2=jnp.asarray(b2_exp.reshape(1, Z2)),
        wfc=jnp.asarray(wfc),
        bfc=jnp.asarray(np.asarray(params["fc_b"], np.float32).reshape(1, FC)),
        wh1=jnp.asarray(wh1),
        bh1=jnp.asarray(np.asarray(params["h1_b"], np.float32).reshape(1, FC)),
        wh2=jnp.asarray(wh2),
        bh2=jnp.asarray(bh2),
    )


def _round_up(n, m):
    return -(-n // m) * m


@jax.jit
def dqn_forward_pallas(x, packed):
    """x: (B, 6, 7) float32 with values in {1, 0, -1} -> (B, 7) Q-values."""
    B = x.shape[0]
    xf = x.reshape(B, H * W).astype(jnp.float32)
    # [board | -board | 1]: the kernel's single (== 1) compare turns this into
    # [active one-hot | opponent one-hot | bias lane] for the merged conv1.
    xcat = jnp.concatenate(
        [xf, -xf, jnp.ones((B, 1), jnp.float32)], axis=1)       # (B, 85)

    # Batch tiling: >= 2 blocks for non-trivial B (maps onto v7x's two TCs via
    # "parallel" semantics), block rows rounded to 8 sublanes, minimal padding.
    if B <= 8:
        n_blocks, bt = 1, B
    else:
        n_blocks = max(2, -(-B // MAX_BT))
        bt = _round_up(-(-B // n_blocks), 8)
    bp = n_blocks * bt
    if bp != B:
        xcat = jnp.pad(xcat, ((0, bp - B), (0, 0)))
    grid = (n_blocks,)

    def const_spec(shape):
        # Weights/biases: full-array block, constant index_map -> fetched once,
        # stays VMEM-resident across the batch grid.
        return pl.BlockSpec(tuple(shape), lambda i: (0,) * len(shape))

    weights = (packed["t1"], packed["t2"], packed["b2"],
               packed["wfc"], packed["bfc"],
               packed["wh1"], packed["bh1"],
               packed["wh2"], packed["bh2"])

    in_specs = [pl.BlockSpec((bt, K1), lambda i: (i, 0))]
    in_specs += [const_spec(w.shape) for w in weights]
    out_spec = pl.BlockSpec((bt, FC), lambda i: (i, 0))

    q_full = pl.pallas_call(
        dqn_kernel,
        out_shape=jax.ShapeDtypeStruct((bp, FC), jnp.float32),
        grid=grid,
        in_specs=in_specs,
        out_specs=out_spec,
        compiler_params=pltpu.CompilerParams(
            dimension_semantics=("parallel",),        # 2 TCs on v7x
            vmem_limit_bytes=40 * 1024 * 1024),       # ~16 MiB peak at bt=512
    )(xcat, *weights)

    return q_full[:B, :NOUT]


def dqn_forward_ref(x, params):
    """Pure-JAX reference mirroring the PyTorch forward (NCHW) exactly."""
    active = (x == 1.0).astype(jnp.float32)
    opp = (x == -1.0).astype(jnp.float32)
    x2 = jnp.stack([active, opp], axis=1)                        # (B, 2, 6, 7)
    dn = ("NCHW", "OIHW", "NCHW")
    y = jax.lax.conv_general_dilated(x2, params["conv1_w"], (1, 1), "VALID",
                                     dimension_numbers=dn)
    y = jax.nn.relu(y + params["conv1_b"][None, :, None, None])
    y = jax.lax.conv_general_dilated(y, params["conv2_w"], (1, 1), "VALID",
                                     dimension_numbers=dn)
    y = jax.nn.relu(y + params["conv2_b"][None, :, None, None])
    feat = y.reshape(y.shape[0], -1)                             # NCHW flatten
    h = jax.nn.relu(feat @ params["fc_w"].T + params["fc_b"])
    h = jax.nn.relu(h @ params["h1_w"].T + params["h1_b"])
    return h @ params["h2_w"].T + params["h2_b"]


def init_params(key):
    """Deterministic synthetic parameters (PyTorch-convention shapes)."""
    ks = jax.random.split(key, 10)

    def norm(k, shape, fan_in):
        return (jax.random.normal(k, shape, jnp.float32)
                / jnp.float32(fan_in) ** 0.5)

    return dict(
        conv1_w=norm(ks[0], (C1, 2, KH, KW), 2 * KH * KW),
        conv1_b=norm(ks[1], (C1,), 2 * KH * KW),
        conv2_w=norm(ks[2], (C2, C1, KH, KW), C1 * KH * KW),
        conv2_b=norm(ks[3], (C2,), C1 * KH * KW),
        fc_w=norm(ks[4], (FC, C2 * H2 * W2S), C2 * H2 * W2S),    # (128, 768)
        fc_b=norm(ks[5], (FC,), C2 * H2 * W2S),
        h1_w=norm(ks[6], (FC, FC), FC),
        h1_b=norm(ks[7], (FC,), FC),
        h2_w=norm(ks[8], (NOUT, FC), FC),
        h2_b=norm(ks[9], (NOUT,), FC),
    )


if __name__ == "__main__":
    key = jax.random.PRNGKey(0)
    kx1, kx2, kp = jax.random.split(key, 3)
    params = init_params(kp)
    packed = pack_params(params)   # one-time parameter packing (hoisted)

    # Two checks: small batch (single block) and a batch that exercises the
    # multi-block grid + padding path (260 -> 2 blocks of 136, 12 pad rows).
    for name, kk, b in (("small", kx1, 4), ("grid", kx2, 260)):
        x = jax.random.randint(kk, (b, H, W), -1, 2).astype(jnp.float32)
        q = jax.block_until_ready(dqn_forward_pallas(x, packed))
        q_expected = jax.block_until_ready(dqn_forward_ref(x, params))
        assert q.shape == (b, NOUT) and q.dtype == jnp.float32
        if not np.allclose(np.asarray(q), np.asarray(q_expected),
                           atol=1e-3, rtol=1e-3):
            diff = np.max(np.abs(np.asarray(q) - np.asarray(q_expected)))
            raise AssertionError(
                f"{name}: Pallas kernel mismatch vs reference, max|diff|={diff}")
    print("KERNEL_OK")
</pallas_src>

<mosaic_0001>
module attributes {stable_mosaic.version = 11 : i64} {
  func.func @dqn_kernel(%arg0: i32, %arg1: memref<4x85xf32, #tpu.memory_space<vmem>>, %arg2: memref<85x1280xf32, #tpu.memory_space<vmem>>, %arg3: memref<1280x768xf32, #tpu.memory_space<vmem>>, %arg4: memref<1x768xf32, #tpu.memory_space<vmem>>, %arg5: memref<768x128xf32, #tpu.memory_space<vmem>>, %arg6: memref<1x128xf32, #tpu.memory_space<vmem>>, %arg7: memref<128x128xf32, #tpu.memory_space<vmem>>, %arg8: memref<1x128xf32, #tpu.memory_space<vmem>>, %arg9: memref<128x128xf32, #tpu.memory_space<vmem>>, %arg10: memref<1x128xf32, #tpu.memory_space<vmem>>, %arg11: memref<4x128xf32, #tpu.memory_space<vmem>>) attributes {dimension_semantics = [#tpu.dimension_semantics<parallel>], iteration_bounds = array<i64: 1>, scalar_prefetch = 0 : i64, scratch_operands = 0 : i64, tpu.core_type = #tpu.core_type<tc>, window_params = [{transform_indices = @transform_0, window_bounds = array<i64: 4, 85>}, {pipeline_mode = #tpu.pipeline_mode<synchronous>, transform_indices = @transform_1, window_bounds = array<i64: 85, 1280>}, {pipeline_mode = #tpu.pipeline_mode<synchronous>, transform_indices = @transform_2, window_bounds = array<i64: 1280, 768>}, {pipeline_mode = #tpu.pipeline_mode<synchronous>, transform_indices = @transform_3, window_bounds = array<i64: 1, 768>}, {pipeline_mode = #tpu.pipeline_mode<synchronous>, transform_indices = @transform_4, window_bounds = array<i64: 768, 128>}, {pipeline_mode = #tpu.pipeline_mode<synchronous>, transform_indices = @transform_5, window_bounds = array<i64: 1, 128>}, {pipeline_mode = #tpu.pipeline_mode<synchronous>, transform_indices = @transform_6, window_bounds = array<i64: 128, 128>}, {pipeline_mode = #tpu.pipeline_mode<synchronous>, transform_indices = @transform_7, window_bounds = array<i64: 1, 128>}, {pipeline_mode = #tpu.pipeline_mode<synchronous>, transform_indices = @transform_8, window_bounds = array<i64: 128, 128>}, {pipeline_mode = #tpu.pipeline_mode<synchronous>, transform_indices = @transform_9, window_bounds = array<i64: 1, 128>}, {transform_indices = @transform_10, window_bounds = array<i64: 4, 128>}]} {
    %c0 = arith.constant 0 : index
    %c0_0 = arith.constant 0 : index
    %0 = vector.load %arg1[%c0, %c0_0] : memref<4x85xf32, #tpu.memory_space<vmem>>, vector<4x85xf32>
    %cst = arith.constant 1.000000e+00 : f32
    %1 = vector.broadcast %cst : f32 to vector<4x85xf32>
    %2 = arith.cmpf oeq, %0, %1 : vector<4x85xf32>
    %3 = arith.extui %2 : vector<4x85xi1> to vector<4x85xi32>
    %4 = arith.sitofp %3 : vector<4x85xi32> to vector<4x85xf32>
    %c0_1 = arith.constant 0 : index
    %c0_2 = arith.constant 0 : index
    %5 = vector.load %arg2[%c0_1, %c0_2] : memref<85x1280xf32, #tpu.memory_space<vmem>>, vector<85x1280xf32>
    %cst_3 = arith.constant dense<0.000000e+00> : vector<4x1280xf32>
    %6 = tpu.matmul %4, %5, %cst_3 {dimension_numbers = #tpu.dot_dimension_numbers<[1], [0], [0], [1], [0, 0, 1, 1], [], []>} : vector<4x85xf32>, vector<85x1280xf32>, vector<4x1280xf32> -> vector<4x1280xf32>
    %cst_4 = arith.constant 0.000000e+00 : f32
    %7 = vector.broadcast %cst_4 : f32 to vector<4x1280xf32>
    %8 = arith.maximumf %6, %7 : vector<4x1280xf32>
    %c0_5 = arith.constant 0 : index
    %c0_6 = arith.constant 0 : index
    %9 = vector.load %arg3[%c0_5, %c0_6] : memref<1280x768xf32, #tpu.memory_space<vmem>>, vector<1280x768xf32>
    %cst_7 = arith.constant dense<0.000000e+00> : vector<4x768xf32>
    %10 = tpu.matmul %8, %9, %cst_7 {dimension_numbers = #tpu.dot_dimension_numbers<[1], [0], [0], [1], [0, 0, 1, 1], [], []>} : vector<4x1280xf32>, vector<1280x768xf32>, vector<4x768xf32> -> vector<4x768xf32>
    %c0_8 = arith.constant 0 : index
    %c0_9 = arith.constant 0 : index
    %11 = vector.load %arg4[%c0_8, %c0_9] : memref<1x768xf32, #tpu.memory_space<vmem>>, vector<1x768xf32>
    %12 = vector.broadcast %11 : vector<1x768xf32> to vector<4x768xf32>
    %13 = arith.addf %10, %12 : vector<4x768xf32>
    %cst_10 = arith.constant 0.000000e+00 : f32
    %14 = vector.broadcast %cst_10 : f32 to vector<4x768xf32>
    %15 = arith.maximumf %13, %14 : vector<4x768xf32>
    %c0_11 = arith.constant 0 : index
    %c0_12 = arith.constant 0 : index
    %16 = vector.load %arg5[%c0_11, %c0_12] : memref<768x128xf32, #tpu.memory_space<vmem>>, vector<768x128xf32>
    %cst_13 = arith.constant dense<0.000000e+00> : vector<4x128xf32>
    %17 = tpu.matmul %15, %16, %cst_13 {dimension_numbers = #tpu.dot_dimension_numbers<[1], [0], [0], [1], [0, 0, 1, 1], [], []>} : vector<4x768xf32>, vector<768x128xf32>, vector<4x128xf32> -> vector<4x128xf32>
    %c0_14 = arith.constant 0 : index
    %c0_15 = arith.constant 0 : index
    %18 = vector.load %arg6[%c0_14, %c0_15] : memref<1x128xf32, #tpu.memory_space<vmem>>, vector<1x128xf32>
    %19 = vector.broadcast %18 : vector<1x128xf32> to vector<4x128xf32>
    %20 = arith.addf %17, %19 : vector<4x128xf32>
    %cst_16 = arith.constant 0.000000e+00 : f32
    %21 = vector.broadcast %cst_16 : f32 to vector<4x128xf32>
    %22 = arith.maximumf %20, %21 : vector<4x128xf32>
    %c0_17 = arith.constant 0 : index
    %c0_18 = arith.constant 0 : index
    %23 = vector.load %arg7[%c0_17, %c0_18] : memref<128x128xf32, #tpu.memory_space<vmem>>, vector<128x128xf32>
    %cst_19 = arith.constant dense<0.000000e+00> : vector<4x128xf32>
    %24 = tpu.matmul %22, %23, %cst_19 {dimension_numbers = #tpu.dot_dimension_numbers<[1], [0], [0], [1], [0, 0, 1, 1], [], []>} : vector<4x128xf32>, vector<128x128xf32>, vector<4x128xf32> -> vector<4x128xf32>
    %c0_20 = arith.constant 0 : index
    %c0_21 = arith.constant 0 : index
    %25 = vector.load %arg8[%c0_20, %c0_21] : memref<1x128xf32, #tpu.memory_space<vmem>>, vector<1x128xf32>
    %26 = vector.broadcast %25 : vector<1x128xf32> to vector<4x128xf32>
    %27 = arith.addf %24, %26 : vector<4x128xf32>
    %cst_22 = arith.constant 0.000000e+00 : f32
    %28 = vector.broadcast %cst_22 : f32 to vector<4x128xf32>
    %29 = arith.maximumf %27, %28 : vector<4x128xf32>
    %c0_23 = arith.constant 0 : index
    %c0_24 = arith.constant 0 : index
    %30 = vector.load %arg9[%c0_23, %c0_24] : memref<128x128xf32, #tpu.memory_space<vmem>>, vector<128x128xf32>
    %cst_25 = arith.constant dense<0.000000e+00> : vector<4x128xf32>
    %31 = tpu.matmul %29, %30, %cst_25 {dimension_numbers = #tpu.dot_dimension_numbers<[1], [0], [0], [1], [0, 0, 1, 1], [], []>} : vector<4x128xf32>, vector<128x128xf32>, vector<4x128xf32> -> vector<4x128xf32>
    %c0_26 = arith.constant 0 : index
    %c0_27 = arith.constant 0 : index
    %32 = vector.load %arg10[%c0_26, %c0_27] : memref<1x128xf32, #tpu.memory_space<vmem>>, vector<1x128xf32>
    %33 = vector.broadcast %32 : vector<1x128xf32> to vector<4x128xf32>
    %34 = arith.addf %31, %33 : vector<4x128xf32>
    %c0_28 = arith.constant 0 : index
    %c0_29 = arith.constant 0 : index
    %35 = vector.load %arg11[%c0_28, %c0_29] : memref<4x128xf32, #tpu.memory_space<vmem>>, vector<4x128xf32>
    tpu.vector_store %arg11[%c0_28, %c0_29], %34 {strides = array<i32>} : memref<4x128xf32, #tpu.memory_space<vmem>>, vector<4x128xf32>,
    return
  }
  func.func @transform_0(%arg0: i32) -> (i32, i32) {
    %c0_i32 = arith.constant 0 : i32
    %c0_i32_0 = arith.constant 0 : i32
    return %arg0, %c0_i32 : i32, i32
  }
  func.func @transform_1(%arg0: i32) -> (i32, i32) {
    %c0_i32 = arith.constant 0 : i32
    %c0_i32_0 = arith.constant 0 : i32
    %c0_i32_1 = arith.constant 0 : i32
    return %c0_i32, %c0_i32_0 : i32, i32
  }
  func.func @transform_2(%arg0: i32) -> (i32, i32) {
    %c0_i32 = arith.constant 0 : i32
    %c0_i32_0 = arith.constant 0 : i32
    %c0_i32_1 = arith.constant 0 : i32
    return %c0_i32, %c0_i32_0 : i32, i32
  }
  func.func @transform_3(%arg0: i32) -> (i32, i32) {
    %c0_i32 = arith.constant 0 : i32
    %c0_i32_0 = arith.constant 0 : i32
    %c0_i32_1 = arith.constant 0 : i32
    return %c0_i32, %c0_i32_0 : i32, i32
  }
  func.func @transform_4(%arg0: i32) -> (i32, i32) {
    %c0_i32 = arith.constant 0 : i32
    %c0_i32_0 = arith.constant 0 : i32
    %c0_i32_1 = arith.constant 0 : i32
    return %c0_i32, %c0_i32_0 : i32, i32
  }
  func.func @transform_5(%arg0: i32) -> (i32, i32) {
    %c0_i32 = arith.constant 0 : i32
    %c0_i32_0 = arith.constant 0 : i32
    %c0_i32_1 = arith.constant 0 : i32
    return %c0_i32, %c0_i32_0 : i32, i32
  }
  func.func @transform_6(%arg0: i32) -> (i32, i32) {
    %c0_i32 = arith.constant 0 : i32
    %c0_i32_0 = arith.constant 0 : i32
    %c0_i32_1 = arith.constant 0 : i32
    return %c0_i32, %c0_i32_0 : i32, i32
  }
  func.func @transform_7(%arg0: i32) -> (i32, i32) {
    %c0_i32 = arith.constant 0 : i32
    %c0_i32_0 = arith.constant 0 : i32
    %c0_i32_1 = arith.constant 0 : i32
    return %c0_i32, %c0_i32_0 : i32, i32
  }
  func.func @transform_8(%arg0: i32) -> (i32, i32) {
    %c0_i32 = arith.constant 0 : i32
    %c0_i32_0 = arith.constant 0 : i32
    %c0_i32_1 = arith.constant 0 : i32
    return %c0_i32, %c0_i32_0 : i32, i32
  }
  func.func @transform_9(%arg0: i32) -> (i32, i32) {
    %c0_i32 = arith.constant 0 : i32
    %c0_i32_0 = arith.constant 0 : i32
    %c0_i32_1 = arith.constant 0 : i32
    return %c0_i32, %c0_i32_0 : i32, i32
  }
  func.func @transform_10(%arg0: i32) -> (i32, i32) {
    %c0_i32 = arith.constant 0 : i32
    %c0_i32_0 = arith.constant 0 : i32
    return %arg0, %c0_i32 : i32, i32
  }
}

</mosaic_0001>

<bundles_post_ra>
// kernel: neg.1
= control target key start
LH: loop header
LB: loop body
LE: loop exit
PB: predicated region body
PF: predicated region fallthrough
CT: control target
= control target key end

     0   :  { %s24_s0 = inlined_call_operand.vmem [shape: f32[4,42], index: 0, kind: input, shape index: {}]   ;;  %s25_s1 = inlined_call_operand.vmem [shape: f32[4,42], index: 1, kind: output, shape index: {}]  }
   0x1   :  { %v2_v0 = vld [vmem:[%s24_s0] sm:$0xf] }
   0x2   :  { %v5_v1 = vxor.u32 2147483648, %v2_v0 }
   0x4   :  { %7 = vst [vmem:[%s25_s1] sm:$0xf] %v5_v1 }

// kernel: dqn_forward_pallas.1
= control target key start
LH: loop header
LB: loop body
LE: loop exit
PB: predicated region body
PF: predicated region fallthrough
CT: control target
= control target key end

     0   :  { %15 = vsyncpa [#allocation3], 0  ;;  %s3639_s0 = inlined_call_operand.vmem [shape: f32[4,85], index: 0, kind: input, shape index: {}]   ;;  %s3640_s1 = inlined_call_operand.hbm [shape: f32[85,1280], index: 1, kind: input, shape index: {}]   ;;  %s3641_s2 = inlined_call_operand.hbm [shape: f32[1280,768], index: 2, kind: input, shape index: {}]   ;;  %s3642_s3 = inlined_call_operand.hbm [shape: f32[1,768], index: 3, kind: input, shape index: {}]   ;;  %s3643_s4 = inlined_call_operand.hbm [shape: f32[768,128], index: 4, kind: input, shape index: {}]   ;;  %s3644_s5 = inlined_call_operand.hbm [shape: f32[1,128], index: 5, kind: input, shape index: {}]   ;;  %s3645_s6 = inlined_call_operand.hbm [shape: f32[128,128], index: 6, kind: input, shape index: {}]   ;;  %s3646_s7 = inlined_call_operand.hbm [shape: f32[1,128], index: 7, kind: input, shape index: {}]   ;;  %s3647_s8 = inlined_call_operand.hbm [shape: f32[128,128], index: 8, kind: input, shape index: {}]   ;;  %s3648_s9 = inlined_call_operand.hbm [shape: f32[1,128], index: 9, kind: input, shape index: {}]   ;;  %s3649_s10 = inlined_call_operand.hbm [shape: f32[4,128], index: 10, kind: output, shape index: {}]  }
   0x1   :  { %16 = vsyncpa [#allocation6], 0 }
   0x2   :  { %17 = vsyncpa [#allocation9], 0 }
   0x3   :  { %18 = vsyncpa [#allocation12], 0 }
   0x4   :  { %19 = vsyncpa [#allocation15], 0  ;;  %s40_s15 = sshll.u32 %s3641_s2, 4  ;;  %s41_s15 = int_to_ptr.hbm [resolvable:$true] %s40_s15 }
   0x5   :  { %20 = vsyncpa [#allocation4], 0  ;;  %s3324_s16 = smov [#allocation5]   ;;  %s64_s20 = sshll.u32 %s3643_s4, 4  ;;  %s65_s20 = int_to_ptr.hbm [resolvable:$true] %s64_s20 }
   0x6   :  { %s42_s17 = sshll.u32 %s3324_s16, 4  ;;  %s3325_s21 = smov 768   ;;  %s43_s17 = int_to_ptr.vmem [resolvable:$true] %s42_s17 }
   0x7   :  { %s3326_s22 = smov 48   ;;  %s3327_s23 = smov [#allocation8]  }
   0x8   :  { %48 = dma.hbm_to_vmem [thread:$0]  %s41_s15, 122880, %s43_s17, [#allocation6], %s3325_s21, %s3325_s21, %s3326_s22  }
   0x9   :  { %s66_s24 = sshll.u32 %s3327_s23, 4  ;;  %s3328_s25 = smov 128   ;;  %s67_s24 = int_to_ptr.vmem [resolvable:$true] %s66_s24 }
   0xa   :  { %s3329_s26 = smov 8   ;;  %s88_s28 = sshll.u32 %s3645_s6, 4  ;;  %s89_s28 = int_to_ptr.hbm [resolvable:$true] %s88_s28 }
   0xb   :  { %72 = dma.hbm_to_vmem [thread:$0]  %s65_s20, 12288, %s67_s24, [#allocation9], %s3328_s25, %s3328_s25, %s3329_s26  }
   0xc   :  { %s3330_s29 = smov [#allocation11]   ;;  %s112_s12 = sshll.u32 %s3647_s8, 4  ;;  %s113_s12 = int_to_ptr.hbm [resolvable:$true] %s112_s12 }
   0xd   :  { %s90_s30 = sshll.u32 %s3330_s29, 4  ;;  %s3331_s13 = smov [#allocation14]   ;;  %s91_s30 = int_to_ptr.vmem [resolvable:$true] %s90_s30 }
   0xe   :  { %96 = dma.hbm_to_vmem [thread:$0]  %s89_s28, 2048, %s91_s30, [#allocation12], %s3328_s25, %s3328_s25, %s3329_s26  }
   0xf   :  { %s114_s14 = sshll.u32 %s3331_s13, 4  ;;  %s27_s17 = sshll.u32 %s3640_s1, 4  ;;  %s115_s14 = int_to_ptr.vmem [resolvable:$true] %s114_s14  ;;  %s28_s17 = int_to_ptr.hbm [resolvable:$true] %s27_s17 }
  0x10   :  { %120 = dma.hbm_to_vmem [thread:$0]  %s113_s12, 2048, %s115_s14, [#allocation15], %s3328_s25, %s3328_s25, %s3329_s26  }
  0x11   :  { %s3332_s6 = smov [#allocation2]   ;;  %s54_s21 = sshll.u32 %s3642_s3, 4  ;;  %s55_s21 = int_to_ptr.hbm [resolvable:$true] %s54_s21 }
  0x12   :  { %s29_s18 = sshll.u32 %s3332_s6, 4  ;;  %s3333_s22 = smov 1280   ;;  %s30_s18 = int_to_ptr.vmem [resolvable:$true] %s29_s18 }
  0x13   :  { %s3334_s8 = smov 80   ;;  %s3335_s23 = smov [#allocation7]  }
  0x14   :  { %35 = dma.hbm_to_vmem [thread:$0]  %s28_s17, 14080, %s30_s18, [#allocation3], %s3333_s22, %s3333_s22, %s3334_s8  }
  0x15   :  { %s56_s24 = sshll.u32 %s3335_s23, 4  ;;  %s78_s1 = sshll.u32 %s3644_s5, 4  ;;  %s57_s24 = int_to_ptr.vmem [resolvable:$true] %s56_s24  ;;  %s79_s1 = int_to_ptr.hbm [resolvable:$true] %s78_s1 }
  0x16   :  { %59 = dma.hbm_to_vmem [thread:$0]  %s55_s21, 96, %s57_s24, [#allocation6]  }
  0x17   :  { %s102_s28 = sshll.u32 %s3646_s7, 4  ;;  %s3336_s29 = smov [#allocation10]   ;;  %s103_s28 = int_to_ptr.hbm [resolvable:$true] %s102_s28 }
  0x18   :  { %s80_s30 = sshll.u32 %s3336_s29, 4  ;;  %s3337_s3 = smov [#allocation13]   ;;  %s81_s30 = int_to_ptr.vmem [resolvable:$true] %s80_s30 }
  0x19   :  { %83 = dma.hbm_to_vmem [thread:$0]  %s79_s1, 16, %s81_s30, [#allocation9]  }
  0x1a   :  { %s104_s11 = sshll.u32 %s3337_s3, 4  ;;  %s126_s13 = sshll.u32 %s3648_s9, 4  ;;  %s105_s11 = int_to_ptr.vmem [resolvable:$true] %s104_s11  ;;  %s127_s13 = int_to_ptr.hbm [resolvable:$true] %s126_s13 }
  0x1b   :  { %107 = dma.hbm_to_vmem [thread:$0]  %s103_s28, 16, %s105_s11, [#allocation12]  }
  0x1c   :  { %s3338_s5 = smov [#allocation16]  }
  0x1d   :  { %s128_s14 = sshll.u32 %s3338_s5, 4  ;;  %s129_s14 = int_to_ptr.vmem [resolvable:$true] %s128_s14 }
  0x1e   :  { %131 = dma.hbm_to_vmem [thread:$0]  %s127_s13, 16, %s129_s14, [#allocation15]  }
  0x1f   :  { %3312 = dma.done.wait [#allocation3], 14080  }
  0x20   :  { %3313 = vsyncadd [#allocation3], 4294953216 }
  0x21   :  { %3314 = dma.done.wait [#allocation6], 122976  }
  0x22   :  { %3315 = vsyncadd [#allocation6], 4294844320 }
  0x23   :  { %3316 = dma.done.wait [#allocation9], 12304  }
  0x24   :  { %3317 = vsyncadd [#allocation9], 4294954992 }
  0x25   :  { %3318 = dma.done.wait [#allocation12], 2064  }
  0x26   :  { %3319 = vsyncadd [#allocation12], 4294965232 }
  0x27   :  { %3320 = dma.done.wait [#allocation15], 2064  }
  0x28   :  { %3321 = vsyncadd [#allocation15], 4294965232  ;;  %vm286_vm0 = vcmask 1044480   ;;  %v272_v0 = vld [vmem:[#allocation2 + $0x320] sm:$0x1f]  ;;  %v262_v4 = vld [vmem:[#allocation2 + $0x2d0] sm:$0xff] }
  0x29   :  { %v273_v1 = vld [vmem:[#allocation2 + $0x328] sm:$0x1f]  ;;  %v274_v2 = vld [vmem:[#allocation2 + $0x330] sm:$0x1f]  ;;  %3032 = vmatpush.msk.msra.mxu0 %vm286_vm0, %v272_v0  ;;  %v275_v3 = vld [vmem:[#allocation2 + $0x338] sm:$0x1f] }
  0x2a   :  { %3034 = vmatpush.msk.msra.mxu1 %vm286_vm0, %v273_v1  ;;  %v263_v5 = vld [vmem:[#allocation2 + $0x2d8] sm:$0xff]  ;;  %3036 = vmatpush.msk.msra.mxu2 %vm286_vm0, %v274_v2  ;;  %v264_v6 = vld [vmem:[#allocation2 + $0x2e0] sm:$0xff]  ;;  %v265_v7 = vld [vmem:[#allocation2 + $0x2e8] sm:$0xff]  ;;  %v3339_v45 = vmov 0.0   ;;  %vm282_vm2 = vcmask 695296   ;;  %s3017_s6 = sshll.u32 %s3649_s10, 4  ;;  %s3018_s6 = int_to_ptr.hbm [resolvable:$true] %s3017_s6 }
  0x2b   :  { %3038 = vmatpush.msk.msra.mxu3 %vm286_vm0, %v275_v3  ;;  %v252_v8 = vld [vmem:[#allocation2 + $0x280] sm:$0xff]  ;;  %323 = vmatpush.msra.mxu0 %v262_v4  ;;  %v253_v9 = vld [vmem:[#allocation2 + $0x288] sm:$0xff]  ;;  %v254_v10 = vld [vmem:[#allocation2 + $0x290] sm:$0xff] }
  0x2c   :  { %343 = vmatpush.msra.mxu1 %v263_v5  ;;  %v255_v11 = vld [vmem:[#allocation2 + $0x298] sm:$0xff]  ;;  %363 = vmatpush.msra.mxu2 %v264_v6  ;;  %v242_v12 = vld [vmem:[#allocation2 + $0x230] sm:$0xff]  ;;  %v244_v14 = vld [vmem:[#allocation2 + $0x240] sm:$0xff] }
  0x2d   :  { %383 = vmatpush.msra.mxu3 %v265_v7  ;;  %v243_v13 = vld [vmem:[#allocation2 + $0x238] sm:$0xff]  ;;  %324 = vmatpush.msra.mxu0 %v252_v8  ;;  %v245_v15 = vld [vmem:[#allocation2 + $0x248] sm:$0xff]  ;;  %v232_v16 = vld [vmem:[#allocation2 + $0x1e0] sm:$0xff] }
  0x2e   :  { %344 = vmatpush.msra.mxu1 %v253_v9  ;;  %364 = vmatpush.msra.mxu2 %v254_v10  ;;  %v233_v17 = vld [vmem:[#allocation2 + $0x1e8] sm:$0xff]  ;;  %v234_v18 = vld [vmem:[#allocation2 + $0x1f0] sm:$0xff]  ;;  %v235_v19 = vld [vmem:[#allocation2 + $0x1f8] sm:$0xff] }
  0x2f   :  { %384 = vmatpush.msra.mxu3 %v255_v11  ;;  %325 = vmatpush.msra.mxu0 %v242_v12  ;;  %v222_v20 = vld [vmem:[#allocation2 + $0x190] sm:$0xff]  ;;  %v223_v21 = vld [vmem:[#allocation2 + $0x198] sm:$0xff]  ;;  %v224_v22 = vld [vmem:[#allocation2 + $0x1a0] sm:$0xff] }
  0x30   :  { %345 = vmatpush.msra.mxu1 %v243_v13  ;;  %365 = vmatpush.msra.mxu2 %v244_v14  ;;  %v225_v23 = vld [vmem:[#allocation2 + $0x1a8] sm:$0xff]  ;;  %v212_v24 = vld [vmem:[#allocation2 + $0x140] sm:$0xff]  ;;  %v214_v26 = vld [vmem:[#allocation2 + $0x150] sm:$0xff] }
  0x31   :  { %385 = vmatpush.msra.mxu3 %v245_v15  ;;  %326 = vmatpush.msra.mxu0 %v232_v16  ;;  %v213_v25 = vld [vmem:[#allocation2 + $0x148] sm:$0xff]  ;;  %v215_v27 = vld [vmem:[#allocation2 + $0x158] sm:$0xff]  ;;  %v202_v28 = vld [vmem:[#allocation2 + $0xf0] sm:$0xff] }
  0x32   :  { %346 = vmatpush.msra.mxu1 %v233_v17  ;;  %366 = vmatpush.msra.mxu2 %v234_v18  ;;  %v203_v29 = vld [vmem:[#allocation2 + $0xf8] sm:$0xff]  ;;  %v204_v30 = vld [vmem:[#allocation2 + $0x100] sm:$0xff]  ;;  %v205_v31 = vld [vmem:[#allocation2 + $0x108] sm:$0xff] }
  0x33   :  { %386 = vmatpush.msra.mxu3 %v235_v19  ;;  %327 = vmatpush.msra.mxu0 %v222_v20  ;;  %v192_v32 = vld [vmem:[#allocation2 + $0xa0] sm:$0xff]  ;;  %v193_v33 = vld [vmem:[#allocation2 + $0xa8] sm:$0xff]  ;;  %v194_v35 = vld [vmem:[#allocation2 + $0xb0] sm:$0xff] }
  0x34   :  { %347 = vmatpush.msra.mxu1 %v223_v21  ;;  %367 = vmatpush.msra.mxu2 %v224_v22  ;;  %v168_v34 = vld [vmem:[%s3639_s0] sm:$0xf]  ;;  %v195_v36 = vld [vmem:[#allocation2 + $0xb8] sm:$0xff]  ;;  %v182_v37 = vld [vmem:[#allocation2 + $0x50] sm:$0xff]  ;;  %s3340_s0 = smov [#allocation17]  }
  0x35   :  { %387 = vmatpush.msra.mxu3 %v225_v23  ;;  %328 = vmatpush.msra.mxu0 %v212_v24  ;;  %v183_v38 = vld [vmem:[#allocation2 + $0x58] sm:$0xff]  ;;  %v184_v39 = vld [vmem:[#allocation2 + $0x60] sm:$0xff]  ;;  %v185_v40 = vld [vmem:[#allocation2 + $0x68] sm:$0xff]  ;;  %vm169_vm1 = vcmp.eq.f32.partialorder %v168_v34, 1.0  ;;  %s3015_s15 = sshll.u32 %s3340_s0, 4  ;;  %s3016_s15 = int_to_ptr.vmem [resolvable:$true] %s3015_s15 }
  0x36   :  { %348 = vmatpush.msra.mxu1 %v213_v25  ;;  %368 = vmatpush.msra.mxu2 %v214_v26  ;;  %v172_v41 = vld [vmem:[#allocation2] sm:$0xff]  ;;  %v173_v42 = vld [vmem:[#allocation2 + $0x8] sm:$0xff]  ;;  %v174_v43 = vld [vmem:[#allocation2 + $0x10] sm:$0xff]  ;;  %v3430_v46 = vsel %vm169_vm1, 1.0, %v3339_v45 }
  0x37   :  { %388 = vmatpush.msra.mxu3 %v215_v27  ;;  %329 = vmatpush.msra.mxu0 %v202_v28  ;;  %v175_v44 = vld [vmem:[#allocation2 + $0x18] sm:$0xff]  ;;  %v276_v47 = vld [vmem:[#allocation2 + $0x340] sm:$0x1f]  ;;  %v277_v48 = vld [vmem:[#allocation2 + $0x348] sm:$0x1f] }
  0x38   :  { %349 = vmatpush.msra.mxu1 %v203_v29  ;;  %369 = vmatpush.msra.mxu2 %v204_v30  ;;  %v278_v49 = vld [vmem:[#allocation2 + $0x350] sm:$0x1f]  ;;  %v279_v50 = vld [vmem:[#allocation2 + $0x358] sm:$0x1f]  ;;  %v268_v53 = vld [vmem:[#allocation2 + $0x300] sm:$0xff] }
  0x39   :  { %389 = vmatpush.msra.mxu3 %v205_v31  ;;  %330 = vmatpush.msra.mxu0 %v192_v32  ;;  %v266_v51 = vld [vmem:[#allocation2 + $0x2f0] sm:$0xff]  ;;  %v267_v52 = vld [vmem:[#allocation2 + $0x2f8] sm:$0xff]  ;;  %v269_v54 = vld [vmem:[#allocation2 + $0x308] sm:$0xff] }
  0x3a   :  { %350 = vmatpush.msra.mxu1 %v193_v33  ;;  %370 = vmatpush.msra.mxu2 %v194_v35  ;;  %v256_v55 = vld [vmem:[#allocation2 + $0x2a0] sm:$0xff]  ;;  %v257_v56 = vld [vmem:[#allocation2 + $0x2a8] sm:$0xff]  ;;  %v258_v57 = vld [vmem:[#allocation2 + $0x2b0] sm:$0xff] }
  0x3b   :  { %390 = vmatpush.msra.mxu3 %v195_v36  ;;  %331 = vmatpush.msra.mxu0 %v182_v37  ;;  %v259_v58 = vld [vmem:[#allocation2 + $0x2b8] sm:$0xff]  ;;  %v246_v59 = vld [vmem:[#allocation2 + $0x250] sm:$0xff]  ;;  %v248_v61 = vld [vmem:[#allocation2 + $0x260] sm:$0xff] }
  0x3c   :  { %351 = vmatpush.msra.mxu1 %v183_v38  ;;  %371 = vmatpush.msra.mxu2 %v184_v39  ;;  %v247_v60 = vld [vmem:[#allocation2 + $0x258] sm:$0xff]  ;;  %v249_v62 = vld [vmem:[#allocation2 + $0x268] sm:$0xff]  ;;  %v236_v63 = vld [vmem:[#allocation2 + $0x200] sm:$0xff] }
  0x3d   :  { %391 = vmatpush.msra.mxu3 %v185_v40  ;;  %332 = vmatpush.msra.mxu0 %v172_v41  ;;  %v237_v0 = vld [vmem:[#allocation2 + $0x208] sm:$0xff]  ;;  %v238_v1 = vld [vmem:[#allocation2 + $0x210] sm:$0xff]  ;;  %v239_v2 = vld [vmem:[#allocation2 + $0x218] sm:$0xff] }
  0x3e   :  { %352 = vmatpush.msra.mxu1 %v173_v42  ;;  %372 = vmatpush.msra.mxu2 %v174_v43  ;;  %v226_v3 = vld [vmem:[#allocation2 + $0x1b0] sm:$0xff]  ;;  %v227_v4 = vld [vmem:[#allocation2 + $0x1b8] sm:$0xff]  ;;  %v228_v5 = vld [vmem:[#allocation2 + $0x1c0] sm:$0xff] }
  0x3f   :  { %392 = vmatpush.msra.mxu3 %v175_v44  ;;  %3033 = vmatmul.msk.f32.vlgmr.msra.gmra.mxu0 %vm282_vm2, %v3430_v46  ;;  %v229_v6 = vld [vmem:[#allocation2 + $0x1c8] sm:$0xff]  ;;  %v216_v7 = vld [vmem:[#allocation2 + $0x160] sm:$0xff]  ;;  %v206_v9 = vld [vmem:[#allocation2 + $0x110] sm:$0xff] }
  0x40   :  { %3035 = vmatmul.msk.f32.vlgmr.msra.gmra.mxu1 %vm282_vm2, %v3430_v46  ;;  %3037 = vmatmul.msk.f32.vlgmr.msra.gmra.mxu2 %vm282_vm2, %v3430_v46  ;;  %v217_v8 = vld [vmem:[#allocation2 + $0x168] sm:$0xff]  ;;  %v218_v10 = vld [vmem:[#allocation2 + $0x170] sm:$0xff]  ;;  %v219_v11 = vld [vmem:[#allocation2 + $0x178] sm:$0xff] }
  0x41   :  { %3039 = vmatmul.msk.f32.vlgmr.msra.gmra.mxu3 %vm282_vm2, %v3430_v46  ;;  %3040 = vmatpush.msk.msrb.mxu0 %vm286_vm0, %v276_v47  ;;  %v207_v12 = vld [vmem:[#allocation2 + $0x118] sm:$0xff]  ;;  %v208_v13 = vld [vmem:[#allocation2 + $0x120] sm:$0xff]  ;;  %v209_v14 = vld [vmem:[#allocation2 + $0x128] sm:$0xff] }
  0x42   :  { %3042 = vmatpush.msk.msrb.mxu1 %vm286_vm0, %v277_v48  ;;  %3044 = vmatpush.msk.msrb.mxu2 %vm286_vm0, %v278_v49  ;;  %v196_v15 = vld [vmem:[#allocation2 + $0xc0] sm:$0xff]  ;;  %v197_v16 = vld [vmem:[#allocation2 + $0xc8] sm:$0xff]  ;;  %v198_v17 = vld [vmem:[#allocation2 + $0xd0] sm:$0xff] }
  0x43   :  { %3046 = vmatpush.msk.msrb.mxu3 %vm286_vm0, %v279_v50  ;;  %403 = vmatpush.msrb.mxu0 %v266_v51  ;;  %v199_v18 = vld [vmem:[#allocation2 + $0xd8] sm:$0xff]  ;;  %v186_v19 = vld [vmem:[#allocation2 + $0x70] sm:$0xff]  ;;  %v188_v21 = vld [vmem:[#allocation2 + $0x80] sm:$0xff] }
  0x44   :  { %423 = vmatpush.msrb.mxu1 %v267_v52  ;;  %443 = vmatpush.msrb.mxu2 %v268_v53  ;;  %v187_v20 = vld [vmem:[#allocation2 + $0x78] sm:$0xff]  ;;  %v189_v22 = vld [vmem:[#allocation2 + $0x88] sm:$0xff]  ;;  %v176_v23 = vld [vmem:[#allocation2 + $0x20] sm:$0xff] }
  0x45   :  { %463 = vmatpush.msrb.mxu3 %v269_v54  ;;  %404 = vmatpush.msrb.mxu0 %v256_v55  ;;  %v177_v24 = vld [vmem:[#allocation2 + $0x28] sm:$0xff]  ;;  %v178_v25 = vld [vmem:[#allocation2 + $0x30] sm:$0xff]  ;;  %v280_v26 = vld [vmem:[#allocation2 + $0x360] sm:$0x1f] }
  0x46   :  { %424 = vmatpush.msrb.mxu1 %v257_v56  ;;  %444 = vmatpush.msrb.mxu2 %v258_v57  ;;  %v179_v27 = vld [vmem:[#allocation2 + $0x38] sm:$0xff]  ;;  %v270_v28 = vld [vmem:[#allocation2 + $0x310] sm:$0xff]  ;;  %v281_v29 = vld [vmem:[#allocation2 + $0x368] sm:$0x1f] }
  0x47   :  { %464 = vmatpush.msrb.mxu3 %v259_v58  ;;  %405 = vmatpush.msrb.mxu0 %v246_v59  ;;  %v617_v30 = vld [vmem:[#allocation5 + $0x2d0] sm:$0xff]  ;;  %v271_v33 = vld [vmem:[#allocation2 + $0x318] sm:$0xff]  ;;  %v611_v34 = vld [vmem:[#allocation5 + $0x2a0] sm:$0xff] }
  0x48   :  { %425 = vmatpush.msrb.mxu1 %v247_v60  ;;  %445 = vmatpush.msrb.mxu2 %v248_v61  ;;  %v260_v31 = vld [vmem:[#allocation2 + $0x2c0] sm:$0xff]  ;;  %v250_v35 = vld [vmem:[#allocation2 + $0x270] sm:$0xff]  ;;  %v261_v37 = vld [vmem:[#allocation2 + $0x2c8] sm:$0xff] }
  0x49   :  { %465 = vmatpush.msrb.mxu3 %v249_v62  ;;  %406 = vmatpush.msrb.mxu0 %v236_v63  ;;  %v713_v32 = vld [vmem:[#allocation5 + $0x5d0] sm:$0xff]  ;;  %v707_v36 = vld [vmem:[#allocation5 + $0x5a0] sm:$0xff]  ;;  %v251_v41 = vld [vmem:[#allocation2 + $0x278] sm:$0xff] }
  0x4a   :  { %426 = vmatpush.msrb.mxu1 %v237_v0  ;;  %446 = vmatpush.msrb.mxu2 %v238_v1  ;;  %v605_v38 = vld [vmem:[#allocation5 + $0x270] sm:$0xff]  ;;  %v599_v42 = vld [vmem:[#allocation5 + $0x240] sm:$0xff]  ;;  %v241_v45 = vld [vmem:[#allocation2 + $0x228] sm:$0xff] }
  0x4b   :  { %466 = vmatpush.msrb.mxu3 %v239_v2  ;;  %407 = vmatpush.msrb.mxu0 %v226_v3  ;;  %v240_v39 = vld [vmem:[#allocation2 + $0x220] sm:$0xff]  ;;  %v230_v43 = vld [vmem:[#allocation2 + $0x1d0] sm:$0xff]  ;;  %v231_v50 = vld [vmem:[#allocation2 + $0x1d8] sm:$0xff] }
  0x4c   :  { %427 = vmatpush.msrb.mxu1 %v227_v4  ;;  %447 = vmatpush.msrb.mxu2 %v228_v5  ;;  %v701_v40 = vld [vmem:[#allocation5 + $0x570] sm:$0xff]  ;;  %v695_v44 = vld [vmem:[#allocation5 + $0x540] sm:$0xff]  ;;  %v221_v54 = vld [vmem:[#allocation2 + $0x188] sm:$0xff] }
  0x4d   :  { %467 = vmatpush.msrb.mxu3 %v229_v6  ;;  %408 = vmatpush.msrb.mxu0 %v216_v7  ;;  %v593_v47 = vld [vmem:[#allocation5 + $0x210] sm:$0xff]  ;;  %v587_v51 = vld [vmem:[#allocation5 + $0x1e0] sm:$0xff]  ;;  %v211_v58 = vld [vmem:[#allocation2 + $0x138] sm:$0xff] }
  0x4e   :  { %428 = vmatpush.msrb.mxu1 %v217_v8  ;;  %448 = vmatpush.msrb.mxu2 %v218_v10  ;;  %v220_v48 = vld [vmem:[#allocation2 + $0x180] sm:$0xff]  ;;  %v210_v52 = vld [vmem:[#allocation2 + $0x130] sm:$0xff]  ;;  %v201_v62 = vld [vmem:[#allocation2 + $0xe8] sm:$0xff] }
  0x4f   :  { %468 = vmatpush.msrb.mxu3 %v219_v11  ;;  %409 = vmatpush.msrb.mxu0 %v206_v9  ;;  %v689_v49 = vld [vmem:[#allocation5 + $0x510] sm:$0xff]  ;;  %v683_v53 = vld [vmem:[#allocation5 + $0x4e0] sm:$0xff]  ;;  %v191_v2 = vld [vmem:[#allocation2 + $0x98] sm:$0xff] }
  0x50   :  { %429 = vmatpush.msrb.mxu1 %v207_v12  ;;  %449 = vmatpush.msrb.mxu2 %v208_v13  ;;  %v581_v55 = vld [vmem:[#allocation5 + $0x1b0] sm:$0xff]  ;;  %v575_v59 = vld [vmem:[#allocation5 + $0x180] sm:$0xff]  ;;  %v181_v5 = vld [vmem:[#allocation2 + $0x48] sm:$0xff] }
  0x51   :  { %469 = vmatpush.msrb.mxu3 %v209_v14  ;;  %410 = vmatpush.msrb.mxu0 %v196_v15  ;;  %v200_v56 = vld [vmem:[#allocation2 + $0xe0] sm:$0xff]  ;;  %v190_v60 = vld [vmem:[#allocation2 + $0x90] sm:$0xff] }
  0x52   :  { %430 = vmatpush.msrb.mxu1 %v197_v16  ;;  %450 = vmatpush.msrb.mxu2 %v198_v17  ;;  %v677_v57 = vld [vmem:[#allocation5 + $0x4b0] sm:$0xff]  ;;  %v671_v61 = vld [vmem:[#allocation5 + $0x480] sm:$0xff] }
  0x53   :  { %470 = vmatpush.msrb.mxu3 %v199_v18  ;;  %411 = vmatpush.msrb.mxu0 %v186_v19  ;;  %v569_v63 = vld [vmem:[#allocation5 + $0x150] sm:$0xff]  ;;  %v563_v4 = vld [vmem:[#allocation5 + $0x120] sm:$0xff] }
  0x54   :  { %431 = vmatpush.msrb.mxu1 %v187_v20  ;;  %451 = vmatpush.msrb.mxu2 %v188_v21  ;;  %v180_v0 = vld [vmem:[#allocation2 + $0x40] sm:$0xff]  ;;  %v659_v6 = vld [vmem:[#allocation5 + $0x420] sm:$0xff] }
  0x55   :  { %471 = vmatpush.msrb.mxu3 %v189_v22  ;;  %412 = vmatpush.msrb.mxu0 %v176_v23  ;;  %v665_v1 = vld [vmem:[#allocation5 + $0x450] sm:$0xff]  ;;  %v803_v7 = vld [vmem:[#allocation5 + $0x8a0] sm:$0xff] }
  0x56   :  { %432 = vmatpush.msrb.mxu1 %v177_v24  ;;  %3041 = vmatmul.msk.f32.vlgmr.msrb.gmra.mxu0 %vm282_vm2, %v3430_v46  ;;  %v809_v3 = vld [vmem:[#allocation5 + $0x8d0] sm:$0xff]  ;;  %v899_v12 = vld [vmem:[#allocation5 + $0xba0] sm:$0xff] }
  0x57   :  { %452 = vmatpush.msrb.mxu2 %v178_v25  ;;  %3048 = vmatpush.msk.msra.mxu0 %vm286_vm0, %v280_v26  ;;  %v905_v8 = vld [vmem:[#allocation5 + $0xbd0] sm:$0xff]  ;;  %v551_v13 = vld [vmem:[#allocation5 + $0xc0] sm:$0xff] }
  0x58   :  { %472 = vmatpush.msrb.mxu3 %v179_v27  ;;  %3043 = vmatmul.msk.f32.vlgmr.msrb.gmra.mxu1 %vm282_vm2, %v3430_v46  ;;  %v557_v9 = vld [vmem:[#allocation5 + $0xf0] sm:$0xff]  ;;  %v791_v14 = vld [vmem:[#allocation5 + $0x840] sm:$0xff] }
  0x59   :  { %3045 = vmatmul.msk.f32.vlgmr.msrb.gmra.mxu2 %vm282_vm2, %v3430_v46  ;;  %3047 = vmatmul.msk.f32.vlgmr.msrb.gmra.mxu3 %vm282_vm2, %v3430_v46  ;;  %v797_v10 = vld [vmem:[#allocation5 + $0x870] sm:$0xff]  ;;  %v647_v15 = vld [vmem:[#allocation5 + $0x3c0] sm:$0xff] }
  0x5a   :  { %483 = vmatpush.msra.mxu0 %v270_v28  ;;  %3050 = vmatpush.msk.msra.mxu1 %vm286_vm0, %v281_v29  ;;  %v653_v11 = vld [vmem:[#allocation5 + $0x3f0] sm:$0xff]  ;;  %v887_v20 = vld [vmem:[#allocation5 + $0xb40] sm:$0xff] }
  0x5b   :  { %1501 = vmatpush.msra.mxu2 %v617_v30  ;;  %1521 = vmatpush.msra.mxu3 %v713_v32  ;;  %v893_v16 = vld [vmem:[#allocation5 + $0xb70] sm:$0xff]  ;;  %v539_v21 = vld [vmem:[#allocation5 + $0x60] sm:$0xff] }
  0x5c   :  { %484 = vmatpush.msra.mxu0 %v260_v31  ;;  %503 = vmatpush.msra.mxu1 %v271_v33  ;;  %v545_v17 = vld [vmem:[#allocation5 + $0x90] sm:$0xff]  ;;  %v635_v22 = vld [vmem:[#allocation5 + $0x360] sm:$0xff] }
  0x5d   :  { %1502 = vmatpush.msra.mxu2 %v611_v34  ;;  %1522 = vmatpush.msra.mxu3 %v707_v36  ;;  %v785_v18 = vld [vmem:[#allocation5 + $0x810] sm:$0xff]  ;;  %v875_v27 = vld [vmem:[#allocation5 + $0xae0] sm:$0xff] }
  0x5e   :  { %485 = vmatpush.msra.mxu0 %v250_v35  ;;  %504 = vmatpush.msra.mxu1 %v261_v37  ;;  %v641_v19 = vld [vmem:[#allocation5 + $0x390] sm:$0xff]  ;;  %v527_v28 = vld [vmem:[#allocation5] sm:$0xff] }
  0x5f   :  { %1503 = vmatpush.msra.mxu2 %v605_v38  ;;  %1523 = vmatpush.msra.mxu3 %v701_v40  ;;  %v881_v23 = vld [vmem:[#allocation5 + $0xb10] sm:$0xff]  ;;  %v767_v29 = vld [vmem:[#allocation5 + $0x780] sm:$0xff] }
  0x60   :  { %486 = vmatpush.msra.mxu0 %v240_v39  ;;  %505 = vmatpush.msra.mxu1 %v251_v41  ;;  %v533_v24 = vld [vmem:[#allocation5 + $0x30] sm:$0xff]  ;;  %v623_v30 = vld [vmem:[#allocation5 + $0x300] sm:$0xff] }
  0x61   :  { %1504 = vmatpush.msra.mxu2 %v599_v42  ;;  %1524 = vmatpush.msra.mxu3 %v695_v44  ;;  %v773_v25 = vld [vmem:[#allocation5 + $0x7b0] sm:$0xff]  ;;  %v863_v35 = vld [vmem:[#allocation5 + $0xa80] sm:$0xff] }
  0x62   :  { %487 = vmatpush.msra.mxu0 %v230_v43  ;;  %506 = vmatpush.msra.mxu1 %v241_v45  ;;  %v629_v26 = vld [vmem:[#allocation5 + $0x330] sm:$0xff]  ;;  %v995_v36 = vld [vmem:[#allocation5 + $0xea0] sm:$0xff] }
  0x63   :  { %1505 = vmatpush.msra.mxu2 %v593_v47  ;;  %1525 = vmatpush.msra.mxu3 %v689_v49  ;;  %v869_v31 = vld [vmem:[#allocation5 + $0xab0] sm:$0xff]  ;;  %v755_v37 = vld [vmem:[#allocation5 + $0x720] sm:$0xff] }
  0x64   :  { %488 = vmatpush.msra.mxu0 %v220_v48  ;;  %507 = vmatpush.msra.mxu1 %v231_v50  ;;  %v1001_v32 = vld [vmem:[#allocation5 + $0xed0] sm:$0xff]  ;;  %v1091_v38 = vld [vmem:[#allocation5 + $0x11a0] sm:$0xff] }
  0x65   :  { %1506 = vmatpush.msra.mxu2 %v587_v51  ;;  %1526 = vmatpush.msra.mxu3 %v683_v53  ;;  %v761_v33 = vld [vmem:[#allocation5 + $0x750] sm:$0xff]  ;;  %v851_v43 = vld [vmem:[#allocation5 + $0xa20] sm:$0xff] }
  0x66   :  { %489 = vmatpush.msra.mxu0 %v210_v52  ;;  %508 = vmatpush.msra.mxu1 %v221_v54  ;;  %v1097_v34 = vld [vmem:[#allocation5 + $0x11d0] sm:$0xff]  ;;  %v983_v44 = vld [vmem:[#allocation5 + $0xe40] sm:$0xff] }
  0x67   :  { %1507 = vmatpush.msra.mxu2 %v581_v55  ;;  %1527 = vmatpush.msra.mxu3 %v677_v57  ;;  %v857_v39 = vld [vmem:[#allocation5 + $0xa50] sm:$0xff]  ;;  %v743_v45 = vld [vmem:[#allocation5 + $0x6c0] sm:$0xff] }
  0x68   :  { %490 = vmatpush.msra.mxu0 %v200_v56  ;;  %509 = vmatpush.msra.mxu1 %v211_v58  ;;  %v989_v40 = vld [vmem:[#allocation5 + $0xe70] sm:$0xff]  ;;  %v1079_v47 = vld [vmem:[#allocation5 + $0x1140] sm:$0xff] }
  0x69   :  { %1508 = vmatpush.msra.mxu2 %v575_v59  ;;  %1528 = vmatpush.msra.mxu3 %v671_v61  ;;  %v749_v41 = vld [vmem:[#allocation5 + $0x6f0] sm:$0xff]  ;;  %v839_v52 = vld [vmem:[#allocation5 + $0x9c0] sm:$0xff] }
  0x6a   :  { %491 = vmatpush.msra.mxu0 %v190_v60  ;;  %510 = vmatpush.msra.mxu1 %v201_v62  ;;  %v1085_v42 = vld [vmem:[#allocation5 + $0x1170] sm:$0xff]  ;;  %v971_v53 = vld [vmem:[#allocation5 + $0xde0] sm:$0xff] }
  0x6b   :  { %1509 = vmatpush.msra.mxu2 %v569_v63  ;;  %1529 = vmatpush.msra.mxu3 %v665_v1  ;;  %v845_v48 = vld [vmem:[#allocation5 + $0x9f0] sm:$0xff]  ;;  %v731_v54 = vld [vmem:[#allocation5 + $0x660] sm:$0xff] }
  0x6c   :  { %492 = vmatpush.msra.mxu0 %v180_v0  ;;  %511 = vmatpush.msra.mxu1 %v191_v2  ;;  %v977_v49 = vld [vmem:[#allocation5 + $0xe10] sm:$0xff]  ;;  %v1067_v55 = vld [vmem:[#allocation5 + $0x10e0] sm:$0xff] }
  0x6d   :  { %3049 = vmatmul.msk.f32.vlgmr.msra.gmra.mxu0 %vm282_vm2, %v3430_v46  ;;  %1510 = vmatpush.msra.mxu2 %v563_v4  ;;  %v737_v50 = vld [vmem:[#allocation5 + $0x690] sm:$0xff]  ;;  %v827_v60 = vld [vmem:[#allocation5 + $0x960] sm:$0xff] }
  0x6e   :  { %1541 = vmatpush.msrb.mxu0 %v809_v3  ;;  %512 = vmatpush.msra.mxu1 %v181_v5  ;;  %v1073_v51 = vld [vmem:[#allocation5 + $0x1110] sm:$0xff]  ;;  %v959_v61 = vld [vmem:[#allocation5 + $0xd80] sm:$0xff] }
  0x6f   :  { %1530 = vmatpush.msra.mxu3 %v659_v6  ;;  %3051 = vmatmul.msk.f32.vlgmr.msra.gmra.mxu1 %vm282_vm2, %v3430_v46  ;;  %v779_v46 = vld [vmem:[#allocation5 + $0x7e0] sm:$0xff]  ;;  %v833_v56 = vld [vmem:[#allocation5 + $0x990] sm:$0xff] }
  0x70   :  { %1542 = vmatpush.msrb.mxu0 %v803_v7  ;;  %1561 = vmatpush.msrb.mxu1 %v905_v8  ;;  %v965_v57 = vld [vmem:[#allocation5 + $0xdb0] sm:$0xff]  ;;  %v719_v62 = vld [vmem:[#allocation5 + $0x600] sm:$0xff] }
  0x71   :  { %1511 = vmatpush.msra.mxu2 %v557_v9  ;;  %1531 = vmatpush.msra.mxu3 %v653_v11  ;;  %v725_v58 = vld [vmem:[#allocation5 + $0x630] sm:$0xff]  ;;  %v1055_v63 = vld [vmem:[#allocation5 + $0x1080] sm:$0xff] }
  0x72   :  { %1543 = vmatpush.msrb.mxu0 %v797_v10  ;;  %1562 = vmatpush.msrb.mxu1 %v899_v12  ;;  %v1061_v59 = vld [vmem:[#allocation5 + $0x10b0] sm:$0xff]  ;;  %v815_v4 = vld [vmem:[#allocation5 + $0x900] sm:$0xff] }
  0x73   :  { %1512 = vmatpush.msra.mxu2 %v551_v13  ;;  %1532 = vmatpush.msra.mxu3 %v647_v15  ;;  %v821_v0 = vld [vmem:[#allocation5 + $0x930] sm:$0xff]  ;;  %v1187_v5 = vld [vmem:[#allocation5 + $0x14a0] sm:$0xff] }
  0x74   :  { %1544 = vmatpush.msrb.mxu0 %v791_v14  ;;  %1563 = vmatpush.msrb.mxu1 %v893_v16  ;;  %v1193_v1 = vld [vmem:[#allocation5 + $0x14d0] sm:$0xff]  ;;  %v947_v7 = vld [vmem:[#allocation5 + $0xd20] sm:$0xff] }
  0x75   :  { %1513 = vmatpush.msra.mxu2 %v545_v17  ;;  %1533 = vmatpush.msra.mxu3 %v641_v19  ;;  %v953_v2 = vld [vmem:[#allocation5 + $0xd50] sm:$0xff]  ;;  %v1043_v9 = vld [vmem:[#allocation5 + $0x1020] sm:$0xff] }
  0x76   :  { %1545 = vmatpush.msrb.mxu0 %v785_v18  ;;  %1564 = vmatpush.msrb.mxu1 %v887_v20  ;;  %v1049_v3 = vld [vmem:[#allocation5 + $0x1050] sm:$0xff]  ;;  %v1283_v10 = vld [vmem:[#allocation5 + $0x17a0] sm:$0xff] }
  0x77   :  { %1514 = vmatpush.msra.mxu2 %v539_v21  ;;  %1534 = vmatpush.msra.mxu3 %v635_v22  ;;  %v1289_v6 = vld [vmem:[#allocation5 + $0x17d0] sm:$0xff]  ;;  %v1175_v12 = vld [vmem:[#allocation5 + $0x1440] sm:$0xff] }
  0x78   :  { %1546 = vmatpush.msrb.mxu0 %v779_v46  ;;  %1565 = vmatpush.msrb.mxu1 %v881_v23  ;;  %v1181_v8 = vld [vmem:[#allocation5 + $0x1470] sm:$0xff]  ;;  %v935_v15 = vld [vmem:[#allocation5 + $0xcc0] sm:$0xff] }
  0x79   :  { %1515 = vmatpush.msra.mxu2 %v533_v24  ;;  %1535 = vmatpush.msra.mxu3 %v629_v26  ;;  %v941_v11 = vld [vmem:[#allocation5 + $0xcf0] sm:$0xff]  ;;  %v1031_v17 = vld [vmem:[#allocation5 + $0xfc0] sm:$0xff] }
  0x7a   :  { %1547 = vmatpush.msrb.mxu0 %v773_v25  ;;  %1566 = vmatpush.msrb.mxu1 %v875_v27  ;;  %v1037_v13 = vld [vmem:[#allocation5 + $0xff0] sm:$0xff]  ;;  %v1271_v18 = vld [vmem:[#allocation5 + $0x1740] sm:$0xff] }
  0x7b   :  { %1516 = vmatpush.msra.mxu2 %v527_v28  ;;  %1536 = vmatpush.msra.mxu3 %v623_v30  ;;  %v1277_v14 = vld [vmem:[#allocation5 + $0x1770] sm:$0xff]  ;;  %v1163_v20 = vld [vmem:[#allocation5 + $0x13e0] sm:$0xff] }
  0x7c   :  { %1548 = vmatpush.msrb.mxu0 %v767_v29  ;;  %1567 = vmatpush.msrb.mxu1 %v869_v31  ;;  %v1169_v16 = vld [vmem:[#allocation5 + $0x1410] sm:$0xff]  ;;  %v923_v22 = vld [vmem:[#allocation5 + $0xc60] sm:$0xff] }
  0x7d   :  { %1581 = vmatpush.msrb.mxu2 %v1001_v32  ;;  %1601 = vmatpush.msrb.mxu3 %v1097_v34  ;;  %v929_v19 = vld [vmem:[#allocation5 + $0xc90] sm:$0xff]  ;;  %v1019_v24 = vld [vmem:[#allocation5 + $0xf60] sm:$0xff] }
  0x7e   :  { %1549 = vmatpush.msrb.mxu0 %v761_v33  ;;  %1568 = vmatpush.msrb.mxu1 %v863_v35  ;;  %v1025_v21 = vld [vmem:[#allocation5 + $0xf90] sm:$0xff]  ;;  %v1259_v25 = vld [vmem:[#allocation5 + $0x16e0] sm:$0xff] }
  0x7f   :  { %1582 = vmatpush.msrb.mxu2 %v995_v36  ;;  %1602 = vmatpush.msrb.mxu3 %v1091_v38  ;;  %v1265_v46 = vld [vmem:[#allocation5 + $0x1710] sm:$0xff]  ;;  %v1151_v26 = vld [vmem:[#allocation5 + $0x1380] sm:$0xff] }
  0x80   :  { %1550 = vmatpush.msrb.mxu0 %v755_v37  ;;  %1569 = vmatpush.msrb.mxu1 %v857_v39  ;;  %v1157_v23 = vld [vmem:[#allocation5 + $0x13b0] sm:$0xff]  ;;  %v1247_v29 = vld [vmem:[#allocation5 + $0x1680] sm:$0xff] }
  0x81   :  { %1583 = vmatpush.msrb.mxu2 %v989_v40  ;;  %1603 = vmatpush.msrb.mxu3 %v1085_v42  ;;  %v1253_v27 = vld [vmem:[#allocation5 + $0x16b0] sm:$0xff]  ;;  %v1139_v30 = vld [vmem:[#allocation5 + $0x1320] sm:$0xff] }
  0x82   :  { %1551 = vmatpush.msrb.mxu0 %v749_v41  ;;  %1570 = vmatpush.msrb.mxu1 %v851_v43  ;;  %v1145_v28 = vld [vmem:[#allocation5 + $0x1350] sm:$0xff]  ;;  %v1235_v35 = vld [vmem:[#allocation5 + $0x1620] sm:$0xff] }
  0x83   :  { %1584 = vmatpush.msrb.mxu2 %v983_v44  ;;  %1604 = vmatpush.msrb.mxu3 %v1079_v47  ;;  %v1241_v31 = vld [vmem:[#allocation5 + $0x1650] sm:$0xff]  ;;  %v911_v36 = vld [vmem:[#allocation5 + $0xc00] sm:$0xff] }
  0x84   :  { %1552 = vmatpush.msrb.mxu0 %v743_v45  ;;  %1571 = vmatpush.msrb.mxu1 %v845_v48  ;;  %v1133_v32 = vld [vmem:[#allocation5 + $0x12f0] sm:$0xff]  ;;  %v1007_v37 = vld [vmem:[#allocation5 + $0xf00] sm:$0xff] }
  0x85   :  { %1585 = vmatpush.msrb.mxu2 %v977_v49  ;;  %1605 = vmatpush.msrb.mxu3 %v1073_v51  ;;  %v917_v33 = vld [vmem:[#allocation5 + $0xc30] sm:$0xff]  ;;  %v1127_v38 = vld [vmem:[#allocation5 + $0x12c0] sm:$0xff] }
  0x86   :  { %1553 = vmatpush.msrb.mxu0 %v737_v50  ;;  %1572 = vmatpush.msrb.mxu1 %v839_v52  ;;  %v1013_v34 = vld [vmem:[#allocation5 + $0xf30] sm:$0xff]  ;;  %v1223_v41 = vld [vmem:[#allocation5 + $0x15c0] sm:$0xff] }
  0x87   :  { %1586 = vmatpush.msrb.mxu2 %v971_v53  ;;  %1606 = vmatpush.msrb.mxu3 %v1067_v55  ;;  %v1229_v39 = vld [vmem:[#allocation5 + $0x15f0] sm:$0xff]  ;;  %v1115_v42 = vld [vmem:[#allocation5 + $0x1260] sm:$0xff] }
  0x88   :  { %1554 = vmatpush.msrb.mxu0 %v731_v54  ;;  %1573 = vmatpush.msrb.mxu1 %v833_v56  ;;  %v1121_v40 = vld [vmem:[#allocation5 + $0x1290] sm:$0xff]  ;;  %v1211_v45 = vld [vmem:[#allocation5 + $0x1560] sm:$0xff] }
  0x89   :  { %1587 = vmatpush.msrb.mxu2 %v965_v57  ;;  %1607 = vmatpush.msrb.mxu3 %v1061_v59  ;;  %v1217_v43 = vld [vmem:[#allocation5 + $0x1590] sm:$0xff]  ;;  %v1103_v47 = vld [vmem:[#allocation5 + $0x1200] sm:$0xff] }
  0x8a   :  { %1555 = vmatpush.msrb.mxu0 %v725_v58  ;;  %1574 = vmatpush.msrb.mxu1 %v827_v60  ;;  %v1109_v44 = vld [vmem:[#allocation5 + $0x1230] sm:$0xff]  ;;  %v1199_v49 = vld [vmem:[#allocation5 + $0x1500] sm:$0xff] }
  0x8b   :  { %1588 = vmatpush.msrb.mxu2 %v959_v61  ;;  %1608 = vmatpush.msrb.mxu3 %v1055_v63  ;;  %v1205_v48 = vld [vmem:[#allocation5 + $0x1530] sm:$0xff]  ;;  %v1379_v56 = vld [vmem:[#allocation5 + $0x1aa0] sm:$0xff] }
  0x8c   :  { %1556 = vmatpush.msrb.mxu0 %v719_v62  ;;  %1575 = vmatpush.msrb.mxu1 %v821_v0  ;;  %v1385_v54 = vld [vmem:[#allocation5 + $0x1ad0] sm:$0xff]  ;;  %v1475_v57 = vld [vmem:[#allocation5 + $0x1da0] sm:$0xff] }
  0x8d   :  { %1589 = vmatpush.msrb.mxu2 %v953_v2  ;;  %1609 = vmatpush.msrb.mxu3 %v1049_v3  ;;  %v1481_v55 = vld [vmem:[#allocation5 + $0x1dd0] sm:$0xff]  ;;  %v1367_v0 = vld [vmem:[#allocation5 + $0x1a40] sm:$0xff]  ;;  %v618_v2 = vld [vmem:[#allocation5 + $0x2d8] sm:$0xff] }
  0x8e   :  { %1621 = vmatpush.msra.mxu0 %v1193_v1  ;;  %1576 = vmatpush.msrb.mxu1 %v815_v4  ;;  %v1373_v58 = vld [vmem:[#allocation5 + $0x1a70] sm:$0xff]  ;;  %v1463_v1 = vld [vmem:[#allocation5 + $0x1d40] sm:$0xff]  ;;  %v714_v3 = vld [vmem:[#allocation5 + $0x5d8] sm:$0xff] }
  0x8f   :  { %1590 = vmatpush.msrb.mxu2 %v947_v7  ;;  %1610 = vmatpush.msrb.mxu3 %v1043_v9  ;;  %v1469_v59 = vld [vmem:[#allocation5 + $0x1d70] sm:$0xff]  ;;  %v708_v7 = vld [vmem:[#allocation5 + $0x5a8] sm:$0xff]  ;;  %v1451_v9 = vld [vmem:[#allocation5 + $0x1ce0] sm:$0xff] }
  0x90   :  { %1622 = vmatpush.msra.mxu0 %v1187_v5  ;;  %1641 = vmatpush.msra.mxu1 %v1289_v6  ;;  %v1361_v4 = vld [vmem:[#allocation5 + $0x1a10] sm:$0xff]  ;;  %v612_v6 = vld [vmem:[#allocation5 + $0x2a8] sm:$0xff] }
  0x91   :  { %1591 = vmatpush.msrb.mxu2 %v941_v11  ;;  %1611 = vmatpush.msrb.mxu3 %v1037_v13  ;;  %v1457_v5 = vld [vmem:[#allocation5 + $0x1d10] sm:$0xff]  ;;  %v702_v11 = vld [vmem:[#allocation5 + $0x578] sm:$0xff] }
  0x92   :  { %1623 = vmatpush.msra.mxu0 %v1181_v8  ;;  %1642 = vmatpush.msra.mxu1 %v1283_v10  ;;  %v1355_v8 = vld [vmem:[#allocation5 + $0x19e0] sm:$0xff]  ;;  %v606_v10 = vld [vmem:[#allocation5 + $0x278] sm:$0xff]  ;;  %v1445_v13 = vld [vmem:[#allocation5 + $0x1cb0] sm:$0xff] }
  0x93   :  { %1592 = vmatpush.msrb.mxu2 %v935_v15  ;;  %1612 = vmatpush.msrb.mxu3 %v1031_v17  ;;  %v696_v15 = vld [vmem:[#allocation5 + $0x548] sm:$0xff]  ;;  %v1439_v17 = vld [vmem:[#allocation5 + $0x1c80] sm:$0xff] }
  0x94   :  { %1624 = vmatpush.msra.mxu0 %v1175_v12  ;;  %1643 = vmatpush.msra.mxu1 %v1277_v14  ;;  %v1349_v12 = vld [vmem:[#allocation5 + $0x19b0] sm:$0xff]  ;;  %v600_v14 = vld [vmem:[#allocation5 + $0x248] sm:$0xff] }
  0x95   :  { %1593 = vmatpush.msrb.mxu2 %v929_v19  ;;  %1613 = vmatpush.msrb.mxu3 %v1025_v21  ;;  %v690_v19 = vld [vmem:[#allocation5 + $0x518] sm:$0xff]  ;;  %v1433_v21 = vld [vmem:[#allocation5 + $0x1c50] sm:$0xff] }
  0x96   :  { %1625 = vmatpush.msra.mxu0 %v1169_v16  ;;  %1644 = vmatpush.msra.mxu1 %v1271_v18  ;;  %v1343_v16 = vld [vmem:[#allocation5 + $0x1980] sm:$0xff]  ;;  %v594_v18 = vld [vmem:[#allocation5 + $0x218] sm:$0xff] }
  0x97   :  { %1594 = vmatpush.msrb.mxu2 %v923_v22  ;;  %1614 = vmatpush.msrb.mxu3 %v1019_v24  ;;  %v684_v22 = vld [vmem:[#allocation5 + $0x4e8] sm:$0xff]  ;;  %v1427_v24 = vld [vmem:[#allocation5 + $0x1c20] sm:$0xff] }
  0x98   :  { %1626 = vmatpush.msra.mxu0 %v1163_v20  ;;  %1645 = vmatpush.msra.mxu1 %v1265_v46  ;;  %v1337_v20 = vld [vmem:[#allocation5 + $0x1950] sm:$0xff]  ;;  %v588_v46 = vld [vmem:[#allocation5 + $0x1e8] sm:$0xff] }
  0x99   :  { %1595 = vmatpush.msrb.mxu2 %v917_v33  ;;  %1615 = vmatpush.msrb.mxu3 %v1013_v34  ;;  %v1415_v33 = vld [vmem:[#allocation5 + $0x1bc0] sm:$0xff] }
  0x9a   :  { %1627 = vmatpush.msra.mxu0 %v1157_v23  ;;  %1646 = vmatpush.msra.mxu1 %v1259_v25  ;;  %v1331_v23 = vld [vmem:[#allocation5 + $0x1920] sm:$0xff]  ;;  %v582_v25 = vld [vmem:[#allocation5 + $0x1b8] sm:$0xff] }
  0x9b   :  { %1596 = vmatpush.msrb.mxu2 %v911_v36  ;;  %1616 = vmatpush.msrb.mxu3 %v1007_v37  ;;  %v570_v36 = vld [vmem:[#allocation5 + $0x158] sm:$0xff] }
  0x9c   :  { %1628 = vmatpush.msra.mxu0 %v1151_v26  ;;  %1647 = vmatpush.msra.mxu1 %v1253_v27  ;;  %v678_v26 = vld [vmem:[#allocation5 + $0x4b8] sm:$0xff]  ;;  %v1325_v27 = vld [vmem:[#allocation5 + $0x18f0] sm:$0xff] }
  0x9e   :  { %1629 = vmatpush.msra.mxu0 %v1145_v28  ;;  %1648 = vmatpush.msra.mxu1 %v1247_v29  ;;  %v1421_v28 = vld [vmem:[#allocation5 + $0x1bf0] sm:$0xff] }
  0xa0   :  { %1630 = vmatpush.msra.mxu0 %v1139_v30  ;;  %1649 = vmatpush.msra.mxu1 %v1241_v31  ;;  %v576_v30 = vld [vmem:[#allocation5 + $0x188] sm:$0xff] }
  0xa1   :  { %v672_v31 = vld [vmem:[#allocation5 + $0x488] sm:$0xff] }
  0xa2   :  { %1631 = vmatpush.msra.mxu0 %v1133_v32  ;;  %1650 = vmatpush.msra.mxu1 %v1235_v35  ;;  %v1319_v35 = vld [vmem:[#allocation5 + $0x18c0] sm:$0xff] }
  0xa4   :  { %1632 = vmatpush.msra.mxu0 %v1127_v38  ;;  %1651 = vmatpush.msra.mxu1 %v1229_v39  ;;  %v666_v38 = vld [vmem:[#allocation5 + $0x458] sm:$0xff]  ;;  %v1313_v39 = vld [vmem:[#allocation5 + $0x1890] sm:$0xff] }
  0xa6   :  { %1633 = vmatpush.msra.mxu0 %v1121_v40  ;;  %1652 = vmatpush.msra.mxu1 %v1223_v41  ;;  %v1409_v40 = vld [vmem:[#allocation5 + $0x1b90] sm:$0xff]  ;;  %v564_v41 = vld [vmem:[#allocation5 + $0x128] sm:$0xff] }
  0xa8   :  { %1634 = vmatpush.msra.mxu0 %v1115_v42  ;;  %1653 = vmatpush.msra.mxu1 %v1217_v43  ;;  %v660_v42 = vld [vmem:[#allocation5 + $0x428] sm:$0xff]  ;;  %v1307_v43 = vld [vmem:[#allocation5 + $0x1860] sm:$0xff] }
  0xaa   :  { %1635 = vmatpush.msra.mxu0 %v1109_v44  ;;  %1654 = vmatpush.msra.mxu1 %v1211_v45  ;;  %v1403_v44 = vld [vmem:[#allocation5 + $0x1b60] sm:$0xff]  ;;  %v558_v45 = vld [vmem:[#allocation5 + $0xf8] sm:$0xff] }
  0xac   :  { %1636 = vmatpush.msra.mxu0 %v1103_v47  ;;  %1655 = vmatpush.msra.mxu1 %v1205_v48  ;;  %v654_v47 = vld [vmem:[#allocation5 + $0x3f8] sm:$0xff] }
  0xae   :  { %1656 = vmatpush.msra.mxu1 %v1199_v49  ;;  %v1301_v49 = vld [vmem:[#allocation5 + $0x1830] sm:$0xff] }
  0xbc   :  { %v334_v50 = vpop.f32.mrf.mxu0 }
  0xbd   :  { %v354_v51 = vpop.f32.mrf.mxu1  ;;  %v3458_v52 = vmax.f32 %v334_v50, 0.0  ;;  %v1397_v50 = vld [vmem:[#allocation5 + $0x1b30] sm:$0xff] }
  0xbe   :  { %v3460_v53 = vmax.f32 %v354_v51, 0.0 }
  0xbf   :  { %1517 = vmatmul.f32.vlgmr.msra.gmra.mxu2 %v3458_v52 }
  0xc0   :  { %1537 = vmatmul.f32.vlgmr.msra.gmra.mxu3 %v3460_v53  ;;  %1661 = vmatpush.msra.mxu2 %v1385_v54 }
  0xc1   :  { %1681 = vmatpush.msra.mxu3 %v1481_v55  ;;  %v552_v55 = vld [vmem:[#allocation5 + $0xc8] sm:$0xff] }
  0xc2   :  { %1662 = vmatpush.msra.mxu2 %v1379_v56  ;;  %v648_v56 = vld [vmem:[#allocation5 + $0x3c8] sm:$0xff] }
  0xc3   :  { %1682 = vmatpush.msra.mxu3 %v1475_v57  ;;  %v374_v60 = vpop.f32.mrf.mxu2 }
  0xc4   :  { %v394_v61 = vpop.f32.mrf.mxu3  ;;  %v3464_v62 = vmax.f32 %v374_v60, 0.0  ;;  %1663 = vmatpush.msra.mxu2 %v1373_v58  ;;  %v1295_v58 = vld [vmem:[#allocation5 + $0x1800] sm:$0xff]  ;;  %v546_v60 = vld [vmem:[#allocation5 + $0x98] sm:$0xff] }
  0xc5   :  { %v3466_v63 = vmax.f32 %v394_v61, 0.0  ;;  %1683 = vmatpush.msra.mxu3 %v1469_v59  ;;  %v1391_v59 = vld [vmem:[#allocation5 + $0x1b00] sm:$0xff]  ;;  %v642_v61 = vld [vmem:[#allocation5 + $0x398] sm:$0xff] }
  0xc6   :  { %1557 = vmatmul.f32.vlgmr.msrb.gmra.mxu0 %v3464_v62  ;;  %1664 = vmatpush.msra.mxu2 %v1367_v0  ;;  %v810_v0 = vld [vmem:[#allocation5 + $0x8d8] sm:$0xff] }
  0xc7   :  { %1577 = vmatmul.f32.vlgmr.msrb.gmra.mxu1 %v3466_v63  ;;  %1684 = vmatpush.msra.mxu3 %v1463_v1  ;;  %v906_v1 = vld [vmem:[#allocation5 + $0xbd8] sm:$0xff] }
  0xc8   :  { %1701 = vmatpush.msrb.mxu0 %v618_v2  ;;  %1721 = vmatpush.msrb.mxu1 %v714_v3  ;;  %v540_v2 = vld [vmem:[#allocation5 + $0x68] sm:$0xff] }
  0xc9   :  { %1665 = vmatpush.msra.mxu2 %v1361_v4  ;;  %1685 = vmatpush.msra.mxu3 %v1457_v5  ;;  %v636_v3 = vld [vmem:[#allocation5 + $0x368] sm:$0xff] }
  0xca   :  { %1702 = vmatpush.msrb.mxu0 %v612_v6  ;;  %1722 = vmatpush.msrb.mxu1 %v708_v7  ;;  %v804_v4 = vld [vmem:[#allocation5 + $0x8a8] sm:$0xff]  ;;  %v534_v6 = vld [vmem:[#allocation5 + $0x38] sm:$0xff] }
  0xcb   :  { %1666 = vmatpush.msra.mxu2 %v1355_v8  ;;  %1686 = vmatpush.msra.mxu3 %v1451_v9  ;;  %v900_v5 = vld [vmem:[#allocation5 + $0xba8] sm:$0xff]  ;;  %v630_v7 = vld [vmem:[#allocation5 + $0x338] sm:$0xff] }
  0xcc   :  { %1703 = vmatpush.msrb.mxu0 %v606_v10  ;;  %1723 = vmatpush.msrb.mxu1 %v702_v11  ;;  %v798_v8 = vld [vmem:[#allocation5 + $0x878] sm:$0xff]  ;;  %v528_v10 = vld [vmem:[#allocation5 + $0x8] sm:$0xff] }
  0xcd   :  { %1667 = vmatpush.msra.mxu2 %v1349_v12  ;;  %1687 = vmatpush.msra.mxu3 %v1445_v13  ;;  %v894_v9 = vld [vmem:[#allocation5 + $0xb78] sm:$0xff]  ;;  %v624_v11 = vld [vmem:[#allocation5 + $0x308] sm:$0xff] }
  0xce   :  { %1704 = vmatpush.msrb.mxu0 %v600_v14  ;;  %1724 = vmatpush.msrb.mxu1 %v696_v15  ;;  %v792_v12 = vld [vmem:[#allocation5 + $0x848] sm:$0xff]  ;;  %v1002_v14 = vld [vmem:[#allocation5 + $0xed8] sm:$0xff] }
  0xcf   :  { %1668 = vmatpush.msra.mxu2 %v1343_v16  ;;  %1688 = vmatpush.msra.mxu3 %v1439_v17  ;;  %v888_v13 = vld [vmem:[#allocation5 + $0xb48] sm:$0xff]  ;;  %v1098_v15 = vld [vmem:[#allocation5 + $0x11d8] sm:$0xff] }
  0xd0   :  { %1705 = vmatpush.msrb.mxu0 %v594_v18  ;;  %1725 = vmatpush.msrb.mxu1 %v690_v19  ;;  %v786_v17 = vld [vmem:[#allocation5 + $0x818] sm:$0xff]  ;;  %v996_v19 = vld [vmem:[#allocation5 + $0xea8] sm:$0xff] }
  0xd1   :  { %1669 = vmatpush.msra.mxu2 %v1337_v20  ;;  %1689 = vmatpush.msra.mxu3 %v1433_v21  ;;  %v882_v18 = vld [vmem:[#allocation5 + $0xb18] sm:$0xff]  ;;  %v1092_v20 = vld [vmem:[#allocation5 + $0x11a8] sm:$0xff] }
  0xd2   :  { %1706 = vmatpush.msrb.mxu0 %v588_v46  ;;  %1726 = vmatpush.msrb.mxu1 %v684_v22  ;;  %v780_v21 = vld [vmem:[#allocation5 + $0x7e8] sm:$0xff] }
  0xd3   :  { %v414_v29 = vpop.f32.mrf.mxu0  ;;  %1670 = vmatpush.msra.mxu2 %v1331_v23  ;;  %1690 = vmatpush.msra.mxu3 %v1427_v24  ;;  %v876_v46 = vld [vmem:[#allocation5 + $0xae8] sm:$0xff]  ;;  %v990_v24 = vld [vmem:[#allocation5 + $0xe78] sm:$0xff] }
  0xd4   :  { %v3470_v32 = vmax.f32 %v414_v29, 0.0  ;;  %1707 = vmatpush.msrb.mxu0 %v582_v25  ;;  %1727 = vmatpush.msrb.mxu1 %v678_v26  ;;  %v1086_v25 = vld [vmem:[#allocation5 + $0x1178] sm:$0xff]  ;;  %v984_v29 = vld [vmem:[#allocation5 + $0xe48] sm:$0xff] }
  0xd5   :  { %v434_v34 = vpop.f32.mrf.mxu1  ;;  %1671 = vmatpush.msra.mxu2 %v1325_v27  ;;  %1691 = vmatpush.msra.mxu3 %v1421_v28  ;;  %v870_v26 = vld [vmem:[#allocation5 + $0xab8] sm:$0xff] }
  0xd6   :  { %v3472_v37 = vmax.f32 %v434_v34, 0.0  ;;  %1708 = vmatpush.msrb.mxu0 %v576_v30  ;;  %1728 = vmatpush.msrb.mxu1 %v672_v31  ;;  %v774_v28 = vld [vmem:[#allocation5 + $0x7b8] sm:$0xff]  ;;  %v1080_v30 = vld [vmem:[#allocation5 + $0x1148] sm:$0xff] }
  0xd7   :  { %1597 = vmatmul.f32.vlgmr.msrb.gmra.mxu2 %v3470_v32  ;;  %1692 = vmatpush.msra.mxu3 %v1415_v33  ;;  %v768_v31 = vld [vmem:[#allocation5 + $0x788] sm:$0xff]  ;;  %v978_v34 = vld [vmem:[#allocation5 + $0xe18] sm:$0xff] }
  0xd8   :  { %1672 = vmatpush.msra.mxu2 %v1319_v35  ;;  %1709 = vmatpush.msrb.mxu0 %v570_v36  ;;  %v864_v33 = vld [vmem:[#allocation5 + $0xa88] sm:$0xff]  ;;  %v1074_v35 = vld [vmem:[#allocation5 + $0x1118] sm:$0xff] }
  0xd9   :  { %1729 = vmatpush.msrb.mxu1 %v666_v38  ;;  %1617 = vmatmul.f32.vlgmr.msrb.gmra.mxu3 %v3472_v37  ;;  %v762_v36 = vld [vmem:[#allocation5 + $0x758] sm:$0xff] }
  0xda   :  { %1673 = vmatpush.msra.mxu2 %v1313_v39  ;;  %1693 = vmatpush.msra.mxu3 %v1409_v40  ;;  %v858_v38 = vld [vmem:[#allocation5 + $0xa58] sm:$0xff]  ;;  %v972_v39 = vld [vmem:[#allocation5 + $0xde8] sm:$0xff] }
  0xdb   :  { %1710 = vmatpush.msrb.mxu0 %v564_v41  ;;  %1730 = vmatpush.msrb.mxu1 %v660_v42  ;;  %v1068_v40 = vld [vmem:[#allocation5 + $0x10e8] sm:$0xff] }
  0xdc   :  { %v454_v48 = vpop.f32.mrf.mxu2  ;;  %v474_v54 = vpop.f32.mrf.mxu3  ;;  %1674 = vmatpush.msra.mxu2 %v1307_v43  ;;  %1694 = vmatpush.msra.mxu3 %v1403_v44  ;;  %v756_v41 = vld [vmem:[#allocation5 + $0x728] sm:$0xff]  ;;  %v966_v43 = vld [vmem:[#allocation5 + $0xdb8] sm:$0xff] }
  0xdd   :  { %v3476_v51 = vmax.f32 %v454_v48, 0.0  ;;  %v3478_v57 = vmax.f32 %v474_v54, 0.0  ;;  %1711 = vmatpush.msrb.mxu0 %v558_v45  ;;  %1731 = vmatpush.msrb.mxu1 %v654_v47  ;;  %v852_v42 = vld [vmem:[#allocation5 + $0xa28] sm:$0xff]  ;;  %v1062_v44 = vld [vmem:[#allocation5 + $0x10b8] sm:$0xff] }
  0xde   :  { %1675 = vmatpush.msra.mxu2 %v1301_v49  ;;  %1695 = vmatpush.msra.mxu3 %v1397_v50  ;;  %v750_v45 = vld [vmem:[#allocation5 + $0x6f8] sm:$0xff]  ;;  %v960_v48 = vld [vmem:[#allocation5 + $0xd88] sm:$0xff] }
  0xdf   :  { %1712 = vmatpush.msrb.mxu0 %v552_v55  ;;  %1732 = vmatpush.msrb.mxu1 %v648_v56  ;;  %v846_v47 = vld [vmem:[#allocation5 + $0x9f8] sm:$0xff]  ;;  %v1056_v49 = vld [vmem:[#allocation5 + $0x1088] sm:$0xff] }
  0xe0   :  { %1637 = vmatmul.f32.vlgmr.msra.gmra.mxu0 %v3476_v51  ;;  %1657 = vmatmul.f32.vlgmr.msra.gmra.mxu1 %v3478_v57  ;;  %v744_v50 = vld [vmem:[#allocation5 + $0x6c8] sm:$0xff]  ;;  %v954_v55 = vld [vmem:[#allocation5 + $0xd58] sm:$0xff] }
  0xe1   :  { %1676 = vmatpush.msra.mxu2 %v1295_v58  ;;  %1696 = vmatpush.msra.mxu3 %v1391_v59  ;;  %v840_v54 = vld [vmem:[#allocation5 + $0x9c8] sm:$0xff]  ;;  %v1050_v56 = vld [vmem:[#allocation5 + $0x1058] sm:$0xff] }
  0xe2   :  { %1713 = vmatpush.msrb.mxu0 %v546_v60  ;;  %1733 = vmatpush.msrb.mxu1 %v642_v61  ;;  %v738_v58 = vld [vmem:[#allocation5 + $0x698] sm:$0xff]  ;;  %v948_v60 = vld [vmem:[#allocation5 + $0xd28] sm:$0xff] }
  0xe3   :  { %1741 = vmatpush.msrb.mxu2 %v810_v0  ;;  %1761 = vmatpush.msrb.mxu3 %v906_v1  ;;  %v834_v59 = vld [vmem:[#allocation5 + $0x998] sm:$0xff]  ;;  %v1044_v61 = vld [vmem:[#allocation5 + $0x1028] sm:$0xff] }
  0xe4   :  { %1714 = vmatpush.msrb.mxu0 %v540_v2  ;;  %1734 = vmatpush.msrb.mxu1 %v636_v3  ;;  %v732_v0 = vld [vmem:[#allocation5 + $0x668] sm:$0xff]  ;;  %v942_v2 = vld [vmem:[#allocation5 + $0xcf8] sm:$0xff] }
  0xe5   :  { %1742 = vmatpush.msrb.mxu2 %v804_v4  ;;  %1762 = vmatpush.msrb.mxu3 %v900_v5  ;;  %v828_v1 = vld [vmem:[#allocation5 + $0x968] sm:$0xff]  ;;  %v1038_v3 = vld [vmem:[#allocation5 + $0xff8] sm:$0xff] }
  0xe6   :  { %1715 = vmatpush.msrb.mxu0 %v534_v6  ;;  %1735 = vmatpush.msrb.mxu1 %v630_v7  ;;  %v726_v4 = vld [vmem:[#allocation5 + $0x638] sm:$0xff]  ;;  %v936_v6 = vld [vmem:[#allocation5 + $0xcc8] sm:$0xff] }
  0xe7   :  { %1743 = vmatpush.msrb.mxu2 %v798_v8  ;;  %1763 = vmatpush.msrb.mxu3 %v894_v9  ;;  %v822_v5 = vld [vmem:[#allocation5 + $0x938] sm:$0xff]  ;;  %v1032_v7 = vld [vmem:[#allocation5 + $0xfc8] sm:$0xff] }
  0xe8   :  { %1716 = vmatpush.msrb.mxu0 %v528_v10  ;;  %1736 = vmatpush.msrb.mxu1 %v624_v11  ;;  %v720_v8 = vld [vmem:[#allocation5 + $0x608] sm:$0xff]  ;;  %v930_v10 = vld [vmem:[#allocation5 + $0xc98] sm:$0xff] }
  0xe9   :  { %1717 = vmatmul.f32.vlgmr.msrb.gmra.mxu0 %v3458_v52  ;;  %1737 = vmatmul.f32.vlgmr.msrb.gmra.mxu1 %v3460_v53  ;;  %v816_v9 = vld [vmem:[#allocation5 + $0x908] sm:$0xff]  ;;  %v1026_v11 = vld [vmem:[#allocation5 + $0xf98] sm:$0xff] }
  0xea   :  { %v494_v16 = vpop.f32.mrf.mxu0  ;;  %1744 = vmatpush.msrb.mxu2 %v792_v12  ;;  %1764 = vmatpush.msrb.mxu3 %v888_v13  ;;  %v1194_v12 = vld [vmem:[#allocation5 + $0x14d8] sm:$0xff] }
  0xeb   :  { %1781 = vmatpush.msra.mxu0 %v1002_v14  ;;  %1801 = vmatpush.msra.mxu1 %v1098_v15  ;;  %v3484_v22 = vmax.f32 %v494_v16, 0.0  ;;  %v1290_v13 = vld [vmem:[#allocation5 + $0x17d8] sm:$0xff]  ;;  %v924_v14 = vld [vmem:[#allocation5 + $0xc68] sm:$0xff] }
  0xec   :  { %1745 = vmatpush.msrb.mxu2 %v786_v17  ;;  %1765 = vmatpush.msrb.mxu3 %v882_v18  ;;  %v514_v23 = vpop.f32.mrf.mxu1  ;;  %v1020_v15 = vld [vmem:[#allocation5 + $0xf68] sm:$0xff]  ;;  %v918_v18 = vld [vmem:[#allocation5 + $0xc38] sm:$0xff] }
  0xed   :  { %1782 = vmatpush.msra.mxu0 %v996_v19  ;;  %1802 = vmatpush.msra.mxu1 %v1092_v20  ;;  %v3486_v27 = vmax.f32 %v514_v23, 0.0  ;;  %v1188_v16 = vld [vmem:[#allocation5 + $0x14a8] sm:$0xff]  ;;  %v1014_v19 = vld [vmem:[#allocation5 + $0xf38] sm:$0xff] }
  0xee   :  { %1746 = vmatpush.msrb.mxu2 %v780_v21  ;;  %1766 = vmatpush.msrb.mxu3 %v876_v46  ;;  %v1284_v17 = vld [vmem:[#allocation5 + $0x17a8] sm:$0xff]  ;;  %v1182_v20 = vld [vmem:[#allocation5 + $0x1478] sm:$0xff] }
  0xef   :  { %1783 = vmatpush.msra.mxu0 %v990_v24  ;;  %1803 = vmatpush.msra.mxu1 %v1086_v25  ;;  %v1278_v21 = vld [vmem:[#allocation5 + $0x1778] sm:$0xff]  ;;  %v912_v46 = vld [vmem:[#allocation5 + $0xc08] sm:$0xff] }
  0xf0   :  { %1677 = vmatmul.f32.vlgmr.msra.gmra.mxu2 %v3484_v22  ;;  %1767 = vmatpush.msrb.mxu3 %v870_v26  ;;  %v1008_v23 = vld [vmem:[#allocation5 + $0xf08] sm:$0xff]  ;;  %v1386_v26 = vld [vmem:[#allocation5 + $0x1ad8] sm:$0xff] }
  0xf1   :  { %1747 = vmatpush.msrb.mxu2 %v774_v28  ;;  %1784 = vmatpush.msra.mxu0 %v984_v29  ;;  %v1176_v24 = vld [vmem:[#allocation5 + $0x1448] sm:$0xff]  ;;  %v1482_v28 = vld [vmem:[#allocation5 + $0x1dd8] sm:$0xff] }
  0xf2   :  { %1804 = vmatpush.msra.mxu1 %v1080_v30  ;;  %1697 = vmatmul.f32.vlgmr.msra.gmra.mxu3 %v3486_v27  ;;  %v1272_v25 = vld [vmem:[#allocation5 + $0x1748] sm:$0xff]  ;;  %v1170_v29 = vld [vmem:[#allocation5 + $0x1418] sm:$0xff] }
  0xf3   :  { %1748 = vmatpush.msrb.mxu2 %v768_v31  ;;  %1768 = vmatpush.msrb.mxu3 %v864_v33  ;;  %v1266_v30 = vld [vmem:[#allocation5 + $0x1718] sm:$0xff]  ;;  %v1380_v31 = vld [vmem:[#allocation5 + $0x1aa8] sm:$0xff] }
  0xf4   :  { %1785 = vmatpush.msra.mxu0 %v978_v34  ;;  %1805 = vmatpush.msra.mxu1 %v1074_v35  ;;  %v1476_v33 = vld [vmem:[#allocation5 + $0x1da8] sm:$0xff] }
  0xf5   :  { %1749 = vmatpush.msrb.mxu2 %v762_v36  ;;  %1769 = vmatpush.msrb.mxu3 %v858_v38  ;;  %v1164_v34 = vld [vmem:[#allocation5 + $0x13e8] sm:$0xff]  ;;  %v1374_v36 = vld [vmem:[#allocation5 + $0x1a78] sm:$0xff] }
  0xf6   :  { %1786 = vmatpush.msra.mxu0 %v972_v39  ;;  %1806 = vmatpush.msra.mxu1 %v1068_v40  ;;  %v1260_v35 = vld [vmem:[#allocation5 + $0x16e8] sm:$0xff]  ;;  %v1470_v38 = vld [vmem:[#allocation5 + $0x1d78] sm:$0xff] }
  0xf7   :  { %1750 = vmatpush.msrb.mxu2 %v756_v41  ;;  %1770 = vmatpush.msrb.mxu3 %v852_v42  ;;  %v1158_v39 = vld [vmem:[#allocation5 + $0x13b8] sm:$0xff]  ;;  %v1368_v41 = vld [vmem:[#allocation5 + $0x1a48] sm:$0xff] }
  0xf8   :  { %1787 = vmatpush.msra.mxu0 %v966_v43  ;;  %1807 = vmatpush.msra.mxu1 %v1062_v44  ;;  %v1254_v40 = vld [vmem:[#allocation5 + $0x16b8] sm:$0xff]  ;;  %v1464_v42 = vld [vmem:[#allocation5 + $0x1d48] sm:$0xff] }
  0xf9   :  { %1751 = vmatpush.msrb.mxu2 %v750_v45  ;;  %1771 = vmatpush.msrb.mxu3 %v846_v47  ;;  %v1152_v43 = vld [vmem:[#allocation5 + $0x1388] sm:$0xff]  ;;  %v1362_v45 = vld [vmem:[#allocation5 + $0x1a18] sm:$0xff] }
  0xfa   :  { %1788 = vmatpush.msra.mxu0 %v960_v48  ;;  %1808 = vmatpush.msra.mxu1 %v1056_v49  ;;  %v1248_v44 = vld [vmem:[#allocation5 + $0x1688] sm:$0xff]  ;;  %v1458_v47 = vld [vmem:[#allocation5 + $0x1d18] sm:$0xff] }
  0xfb   :  { %1752 = vmatpush.msrb.mxu2 %v744_v50  ;;  %1772 = vmatpush.msrb.mxu3 %v840_v54  ;;  %v1146_v48 = vld [vmem:[#allocation5 + $0x1358] sm:$0xff]  ;;  %v1356_v50 = vld [vmem:[#allocation5 + $0x19e8] sm:$0xff] }
  0xfc   :  { %1789 = vmatpush.msra.mxu0 %v954_v55  ;;  %1809 = vmatpush.msra.mxu1 %v1050_v56  ;;  %v1242_v49 = vld [vmem:[#allocation5 + $0x1658] sm:$0xff]  ;;  %v1452_v54 = vld [vmem:[#allocation5 + $0x1ce8] sm:$0xff] }
  0xfd   :  { %1753 = vmatpush.msrb.mxu2 %v738_v58  ;;  %1773 = vmatpush.msrb.mxu3 %v834_v59  ;;  %v1140_v55 = vld [vmem:[#allocation5 + $0x1328] sm:$0xff]  ;;  %v1350_v58 = vld [vmem:[#allocation5 + $0x19b8] sm:$0xff] }
  0xfe   :  { %1790 = vmatpush.msra.mxu0 %v948_v60  ;;  %1810 = vmatpush.msra.mxu1 %v1044_v61  ;;  %v1236_v56 = vld [vmem:[#allocation5 + $0x1628] sm:$0xff]  ;;  %v1446_v59 = vld [vmem:[#allocation5 + $0x1cb8] sm:$0xff] }
  0xff   :  { %1754 = vmatpush.msrb.mxu2 %v732_v0  ;;  %1774 = vmatpush.msrb.mxu3 %v828_v1  ;;  %v1134_v60 = vld [vmem:[#allocation5 + $0x12f8] sm:$0xff]  ;;  %v1344_v0 = vld [vmem:[#allocation5 + $0x1988] sm:$0xff] }
 0x100   :  { %1791 = vmatpush.msra.mxu0 %v942_v2  ;;  %1811 = vmatpush.msra.mxu1 %v1038_v3  ;;  %v1230_v61 = vld [vmem:[#allocation5 + $0x15f8] sm:$0xff]  ;;  %v1440_v1 = vld [vmem:[#allocation5 + $0x1c88] sm:$0xff] }
 0x101   :  { %1755 = vmatpush.msrb.mxu2 %v726_v4  ;;  %1775 = vmatpush.msrb.mxu3 %v822_v5  ;;  %v1128_v2 = vld [vmem:[#allocation5 + $0x12c8] sm:$0xff]  ;;  %v1338_v4 = vld [vmem:[#allocation5 + $0x1958] sm:$0xff] }
 0x102   :  { %1792 = vmatpush.msra.mxu0 %v936_v6  ;;  %1812 = vmatpush.msra.mxu1 %v1032_v7  ;;  %v1224_v3 = vld [vmem:[#allocation5 + $0x15c8] sm:$0xff]  ;;  %v1434_v5 = vld [vmem:[#allocation5 + $0x1c58] sm:$0xff] }
 0x103   :  { %1756 = vmatpush.msrb.mxu2 %v720_v8  ;;  %1776 = vmatpush.msrb.mxu3 %v816_v9  ;;  %v1122_v6 = vld [vmem:[#allocation5 + $0x1298] sm:$0xff]  ;;  %v1332_v8 = vld [vmem:[#allocation5 + $0x1928] sm:$0xff] }
 0x104   :  { %1793 = vmatpush.msra.mxu0 %v930_v10  ;;  %1813 = vmatpush.msra.mxu1 %v1026_v11  ;;  %v1218_v7 = vld [vmem:[#allocation5 + $0x1598] sm:$0xff]  ;;  %v1428_v9 = vld [vmem:[#allocation5 + $0x1c28] sm:$0xff] }
 0x105   :  { %1757 = vmatmul.f32.vlgmr.msrb.gmra.mxu2 %v3464_v62  ;;  %1777 = vmatmul.f32.vlgmr.msrb.gmra.mxu3 %v3466_v63  ;;  %v1116_v10 = vld [vmem:[#allocation5 + $0x1268] sm:$0xff] }
 0x106   :  { %1821 = vmatpush.msra.mxu2 %v1194_v12  ;;  %1841 = vmatpush.msra.mxu3 %v1290_v13  ;;  %v1212_v11 = vld [vmem:[#allocation5 + $0x1568] sm:$0xff]  ;;  %v1326_v12 = vld [vmem:[#allocation5 + $0x18f8] sm:$0xff] }
 0x107   :  { %1794 = vmatpush.msra.mxu0 %v924_v14  ;;  %1814 = vmatpush.msra.mxu1 %v1020_v15  ;;  %v1422_v13 = vld [vmem:[#allocation5 + $0x1bf8] sm:$0xff] }
 0x108   :  { %1822 = vmatpush.msra.mxu2 %v1188_v16  ;;  %1842 = vmatpush.msra.mxu3 %v1284_v17  ;;  %v1110_v14 = vld [vmem:[#allocation5 + $0x1238] sm:$0xff]  ;;  %v1320_v16 = vld [vmem:[#allocation5 + $0x18c8] sm:$0xff] }
 0x109   :  { %1795 = vmatpush.msra.mxu0 %v918_v18  ;;  %1815 = vmatpush.msra.mxu1 %v1014_v19  ;;  %v1206_v15 = vld [vmem:[#allocation5 + $0x1538] sm:$0xff]  ;;  %v1416_v17 = vld [vmem:[#allocation5 + $0x1bc8] sm:$0xff] }
 0x10a   :  { %1823 = vmatpush.msra.mxu2 %v1182_v20  ;;  %1843 = vmatpush.msra.mxu3 %v1278_v21  ;;  %v1104_v18 = vld [vmem:[#allocation5 + $0x1208] sm:$0xff]  ;;  %v1314_v20 = vld [vmem:[#allocation5 + $0x1898] sm:$0xff] }
 0x10b   :  { %1796 = vmatpush.msra.mxu0 %v912_v46  ;;  %1816 = vmatpush.msra.mxu1 %v1008_v23  ;;  %v1200_v19 = vld [vmem:[#allocation5 + $0x1508] sm:$0xff]  ;;  %v1410_v21 = vld [vmem:[#allocation5 + $0x1b98] sm:$0xff]  ;;  %v619_v46 = vld [vmem:[#allocation5 + $0x2e0] sm:$0xff] }
 0x10c   :  { %1797 = vmatmul.f32.vlgmr.msra.gmra.mxu0 %v3470_v32  ;;  %1817 = vmatmul.f32.vlgmr.msra.gmra.mxu1 %v3472_v37  ;;  %v715_v23 = vld [vmem:[#allocation5 + $0x5e0] sm:$0xff] }
 0x10d   :  { %1824 = vmatpush.msra.mxu2 %v1176_v24  ;;  %1844 = vmatpush.msra.mxu3 %v1272_v25  ;;  %v1308_v24 = vld [vmem:[#allocation5 + $0x1868] sm:$0xff] }
 0x10e   :  { %1861 = vmatpush.msrb.mxu0 %v1386_v26  ;;  %1881 = vmatpush.msrb.mxu1 %v1482_v28  ;;  %v1404_v25 = vld [vmem:[#allocation5 + $0x1b68] sm:$0xff]  ;;  %v613_v26 = vld [vmem:[#allocation5 + $0x2b0] sm:$0xff] }
 0x10f   :  { %1825 = vmatpush.msra.mxu2 %v1170_v29  ;;  %1845 = vmatpush.msra.mxu3 %v1266_v30  ;;  %v709_v28 = vld [vmem:[#allocation5 + $0x5b0] sm:$0xff]  ;;  %v1302_v29 = vld [vmem:[#allocation5 + $0x1838] sm:$0xff] }
 0x110   :  { %1862 = vmatpush.msrb.mxu0 %v1380_v31  ;;  %1882 = vmatpush.msrb.mxu1 %v1476_v33  ;;  %v1398_v30 = vld [vmem:[#allocation5 + $0x1b38] sm:$0xff]  ;;  %v607_v31 = vld [vmem:[#allocation5 + $0x280] sm:$0xff] }
 0x111   :  { %1826 = vmatpush.msra.mxu2 %v1164_v34  ;;  %1846 = vmatpush.msra.mxu3 %v1260_v35  ;;  %v703_v33 = vld [vmem:[#allocation5 + $0x580] sm:$0xff]  ;;  %v1296_v34 = vld [vmem:[#allocation5 + $0x1808] sm:$0xff] }
 0x112   :  { %1863 = vmatpush.msrb.mxu0 %v1374_v36  ;;  %1883 = vmatpush.msrb.mxu1 %v1470_v38  ;;  %v1392_v35 = vld [vmem:[#allocation5 + $0x1b08] sm:$0xff]  ;;  %v601_v36 = vld [vmem:[#allocation5 + $0x250] sm:$0xff] }
 0x113   :  { %1827 = vmatpush.msra.mxu2 %v1158_v39  ;;  %1847 = vmatpush.msra.mxu3 %v1254_v40  ;;  %v697_v38 = vld [vmem:[#allocation5 + $0x550] sm:$0xff]  ;;  %v811_v39 = vld [vmem:[#allocation5 + $0x8e0] sm:$0xff] }
 0x114   :  { %1864 = vmatpush.msrb.mxu0 %v1368_v41  ;;  %1884 = vmatpush.msrb.mxu1 %v1464_v42  ;;  %v907_v40 = vld [vmem:[#allocation5 + $0xbe0] sm:$0xff] }
 0x115   :  { %1828 = vmatpush.msra.mxu2 %v1152_v43  ;;  %1848 = vmatpush.msra.mxu3 %v1248_v44  ;;  %v595_v41 = vld [vmem:[#allocation5 + $0x220] sm:$0xff]  ;;  %v805_v43 = vld [vmem:[#allocation5 + $0x8b0] sm:$0xff] }
 0x116   :  { %1865 = vmatpush.msrb.mxu0 %v1362_v45  ;;  %1885 = vmatpush.msrb.mxu1 %v1458_v47  ;;  %v691_v42 = vld [vmem:[#allocation5 + $0x520] sm:$0xff]  ;;  %v901_v44 = vld [vmem:[#allocation5 + $0xbb0] sm:$0xff] }
 0x117   :  { %1829 = vmatpush.msra.mxu2 %v1146_v48  ;;  %1849 = vmatpush.msra.mxu3 %v1242_v49  ;;  %v589_v45 = vld [vmem:[#allocation5 + $0x1f0] sm:$0xff]  ;;  %v799_v48 = vld [vmem:[#allocation5 + $0x880] sm:$0xff] }
 0x118   :  { %1866 = vmatpush.msrb.mxu0 %v1356_v50  ;;  %1886 = vmatpush.msrb.mxu1 %v1452_v54  ;;  %v685_v47 = vld [vmem:[#allocation5 + $0x4f0] sm:$0xff]  ;;  %v895_v49 = vld [vmem:[#allocation5 + $0xb80] sm:$0xff] }
 0x119   :  { %1830 = vmatpush.msra.mxu2 %v1140_v55  ;;  %1850 = vmatpush.msra.mxu3 %v1236_v56  ;;  %v583_v50 = vld [vmem:[#allocation5 + $0x1c0] sm:$0xff]  ;;  %v793_v55 = vld [vmem:[#allocation5 + $0x850] sm:$0xff] }
 0x11a   :  { %1867 = vmatpush.msrb.mxu0 %v1350_v58  ;;  %1887 = vmatpush.msrb.mxu1 %v1446_v59  ;;  %v679_v54 = vld [vmem:[#allocation5 + $0x4c0] sm:$0xff]  ;;  %v889_v56 = vld [vmem:[#allocation5 + $0xb50] sm:$0xff] }
 0x11b   :  { %1831 = vmatpush.msra.mxu2 %v1134_v60  ;;  %1851 = vmatpush.msra.mxu3 %v1230_v61  ;;  %v577_v58 = vld [vmem:[#allocation5 + $0x190] sm:$0xff]  ;;  %v787_v60 = vld [vmem:[#allocation5 + $0x820] sm:$0xff] }
 0x11c   :  { %1868 = vmatpush.msrb.mxu0 %v1344_v0  ;;  %1888 = vmatpush.msrb.mxu1 %v1440_v1  ;;  %v673_v59 = vld [vmem:[#allocation5 + $0x490] sm:$0xff]  ;;  %v883_v61 = vld [vmem:[#allocation5 + $0xb20] sm:$0xff] }
 0x11d   :  { %1832 = vmatpush.msra.mxu2 %v1128_v2  ;;  %1852 = vmatpush.msra.mxu3 %v1224_v3  ;;  %v571_v0 = vld [vmem:[#allocation5 + $0x160] sm:$0xff]  ;;  %v781_v2 = vld [vmem:[#allocation5 + $0x7f0] sm:$0xff] }
 0x11e   :  { %1869 = vmatpush.msrb.mxu0 %v1338_v4  ;;  %1889 = vmatpush.msrb.mxu1 %v1434_v5  ;;  %v667_v1 = vld [vmem:[#allocation5 + $0x460] sm:$0xff]  ;;  %v877_v3 = vld [vmem:[#allocation5 + $0xaf0] sm:$0xff] }
 0x11f   :  { %1833 = vmatpush.msra.mxu2 %v1122_v6  ;;  %1853 = vmatpush.msra.mxu3 %v1218_v7  ;;  %v565_v4 = vld [vmem:[#allocation5 + $0x130] sm:$0xff]  ;;  %v775_v6 = vld [vmem:[#allocation5 + $0x7c0] sm:$0xff] }
 0x120   :  { %1870 = vmatpush.msrb.mxu0 %v1332_v8  ;;  %1890 = vmatpush.msrb.mxu1 %v1428_v9  ;;  %v661_v5 = vld [vmem:[#allocation5 + $0x430] sm:$0xff]  ;;  %v871_v7 = vld [vmem:[#allocation5 + $0xac0] sm:$0xff] }
 0x121   :  { %1834 = vmatpush.msra.mxu2 %v1116_v10  ;;  %1854 = vmatpush.msra.mxu3 %v1212_v11  ;;  %v559_v8 = vld [vmem:[#allocation5 + $0x100] sm:$0xff]  ;;  %v769_v10 = vld [vmem:[#allocation5 + $0x790] sm:$0xff] }
 0x122   :  { %1871 = vmatpush.msrb.mxu0 %v1326_v12  ;;  %1891 = vmatpush.msrb.mxu1 %v1422_v13  ;;  %v655_v9 = vld [vmem:[#allocation5 + $0x400] sm:$0xff]  ;;  %v865_v11 = vld [vmem:[#allocation5 + $0xa90] sm:$0xff] }
 0x123   :  { %1835 = vmatpush.msra.mxu2 %v1110_v14  ;;  %1855 = vmatpush.msra.mxu3 %v1206_v15  ;;  %v553_v12 = vld [vmem:[#allocation5 + $0xd0] sm:$0xff]  ;;  %v763_v14 = vld [vmem:[#allocation5 + $0x760] sm:$0xff] }
 0x124   :  { %1872 = vmatpush.msrb.mxu0 %v1320_v16  ;;  %1892 = vmatpush.msrb.mxu1 %v1416_v17  ;;  %v649_v13 = vld [vmem:[#allocation5 + $0x3d0] sm:$0xff]  ;;  %v859_v15 = vld [vmem:[#allocation5 + $0xa60] sm:$0xff] }
 0x125   :  { %1836 = vmatpush.msra.mxu2 %v1104_v18  ;;  %1856 = vmatpush.msra.mxu3 %v1200_v19  ;;  %v547_v16 = vld [vmem:[#allocation5 + $0xa0] sm:$0xff]  ;;  %v757_v18 = vld [vmem:[#allocation5 + $0x730] sm:$0xff] }
 0x126   :  { %1873 = vmatpush.msrb.mxu0 %v1314_v20  ;;  %1893 = vmatpush.msrb.mxu1 %v1410_v21  ;;  %v643_v17 = vld [vmem:[#allocation5 + $0x3a0] sm:$0xff]  ;;  %v853_v19 = vld [vmem:[#allocation5 + $0xa30] sm:$0xff] }
 0x127   :  { %1837 = vmatmul.f32.vlgmr.msra.gmra.mxu2 %v3476_v51  ;;  %1857 = vmatmul.f32.vlgmr.msra.gmra.mxu3 %v3478_v57  ;;  %v541_v20 = vld [vmem:[#allocation5 + $0x70] sm:$0xff] }
 0x128   :  { %1901 = vmatpush.msrb.mxu2 %v619_v46  ;;  %1921 = vmatpush.msrb.mxu3 %v715_v23  ;;  %v637_v21 = vld [vmem:[#allocation5 + $0x370] sm:$0xff]  ;;  %v751_v46 = vld [vmem:[#allocation5 + $0x700] sm:$0xff] }
 0x129   :  { %1874 = vmatpush.msrb.mxu0 %v1308_v24  ;;  %1894 = vmatpush.msrb.mxu1 %v1404_v25  ;;  %v847_v23 = vld [vmem:[#allocation5 + $0xa00] sm:$0xff] }
 0x12a   :  { %1902 = vmatpush.msrb.mxu2 %v613_v26  ;;  %1922 = vmatpush.msrb.mxu3 %v709_v28  ;;  %v535_v24 = vld [vmem:[#allocation5 + $0x40] sm:$0xff]  ;;  %v745_v26 = vld [vmem:[#allocation5 + $0x6d0] sm:$0xff] }
 0x12b   :  { %1875 = vmatpush.msrb.mxu0 %v1302_v29  ;;  %1895 = vmatpush.msrb.mxu1 %v1398_v30  ;;  %v631_v25 = vld [vmem:[#allocation5 + $0x340] sm:$0xff]  ;;  %v841_v28 = vld [vmem:[#allocation5 + $0x9d0] sm:$0xff] }
 0x12c   :  { %1903 = vmatpush.msrb.mxu2 %v607_v31  ;;  %1923 = vmatpush.msrb.mxu3 %v703_v33  ;;  %v529_v29 = vld [vmem:[#allocation5 + $0x10] sm:$0xff]  ;;  %v739_v31 = vld [vmem:[#allocation5 + $0x6a0] sm:$0xff] }
 0x12d   :  { %1876 = vmatpush.msrb.mxu0 %v1296_v34  ;;  %1896 = vmatpush.msrb.mxu1 %v1392_v35  ;;  %v625_v30 = vld [vmem:[#allocation5 + $0x310] sm:$0xff]  ;;  %v835_v33 = vld [vmem:[#allocation5 + $0x9a0] sm:$0xff] }
 0x12e   :  { %1877 = vmatmul.f32.vlgmr.msrb.gmra.mxu0 %v3484_v22  ;;  %1897 = vmatmul.f32.vlgmr.msrb.gmra.mxu1 %v3486_v27  ;;  %v1003_v34 = vld [vmem:[#allocation5 + $0xee0] sm:$0xff] }
 0x12f   :  { %1904 = vmatpush.msrb.mxu2 %v601_v36  ;;  %1924 = vmatpush.msrb.mxu3 %v697_v38  ;;  %v1099_v35 = vld [vmem:[#allocation5 + $0x11e0] sm:$0xff]  ;;  %v733_v36 = vld [vmem:[#allocation5 + $0x670] sm:$0xff] }
 0x130   :  { %1941 = vmatpush.msra.mxu0 %v811_v39  ;;  %1961 = vmatpush.msra.mxu1 %v907_v40  ;;  %v829_v38 = vld [vmem:[#allocation5 + $0x970] sm:$0xff] }
 0x131   :  { %1905 = vmatpush.msrb.mxu2 %v595_v41  ;;  %1925 = vmatpush.msrb.mxu3 %v691_v42  ;;  %v997_v39 = vld [vmem:[#allocation5 + $0xeb0] sm:$0xff]  ;;  %v727_v41 = vld [vmem:[#allocation5 + $0x640] sm:$0xff] }
 0x132   :  { %1942 = vmatpush.msra.mxu0 %v805_v43  ;;  %1962 = vmatpush.msra.mxu1 %v901_v44  ;;  %v1093_v40 = vld [vmem:[#allocation5 + $0x11b0] sm:$0xff]  ;;  %v823_v42 = vld [vmem:[#allocation5 + $0x940] sm:$0xff] }
 0x133   :  { %1906 = vmatpush.msrb.mxu2 %v589_v45  ;;  %1926 = vmatpush.msrb.mxu3 %v685_v47  ;;  %v991_v43 = vld [vmem:[#allocation5 + $0xe80] sm:$0xff]  ;;  %v721_v45 = vld [vmem:[#allocation5 + $0x610] sm:$0xff] }
 0x134   :  { %1943 = vmatpush.msra.mxu0 %v799_v48  ;;  %1963 = vmatpush.msra.mxu1 %v895_v49  ;;  %v1087_v44 = vld [vmem:[#allocation5 + $0x1180] sm:$0xff]  ;;  %v817_v47 = vld [vmem:[#allocation5 + $0x910] sm:$0xff] }
 0x135   :  { %1907 = vmatpush.msrb.mxu2 %v583_v50  ;;  %1927 = vmatpush.msrb.mxu3 %v679_v54  ;;  %v985_v48 = vld [vmem:[#allocation5 + $0xe50] sm:$0xff]  ;;  %v1195_v50 = vld [vmem:[#allocation5 + $0x14e0] sm:$0xff] }
 0x136   :  { %1944 = vmatpush.msra.mxu0 %v793_v55  ;;  %1964 = vmatpush.msra.mxu1 %v889_v56  ;;  %v1081_v49 = vld [vmem:[#allocation5 + $0x1150] sm:$0xff]  ;;  %v1291_v54 = vld [vmem:[#allocation5 + $0x17e0] sm:$0xff] }
 0x137   :  { %1908 = vmatpush.msrb.mxu2 %v577_v58  ;;  %1928 = vmatpush.msrb.mxu3 %v673_v59  ;;  %v979_v55 = vld [vmem:[#allocation5 + $0xe20] sm:$0xff]  ;;  %v1189_v58 = vld [vmem:[#allocation5 + $0x14b0] sm:$0xff] }
 0x138   :  { %1945 = vmatpush.msra.mxu0 %v787_v60  ;;  %1965 = vmatpush.msra.mxu1 %v883_v61  ;;  %v1075_v56 = vld [vmem:[#allocation5 + $0x1120] sm:$0xff]  ;;  %v1285_v59 = vld [vmem:[#allocation5 + $0x17b0] sm:$0xff] }
 0x139   :  { %1909 = vmatpush.msrb.mxu2 %v571_v0  ;;  %1929 = vmatpush.msrb.mxu3 %v667_v1  ;;  %v973_v60 = vld [vmem:[#allocation5 + $0xdf0] sm:$0xff]  ;;  %v1183_v0 = vld [vmem:[#allocation5 + $0x1480] sm:$0xff] }
 0x13a   :  { %1946 = vmatpush.msra.mxu0 %v781_v2  ;;  %1966 = vmatpush.msra.mxu1 %v877_v3  ;;  %v1069_v61 = vld [vmem:[#allocation5 + $0x10f0] sm:$0xff]  ;;  %v1279_v1 = vld [vmem:[#allocation5 + $0x1780] sm:$0xff] }
 0x13b   :  { %1910 = vmatpush.msrb.mxu2 %v565_v4  ;;  %1930 = vmatpush.msrb.mxu3 %v661_v5  ;;  %v967_v2 = vld [vmem:[#allocation5 + $0xdc0] sm:$0xff]  ;;  %v1177_v4 = vld [vmem:[#allocation5 + $0x1450] sm:$0xff] }
 0x13c   :  { %1947 = vmatpush.msra.mxu0 %v775_v6  ;;  %1967 = vmatpush.msra.mxu1 %v871_v7  ;;  %v1063_v3 = vld [vmem:[#allocation5 + $0x10c0] sm:$0xff]  ;;  %v1273_v5 = vld [vmem:[#allocation5 + $0x1750] sm:$0xff] }
 0x13d   :  { %1911 = vmatpush.msrb.mxu2 %v559_v8  ;;  %1931 = vmatpush.msrb.mxu3 %v655_v9  ;;  %v961_v6 = vld [vmem:[#allocation5 + $0xd90] sm:$0xff]  ;;  %v1171_v8 = vld [vmem:[#allocation5 + $0x1420] sm:$0xff] }
 0x13e   :  { %1948 = vmatpush.msra.mxu0 %v769_v10  ;;  %1968 = vmatpush.msra.mxu1 %v865_v11  ;;  %v1057_v7 = vld [vmem:[#allocation5 + $0x1090] sm:$0xff]  ;;  %v1267_v9 = vld [vmem:[#allocation5 + $0x1720] sm:$0xff] }
 0x13f   :  { %1912 = vmatpush.msrb.mxu2 %v553_v12  ;;  %1932 = vmatpush.msrb.mxu3 %v649_v13  ;;  %v955_v10 = vld [vmem:[#allocation5 + $0xd60] sm:$0xff]  ;;  %v1165_v12 = vld [vmem:[#allocation5 + $0x13f0] sm:$0xff] }
 0x140   :  { %1949 = vmatpush.msra.mxu0 %v763_v14  ;;  %1969 = vmatpush.msra.mxu1 %v859_v15  ;;  %v1051_v11 = vld [vmem:[#allocation5 + $0x1060] sm:$0xff]  ;;  %v1261_v13 = vld [vmem:[#allocation5 + $0x16f0] sm:$0xff] }
 0x141   :  { %1913 = vmatpush.msrb.mxu2 %v547_v16  ;;  %1933 = vmatpush.msrb.mxu3 %v643_v17  ;;  %v949_v14 = vld [vmem:[#allocation5 + $0xd30] sm:$0xff]  ;;  %v1159_v16 = vld [vmem:[#allocation5 + $0x13c0] sm:$0xff] }
 0x142   :  { %1950 = vmatpush.msra.mxu0 %v757_v18  ;;  %1970 = vmatpush.msra.mxu1 %v853_v19  ;;  %v1045_v15 = vld [vmem:[#allocation5 + $0x1030] sm:$0xff]  ;;  %v1255_v17 = vld [vmem:[#allocation5 + $0x16c0] sm:$0xff] }
 0x143   :  { %1914 = vmatpush.msrb.mxu2 %v541_v20  ;;  %1934 = vmatpush.msrb.mxu3 %v637_v21  ;;  %v943_v18 = vld [vmem:[#allocation5 + $0xd00] sm:$0xff]  ;;  %v1153_v20 = vld [vmem:[#allocation5 + $0x1390] sm:$0xff] }
 0x144   :  { %1951 = vmatpush.msra.mxu0 %v751_v46  ;;  %1971 = vmatpush.msra.mxu1 %v847_v23  ;;  %v1039_v19 = vld [vmem:[#allocation5 + $0x1000] sm:$0xff]  ;;  %v1249_v21 = vld [vmem:[#allocation5 + $0x1690] sm:$0xff] }
 0x145   :  { %1915 = vmatpush.msrb.mxu2 %v535_v24  ;;  %1935 = vmatpush.msrb.mxu3 %v631_v25  ;;  %v937_v46 = vld [vmem:[#allocation5 + $0xcd0] sm:$0xff]  ;;  %v1147_v24 = vld [vmem:[#allocation5 + $0x1360] sm:$0xff] }
 0x146   :  { %1952 = vmatpush.msra.mxu0 %v745_v26  ;;  %1972 = vmatpush.msra.mxu1 %v841_v28  ;;  %v1033_v23 = vld [vmem:[#allocation5 + $0xfd0] sm:$0xff]  ;;  %v1243_v25 = vld [vmem:[#allocation5 + $0x1660] sm:$0xff] }
 0x147   :  { %1916 = vmatpush.msrb.mxu2 %v529_v29  ;;  %1936 = vmatpush.msrb.mxu3 %v625_v30  ;;  %v931_v26 = vld [vmem:[#allocation5 + $0xca0] sm:$0xff]  ;;  %v1141_v29 = vld [vmem:[#allocation5 + $0x1330] sm:$0xff] }
 0x148   :  { %1953 = vmatpush.msra.mxu0 %v739_v31  ;;  %1973 = vmatpush.msra.mxu1 %v835_v33  ;;  %v1027_v28 = vld [vmem:[#allocation5 + $0xfa0] sm:$0xff]  ;;  %v1237_v30 = vld [vmem:[#allocation5 + $0x1630] sm:$0xff] }
 0x149   :  { %1917 = vmatmul.f32.vlgmr.msrb.gmra.mxu2 %v3458_v52  ;;  %1937 = vmatmul.f32.vlgmr.msrb.gmra.mxu3 %v3460_v53  ;;  %v925_v31 = vld [vmem:[#allocation5 + $0xc70] sm:$0xff] }
 0x14a   :  { %1981 = vmatpush.msra.mxu2 %v1003_v34  ;;  %2001 = vmatpush.msra.mxu3 %v1099_v35  ;;  %v1021_v33 = vld [vmem:[#allocation5 + $0xf70] sm:$0xff]  ;;  %v1135_v34 = vld [vmem:[#allocation5 + $0x1300] sm:$0xff] }
 0x14b   :  { %1954 = vmatpush.msra.mxu0 %v733_v36  ;;  %1974 = vmatpush.msra.mxu1 %v829_v38  ;;  %v1231_v35 = vld [vmem:[#allocation5 + $0x1600] sm:$0xff] }
 0x14c   :  { %1982 = vmatpush.msra.mxu2 %v997_v39  ;;  %2002 = vmatpush.msra.mxu3 %v1093_v40  ;;  %v919_v36 = vld [vmem:[#allocation5 + $0xc40] sm:$0xff]  ;;  %v1129_v39 = vld [vmem:[#allocation5 + $0x12d0] sm:$0xff] }
 0x14d   :  { %1955 = vmatpush.msra.mxu0 %v727_v41  ;;  %1975 = vmatpush.msra.mxu1 %v823_v42  ;;  %v1015_v38 = vld [vmem:[#allocation5 + $0xf40] sm:$0xff]  ;;  %v1225_v40 = vld [vmem:[#allocation5 + $0x15d0] sm:$0xff] }
 0x14e   :  { %1983 = vmatpush.msra.mxu2 %v991_v43  ;;  %2003 = vmatpush.msra.mxu3 %v1087_v44  ;;  %v913_v41 = vld [vmem:[#allocation5 + $0xc10] sm:$0xff]  ;;  %v1123_v43 = vld [vmem:[#allocation5 + $0x12a0] sm:$0xff] }
 0x14f   :  { %1956 = vmatpush.msra.mxu0 %v721_v45  ;;  %1976 = vmatpush.msra.mxu1 %v817_v47  ;;  %v1009_v42 = vld [vmem:[#allocation5 + $0xf10] sm:$0xff]  ;;  %v1219_v44 = vld [vmem:[#allocation5 + $0x15a0] sm:$0xff] }
 0x150   :  { %1957 = vmatmul.f32.vlgmr.msra.gmra.mxu0 %v3464_v62  ;;  %1977 = vmatmul.f32.vlgmr.msra.gmra.mxu1 %v3466_v63  ;;  %v1387_v45 = vld [vmem:[#allocation5 + $0x1ae0] sm:$0xff] }
 0x151   :  { %1984 = vmatpush.msra.mxu2 %v985_v48  ;;  %2004 = vmatpush.msra.mxu3 %v1081_v49  ;;  %v1483_v47 = vld [vmem:[#allocation5 + $0x1de0] sm:$0xff]  ;;  %v1117_v48 = vld [vmem:[#allocation5 + $0x1270] sm:$0xff] }
 0x152   :  { %2021 = vmatpush.msrb.mxu0 %v1195_v50  ;;  %2041 = vmatpush.msrb.mxu1 %v1291_v54  ;;  %v1213_v49 = vld [vmem:[#allocation5 + $0x1570] sm:$0xff] }
 0x153   :  { %1985 = vmatpush.msra.mxu2 %v979_v55  ;;  %2005 = vmatpush.msra.mxu3 %v1075_v56  ;;  %v1381_v50 = vld [vmem:[#allocation5 + $0x1ab0] sm:$0xff]  ;;  %v1111_v55 = vld [vmem:[#allocation5 + $0x1240] sm:$0xff] }
 0x154   :  { %2022 = vmatpush.msrb.mxu0 %v1189_v58  ;;  %2042 = vmatpush.msrb.mxu1 %v1285_v59  ;;  %v1477_v54 = vld [vmem:[#allocation5 + $0x1db0] sm:$0xff]  ;;  %v1207_v56 = vld [vmem:[#allocation5 + $0x1540] sm:$0xff] }
 0x155   :  { %1986 = vmatpush.msra.mxu2 %v973_v60  ;;  %2006 = vmatpush.msra.mxu3 %v1069_v61  ;;  %v1375_v58 = vld [vmem:[#allocation5 + $0x1a80] sm:$0xff]  ;;  %v1105_v60 = vld [vmem:[#allocation5 + $0x1210] sm:$0xff] }
 0x156   :  { %2023 = vmatpush.msrb.mxu0 %v1183_v0  ;;  %2043 = vmatpush.msrb.mxu1 %v1279_v1  ;;  %v1471_v59 = vld [vmem:[#allocation5 + $0x1d80] sm:$0xff]  ;;  %v1201_v61 = vld [vmem:[#allocation5 + $0x1510] sm:$0xff] }
 0x157   :  { %1987 = vmatpush.msra.mxu2 %v967_v2  ;;  %2007 = vmatpush.msra.mxu3 %v1063_v3  ;;  %v1369_v0 = vld [vmem:[#allocation5 + $0x1a50] sm:$0xff]  ;;  %v620_v2 = vld [vmem:[#allocation5 + $0x2e8] sm:$0xff] }
 0x158   :  { %2024 = vmatpush.msrb.mxu0 %v1177_v4  ;;  %2044 = vmatpush.msrb.mxu1 %v1273_v5  ;;  %v1465_v1 = vld [vmem:[#allocation5 + $0x1d50] sm:$0xff]  ;;  %v716_v3 = vld [vmem:[#allocation5 + $0x5e8] sm:$0xff]  ;;  %v1363_v4 = vld [vmem:[#allocation5 + $0x1a20] sm:$0xff] }
 0x159   :  { %1988 = vmatpush.msra.mxu2 %v961_v6  ;;  %2008 = vmatpush.msra.mxu3 %v1057_v7  ;;  %v1459_v5 = vld [vmem:[#allocation5 + $0x1d20] sm:$0xff]  ;;  %v614_v6 = vld [vmem:[#allocation5 + $0x2b8] sm:$0xff] }
 0x15a   :  { %2025 = vmatpush.msrb.mxu0 %v1171_v8  ;;  %2045 = vmatpush.msrb.mxu1 %v1267_v9  ;;  %v710_v7 = vld [vmem:[#allocation5 + $0x5b8] sm:$0xff]  ;;  %v1357_v8 = vld [vmem:[#allocation5 + $0x19f0] sm:$0xff] }
 0x15b   :  { %1989 = vmatpush.msra.mxu2 %v955_v10  ;;  %2009 = vmatpush.msra.mxu3 %v1051_v11  ;;  %v1453_v9 = vld [vmem:[#allocation5 + $0x1cf0] sm:$0xff]  ;;  %v608_v10 = vld [vmem:[#allocation5 + $0x288] sm:$0xff] }
 0x15c   :  { %2026 = vmatpush.msrb.mxu0 %v1165_v12  ;;  %2046 = vmatpush.msrb.mxu1 %v1261_v13  ;;  %v704_v11 = vld [vmem:[#allocation5 + $0x588] sm:$0xff]  ;;  %v1351_v12 = vld [vmem:[#allocation5 + $0x19c0] sm:$0xff] }
 0x15d   :  { %1990 = vmatpush.msra.mxu2 %v949_v14  ;;  %2010 = vmatpush.msra.mxu3 %v1045_v15  ;;  %v1447_v13 = vld [vmem:[#allocation5 + $0x1cc0] sm:$0xff]  ;;  %v602_v14 = vld [vmem:[#allocation5 + $0x258] sm:$0xff] }
 0x15e   :  { %2027 = vmatpush.msrb.mxu0 %v1159_v16  ;;  %2047 = vmatpush.msrb.mxu1 %v1255_v17  ;;  %v698_v15 = vld [vmem:[#allocation5 + $0x558] sm:$0xff]  ;;  %v1345_v16 = vld [vmem:[#allocation5 + $0x1990] sm:$0xff] }
 0x15f   :  { %1991 = vmatpush.msra.mxu2 %v943_v18  ;;  %2011 = vmatpush.msra.mxu3 %v1039_v19  ;;  %v1441_v17 = vld [vmem:[#allocation5 + $0x1c90] sm:$0xff]  ;;  %v596_v18 = vld [vmem:[#allocation5 + $0x228] sm:$0xff] }
 0x160   :  { %2028 = vmatpush.msrb.mxu0 %v1153_v20  ;;  %2048 = vmatpush.msrb.mxu1 %v1249_v21  ;;  %v692_v19 = vld [vmem:[#allocation5 + $0x528] sm:$0xff]  ;;  %v1339_v20 = vld [vmem:[#allocation5 + $0x1960] sm:$0xff] }
 0x161   :  { %1992 = vmatpush.msra.mxu2 %v937_v46  ;;  %2012 = vmatpush.msra.mxu3 %v1033_v23  ;;  %v1435_v21 = vld [vmem:[#allocation5 + $0x1c60] sm:$0xff]  ;;  %v590_v46 = vld [vmem:[#allocation5 + $0x1f8] sm:$0xff] }
 0x162   :  { %2029 = vmatpush.msrb.mxu0 %v1147_v24  ;;  %2049 = vmatpush.msrb.mxu1 %v1243_v25  ;;  %v686_v23 = vld [vmem:[#allocation5 + $0x4f8] sm:$0xff]  ;;  %v1333_v24 = vld [vmem:[#allocation5 + $0x1930] sm:$0xff] }
 0x163   :  { %1993 = vmatpush.msra.mxu2 %v931_v26  ;;  %2013 = vmatpush.msra.mxu3 %v1027_v28  ;;  %v1429_v25 = vld [vmem:[#allocation5 + $0x1c30] sm:$0xff]  ;;  %v584_v26 = vld [vmem:[#allocation5 + $0x1c8] sm:$0xff] }
 0x164   :  { %2030 = vmatpush.msrb.mxu0 %v1141_v29  ;;  %2050 = vmatpush.msrb.mxu1 %v1237_v30  ;;  %v680_v28 = vld [vmem:[#allocation5 + $0x4c8] sm:$0xff]  ;;  %v1327_v29 = vld [vmem:[#allocation5 + $0x1900] sm:$0xff] }
 0x165   :  { %1994 = vmatpush.msra.mxu2 %v925_v31  ;;  %2014 = vmatpush.msra.mxu3 %v1021_v33  ;;  %v1423_v30 = vld [vmem:[#allocation5 + $0x1c00] sm:$0xff]  ;;  %v578_v31 = vld [vmem:[#allocation5 + $0x198] sm:$0xff] }
 0x166   :  { %2031 = vmatpush.msrb.mxu0 %v1135_v34  ;;  %2051 = vmatpush.msrb.mxu1 %v1231_v35  ;;  %v674_v33 = vld [vmem:[#allocation5 + $0x498] sm:$0xff]  ;;  %v1321_v34 = vld [vmem:[#allocation5 + $0x18d0] sm:$0xff] }
 0x167   :  { %1995 = vmatpush.msra.mxu2 %v919_v36  ;;  %2015 = vmatpush.msra.mxu3 %v1015_v38  ;;  %v1417_v35 = vld [vmem:[#allocation5 + $0x1bd0] sm:$0xff]  ;;  %v572_v36 = vld [vmem:[#allocation5 + $0x168] sm:$0xff] }
 0x168   :  { %2032 = vmatpush.msrb.mxu0 %v1129_v39  ;;  %2052 = vmatpush.msrb.mxu1 %v1225_v40  ;;  %v668_v38 = vld [vmem:[#allocation5 + $0x468] sm:$0xff]  ;;  %v1315_v39 = vld [vmem:[#allocation5 + $0x18a0] sm:$0xff] }
 0x169   :  { %1996 = vmatpush.msra.mxu2 %v913_v41  ;;  %2016 = vmatpush.msra.mxu3 %v1009_v42  ;;  %v1411_v40 = vld [vmem:[#allocation5 + $0x1ba0] sm:$0xff]  ;;  %v566_v41 = vld [vmem:[#allocation5 + $0x138] sm:$0xff] }
 0x16a   :  { %2033 = vmatpush.msrb.mxu0 %v1123_v43  ;;  %2053 = vmatpush.msrb.mxu1 %v1219_v44  ;;  %v662_v42 = vld [vmem:[#allocation5 + $0x438] sm:$0xff]  ;;  %v1309_v43 = vld [vmem:[#allocation5 + $0x1870] sm:$0xff] }
 0x16b   :  { %1997 = vmatmul.f32.vlgmr.msra.gmra.mxu2 %v3470_v32  ;;  %2017 = vmatmul.f32.vlgmr.msra.gmra.mxu3 %v3472_v37  ;;  %v1405_v44 = vld [vmem:[#allocation5 + $0x1b70] sm:$0xff] }
 0x16c   :  { %2061 = vmatpush.msrb.mxu2 %v1387_v45  ;;  %2081 = vmatpush.msrb.mxu3 %v1483_v47  ;;  %v560_v45 = vld [vmem:[#allocation5 + $0x108] sm:$0xff] }
 0x16d   :  { %2034 = vmatpush.msrb.mxu0 %v1117_v48  ;;  %2054 = vmatpush.msrb.mxu1 %v1213_v49  ;;  %v656_v47 = vld [vmem:[#allocation5 + $0x408] sm:$0xff]  ;;  %v1303_v48 = vld [vmem:[#allocation5 + $0x1840] sm:$0xff] }
 0x16e   :  { %2062 = vmatpush.msrb.mxu2 %v1381_v50  ;;  %2082 = vmatpush.msrb.mxu3 %v1477_v54  ;;  %v1399_v49 = vld [vmem:[#allocation5 + $0x1b40] sm:$0xff]  ;;  %v554_v50 = vld [vmem:[#allocation5 + $0xd8] sm:$0xff] }
 0x16f   :  { %2035 = vmatpush.msrb.mxu0 %v1111_v55  ;;  %2055 = vmatpush.msrb.mxu1 %v1207_v56  ;;  %v650_v54 = vld [vmem:[#allocation5 + $0x3d8] sm:$0xff]  ;;  %v1297_v55 = vld [vmem:[#allocation5 + $0x1810] sm:$0xff] }
 0x170   :  { %2063 = vmatpush.msrb.mxu2 %v1375_v58  ;;  %2083 = vmatpush.msrb.mxu3 %v1471_v59  ;;  %v1393_v56 = vld [vmem:[#allocation5 + $0x1b10] sm:$0xff]  ;;  %v548_v58 = vld [vmem:[#allocation5 + $0xa8] sm:$0xff] }
 0x171   :  { %2036 = vmatpush.msrb.mxu0 %v1105_v60  ;;  %2056 = vmatpush.msrb.mxu1 %v1201_v61  ;;  %v644_v59 = vld [vmem:[#allocation5 + $0x3a8] sm:$0xff] }
 0x172   :  { %2037 = vmatmul.f32.vlgmr.msrb.gmra.mxu0 %v3476_v51  ;;  %2057 = vmatmul.f32.vlgmr.msrb.gmra.mxu1 %v3478_v57  ;;  %v812_v60 = vld [vmem:[#allocation5 + $0x8e8] sm:$0xff] }
 0x173   :  { %2064 = vmatpush.msrb.mxu2 %v1369_v0  ;;  %2084 = vmatpush.msrb.mxu3 %v1465_v1  ;;  %v908_v61 = vld [vmem:[#allocation5 + $0xbe8] sm:$0xff]  ;;  %v542_v0 = vld [vmem:[#allocation5 + $0x78] sm:$0xff] }
 0x174   :  { %2101 = vmatpush.msra.mxu0 %v620_v2  ;;  %2121 = vmatpush.msra.mxu1 %v716_v3  ;;  %v638_v1 = vld [vmem:[#allocation5 + $0x378] sm:$0xff] }
 0x175   :  { %2065 = vmatpush.msrb.mxu2 %v1363_v4  ;;  %2085 = vmatpush.msrb.mxu3 %v1459_v5  ;;  %v806_v2 = vld [vmem:[#allocation5 + $0x8b8] sm:$0xff]  ;;  %v536_v4 = vld [vmem:[#allocation5 + $0x48] sm:$0xff] }
 0x176   :  { %2102 = vmatpush.msra.mxu0 %v614_v6  ;;  %2122 = vmatpush.msra.mxu1 %v710_v7  ;;  %v902_v3 = vld [vmem:[#allocation5 + $0xbb8] sm:$0xff]  ;;  %v632_v5 = vld [vmem:[#allocation5 + $0x348] sm:$0xff] }
 0x177   :  { %2066 = vmatpush.msrb.mxu2 %v1357_v8  ;;  %2086 = vmatpush.msrb.mxu3 %v1453_v9  ;;  %v800_v6 = vld [vmem:[#allocation5 + $0x888] sm:$0xff]  ;;  %v530_v8 = vld [vmem:[#allocation5 + $0x18] sm:$0xff] }
 0x178   :  { %2103 = vmatpush.msra.mxu0 %v608_v10  ;;  %2123 = vmatpush.msra.mxu1 %v704_v11  ;;  %v896_v7 = vld [vmem:[#allocation5 + $0xb88] sm:$0xff]  ;;  %v626_v9 = vld [vmem:[#allocation5 + $0x318] sm:$0xff] }
 0x179   :  { %2067 = vmatpush.msrb.mxu2 %v1351_v12  ;;  %2087 = vmatpush.msrb.mxu3 %v1447_v13  ;;  %v794_v10 = vld [vmem:[#allocation5 + $0x858] sm:$0xff]  ;;  %v1004_v12 = vld [vmem:[#allocation5 + $0xee8] sm:$0xff] }
 0x17a   :  { %2104 = vmatpush.msra.mxu0 %v602_v14  ;;  %2124 = vmatpush.msra.mxu1 %v698_v15  ;;  %v890_v11 = vld [vmem:[#allocation5 + $0xb58] sm:$0xff]  ;;  %v1100_v13 = vld [vmem:[#allocation5 + $0x11e8] sm:$0xff] }
 0x17b   :  { %2068 = vmatpush.msrb.mxu2 %v1345_v16  ;;  %2088 = vmatpush.msrb.mxu3 %v1441_v17  ;;  %v788_v14 = vld [vmem:[#allocation5 + $0x828] sm:$0xff]  ;;  %v998_v16 = vld [vmem:[#allocation5 + $0xeb8] sm:$0xff] }
 0x17c   :  { %2105 = vmatpush.msra.mxu0 %v596_v18  ;;  %2125 = vmatpush.msra.mxu1 %v692_v19  ;;  %v884_v15 = vld [vmem:[#allocation5 + $0xb28] sm:$0xff]  ;;  %v1094_v17 = vld [vmem:[#allocation5 + $0x11b8] sm:$0xff] }
 0x17d   :  { %2069 = vmatpush.msrb.mxu2 %v1339_v20  ;;  %2089 = vmatpush.msrb.mxu3 %v1435_v21  ;;  %v782_v18 = vld [vmem:[#allocation5 + $0x7f8] sm:$0xff]  ;;  %v992_v20 = vld [vmem:[#allocation5 + $0xe88] sm:$0xff] }
 0x17e   :  { %2106 = vmatpush.msra.mxu0 %v590_v46  ;;  %2126 = vmatpush.msra.mxu1 %v686_v23  ;;  %v878_v19 = vld [vmem:[#allocation5 + $0xaf8] sm:$0xff]  ;;  %v1088_v21 = vld [vmem:[#allocation5 + $0x1188] sm:$0xff] }
 0x17f   :  { %2070 = vmatpush.msrb.mxu2 %v1333_v24  ;;  %2090 = vmatpush.msrb.mxu3 %v1429_v25  ;;  %v776_v46 = vld [vmem:[#allocation5 + $0x7c8] sm:$0xff]  ;;  %v986_v24 = vld [vmem:[#allocation5 + $0xe58] sm:$0xff] }
 0x180   :  { %2107 = vmatpush.msra.mxu0 %v584_v26  ;;  %2127 = vmatpush.msra.mxu1 %v680_v28  ;;  %v872_v23 = vld [vmem:[#allocation5 + $0xac8] sm:$0xff]  ;;  %v1082_v25 = vld [vmem:[#allocation5 + $0x1158] sm:$0xff] }
 0x181   :  { %2071 = vmatpush.msrb.mxu2 %v1327_v29  ;;  %2091 = vmatpush.msrb.mxu3 %v1423_v30  ;;  %v770_v26 = vld [vmem:[#allocation5 + $0x798] sm:$0xff]  ;;  %v980_v29 = vld [vmem:[#allocation5 + $0xe28] sm:$0xff] }
 0x182   :  { %2108 = vmatpush.msra.mxu0 %v578_v31  ;;  %2128 = vmatpush.msra.mxu1 %v674_v33  ;;  %v866_v28 = vld [vmem:[#allocation5 + $0xa98] sm:$0xff]  ;;  %v1076_v30 = vld [vmem:[#allocation5 + $0x1128] sm:$0xff] }
 0x183   :  { %2072 = vmatpush.msrb.mxu2 %v1321_v34  ;;  %2092 = vmatpush.msrb.mxu3 %v1417_v35  ;;  %v764_v31 = vld [vmem:[#allocation5 + $0x768] sm:$0xff]  ;;  %v974_v34 = vld [vmem:[#allocation5 + $0xdf8] sm:$0xff] }
 0x184   :  { %2109 = vmatpush.msra.mxu0 %v572_v36  ;;  %2129 = vmatpush.msra.mxu1 %v668_v38  ;;  %v860_v33 = vld [vmem:[#allocation5 + $0xa68] sm:$0xff]  ;;  %v1070_v35 = vld [vmem:[#allocation5 + $0x10f8] sm:$0xff] }
 0x185   :  { %2073 = vmatpush.msrb.mxu2 %v1315_v39  ;;  %2093 = vmatpush.msrb.mxu3 %v1411_v40  ;;  %v758_v36 = vld [vmem:[#allocation5 + $0x738] sm:$0xff]  ;;  %v968_v39 = vld [vmem:[#allocation5 + $0xdc8] sm:$0xff] }
 0x186   :  { %2110 = vmatpush.msra.mxu0 %v566_v41  ;;  %2130 = vmatpush.msra.mxu1 %v662_v42  ;;  %v854_v38 = vld [vmem:[#allocation5 + $0xa38] sm:$0xff]  ;;  %v1064_v40 = vld [vmem:[#allocation5 + $0x10c8] sm:$0xff] }
 0x187   :  { %2074 = vmatpush.msrb.mxu2 %v1309_v43  ;;  %2094 = vmatpush.msrb.mxu3 %v1405_v44  ;;  %v752_v41 = vld [vmem:[#allocation5 + $0x708] sm:$0xff]  ;;  %v962_v43 = vld [vmem:[#allocation5 + $0xd98] sm:$0xff] }
 0x188   :  { %2111 = vmatpush.msra.mxu0 %v560_v45  ;;  %2131 = vmatpush.msra.mxu1 %v656_v47  ;;  %v848_v42 = vld [vmem:[#allocation5 + $0xa08] sm:$0xff]  ;;  %v1058_v44 = vld [vmem:[#allocation5 + $0x1098] sm:$0xff] }
 0x189   :  { %2075 = vmatpush.msrb.mxu2 %v1303_v48  ;;  %2095 = vmatpush.msrb.mxu3 %v1399_v49  ;;  %v746_v45 = vld [vmem:[#allocation5 + $0x6d8] sm:$0xff]  ;;  %v956_v48 = vld [vmem:[#allocation5 + $0xd68] sm:$0xff] }
 0x18a   :  { %2112 = vmatpush.msra.mxu0 %v554_v50  ;;  %2132 = vmatpush.msra.mxu1 %v650_v54  ;;  %v842_v47 = vld [vmem:[#allocation5 + $0x9d8] sm:$0xff]  ;;  %v1052_v49 = vld [vmem:[#allocation5 + $0x1068] sm:$0xff] }
 0x18b   :  { %2076 = vmatpush.msrb.mxu2 %v1297_v55  ;;  %2096 = vmatpush.msrb.mxu3 %v1393_v56  ;;  %v740_v50 = vld [vmem:[#allocation5 + $0x6a8] sm:$0xff]  ;;  %v950_v55 = vld [vmem:[#allocation5 + $0xd38] sm:$0xff] }
 0x18c   :  { %2113 = vmatpush.msra.mxu0 %v548_v58  ;;  %2133 = vmatpush.msra.mxu1 %v644_v59  ;;  %v836_v54 = vld [vmem:[#allocation5 + $0x9a8] sm:$0xff]  ;;  %v1046_v56 = vld [vmem:[#allocation5 + $0x1038] sm:$0xff] }
 0x18d   :  { %2077 = vmatmul.f32.vlgmr.msrb.gmra.mxu2 %v3484_v22  ;;  %2097 = vmatmul.f32.vlgmr.msrb.gmra.mxu3 %v3486_v27  ;;  %v734_v58 = vld [vmem:[#allocation5 + $0x678] sm:$0xff] }
 0x18e   :  { %2141 = vmatpush.msra.mxu2 %v812_v60  ;;  %2161 = vmatpush.msra.mxu3 %v908_v61  ;;  %v830_v59 = vld [vmem:[#allocation5 + $0x978] sm:$0xff]  ;;  %v944_v60 = vld [vmem:[#allocation5 + $0xd08] sm:$0xff] }
 0x18f   :  { %2114 = vmatpush.msra.mxu0 %v542_v0  ;;  %2134 = vmatpush.msra.mxu1 %v638_v1  ;;  %v1040_v61 = vld [vmem:[#allocation5 + $0x1008] sm:$0xff] }
 0x190   :  { %2142 = vmatpush.msra.mxu2 %v806_v2  ;;  %2162 = vmatpush.msra.mxu3 %v902_v3  ;;  %v728_v0 = vld [vmem:[#allocation5 + $0x648] sm:$0xff]  ;;  %v938_v2 = vld [vmem:[#allocation5 + $0xcd8] sm:$0xff] }
 0x191   :  { %2115 = vmatpush.msra.mxu0 %v536_v4  ;;  %2135 = vmatpush.msra.mxu1 %v632_v5  ;;  %v824_v1 = vld [vmem:[#allocation5 + $0x948] sm:$0xff]  ;;  %v1034_v3 = vld [vmem:[#allocation5 + $0xfd8] sm:$0xff] }
 0x192   :  { %2143 = vmatpush.msra.mxu2 %v800_v6  ;;  %2163 = vmatpush.msra.mxu3 %v896_v7  ;;  %v722_v4 = vld [vmem:[#allocation5 + $0x618] sm:$0xff]  ;;  %v932_v6 = vld [vmem:[#allocation5 + $0xca8] sm:$0xff] }
 0x193   :  { %2116 = vmatpush.msra.mxu0 %v530_v8  ;;  %2136 = vmatpush.msra.mxu1 %v626_v9  ;;  %v818_v5 = vld [vmem:[#allocation5 + $0x918] sm:$0xff]  ;;  %v1028_v7 = vld [vmem:[#allocation5 + $0xfa8] sm:$0xff] }
 0x194   :  { %2117 = vmatmul.f32.vlgmr.msra.gmra.mxu0 %v3458_v52  ;;  %2137 = vmatmul.f32.vlgmr.msra.gmra.mxu1 %v3460_v53  ;;  %v1196_v8 = vld [vmem:[#allocation5 + $0x14e8] sm:$0xff] }
 0x195   :  { %2144 = vmatpush.msra.mxu2 %v794_v10  ;;  %2164 = vmatpush.msra.mxu3 %v890_v11  ;;  %v1292_v9 = vld [vmem:[#allocation5 + $0x17e8] sm:$0xff]  ;;  %v926_v10 = vld [vmem:[#allocation5 + $0xc78] sm:$0xff] }
 0x196   :  { %2181 = vmatpush.msrb.mxu0 %v1004_v12  ;;  %2201 = vmatpush.msrb.mxu1 %v1100_v13  ;;  %v1022_v11 = vld [vmem:[#allocation5 + $0xf78] sm:$0xff] }
 0x197   :  { %2145 = vmatpush.msra.mxu2 %v788_v14  ;;  %2165 = vmatpush.msra.mxu3 %v884_v15  ;;  %v1190_v12 = vld [vmem:[#allocation5 + $0x14b8] sm:$0xff]  ;;  %v920_v14 = vld [vmem:[#allocation5 + $0xc48] sm:$0xff] }
 0x198   :  { %2182 = vmatpush.msrb.mxu0 %v998_v16  ;;  %2202 = vmatpush.msrb.mxu1 %v1094_v17  ;;  %v1286_v13 = vld [vmem:[#allocation5 + $0x17b8] sm:$0xff]  ;;  %v1016_v15 = vld [vmem:[#allocation5 + $0xf48] sm:$0xff] }
 0x199   :  { %2146 = vmatpush.msra.mxu2 %v782_v18  ;;  %2166 = vmatpush.msra.mxu3 %v878_v19  ;;  %v1184_v16 = vld [vmem:[#allocation5 + $0x1488] sm:$0xff]  ;;  %v914_v18 = vld [vmem:[#allocation5 + $0xc18] sm:$0xff] }
 0x19a   :  { %2183 = vmatpush.msrb.mxu0 %v992_v20  ;;  %2203 = vmatpush.msrb.mxu1 %v1088_v21  ;;  %v1280_v17 = vld [vmem:[#allocation5 + $0x1788] sm:$0xff]  ;;  %v1010_v19 = vld [vmem:[#allocation5 + $0xf18] sm:$0xff] }
 0x19b   :  { %2147 = vmatpush.msra.mxu2 %v776_v46  ;;  %2167 = vmatpush.msra.mxu3 %v872_v23  ;;  %v1178_v20 = vld [vmem:[#allocation5 + $0x1458] sm:$0xff]  ;;  %v1388_v46 = vld [vmem:[#allocation5 + $0x1ae8] sm:$0xff] }
 0x19c   :  { %2184 = vmatpush.msrb.mxu0 %v986_v24  ;;  %2204 = vmatpush.msrb.mxu1 %v1082_v25  ;;  %v1274_v21 = vld [vmem:[#allocation5 + $0x1758] sm:$0xff]  ;;  %v1484_v23 = vld [vmem:[#allocation5 + $0x1de8] sm:$0xff] }
 0x19d   :  { %2148 = vmatpush.msra.mxu2 %v770_v26  ;;  %2168 = vmatpush.msra.mxu3 %v866_v28  ;;  %v1172_v24 = vld [vmem:[#allocation5 + $0x1428] sm:$0xff]  ;;  %v1382_v26 = vld [vmem:[#allocation5 + $0x1ab8] sm:$0xff] }
 0x19e   :  { %2185 = vmatpush.msrb.mxu0 %v980_v29  ;;  %2205 = vmatpush.msrb.mxu1 %v1076_v30  ;;  %v1268_v25 = vld [vmem:[#allocation5 + $0x1728] sm:$0xff]  ;;  %v1478_v28 = vld [vmem:[#allocation5 + $0x1db8] sm:$0xff] }
 0x19f   :  { %2149 = vmatpush.msra.mxu2 %v764_v31  ;;  %2169 = vmatpush.msra.mxu3 %v860_v33  ;;  %v1166_v29 = vld [vmem:[#allocation5 + $0x13f8] sm:$0xff]  ;;  %v1376_v31 = vld [vmem:[#allocation5 + $0x1a88] sm:$0xff] }
 0x1a0   :  { %2186 = vmatpush.msrb.mxu0 %v974_v34  ;;  %2206 = vmatpush.msrb.mxu1 %v1070_v35  ;;  %v1262_v30 = vld [vmem:[#allocation5 + $0x16f8] sm:$0xff]  ;;  %v1472_v33 = vld [vmem:[#allocation5 + $0x1d88] sm:$0xff] }
 0x1a1   :  { %2150 = vmatpush.msra.mxu2 %v758_v36  ;;  %2170 = vmatpush.msra.mxu3 %v854_v38  ;;  %v1160_v34 = vld [vmem:[#allocation5 + $0x13c8] sm:$0xff]  ;;  %v1370_v36 = vld [vmem:[#allocation5 + $0x1a58] sm:$0xff] }
 0x1a2   :  { %2187 = vmatpush.msrb.mxu0 %v968_v39  ;;  %2207 = vmatpush.msrb.mxu1 %v1064_v40  ;;  %v1256_v35 = vld [vmem:[#allocation5 + $0x16c8] sm:$0xff]  ;;  %v1466_v38 = vld [vmem:[#allocation5 + $0x1d58] sm:$0xff] }
 0x1a3   :  { %2151 = vmatpush.msra.mxu2 %v752_v41  ;;  %2171 = vmatpush.msra.mxu3 %v848_v42  ;;  %v1154_v39 = vld [vmem:[#allocation5 + $0x1398] sm:$0xff]  ;;  %v1364_v41 = vld [vmem:[#allocation5 + $0x1a28] sm:$0xff] }
 0x1a4   :  { %2188 = vmatpush.msrb.mxu0 %v962_v43  ;;  %2208 = vmatpush.msrb.mxu1 %v1058_v44  ;;  %v1250_v40 = vld [vmem:[#allocation5 + $0x1698] sm:$0xff]  ;;  %v1460_v42 = vld [vmem:[#allocation5 + $0x1d28] sm:$0xff] }
 0x1a5   :  { %2152 = vmatpush.msra.mxu2 %v746_v45  ;;  %2172 = vmatpush.msra.mxu3 %v842_v47  ;;  %v1148_v43 = vld [vmem:[#allocation5 + $0x1368] sm:$0xff]  ;;  %v1358_v45 = vld [vmem:[#allocation5 + $0x19f8] sm:$0xff] }
 0x1a6   :  { %2189 = vmatpush.msrb.mxu0 %v956_v48  ;;  %2209 = vmatpush.msrb.mxu1 %v1052_v49  ;;  %v1244_v44 = vld [vmem:[#allocation5 + $0x1668] sm:$0xff]  ;;  %v1454_v47 = vld [vmem:[#allocation5 + $0x1cf8] sm:$0xff] }
 0x1a7   :  { %2153 = vmatpush.msra.mxu2 %v740_v50  ;;  %2173 = vmatpush.msra.mxu3 %v836_v54  ;;  %v1142_v48 = vld [vmem:[#allocation5 + $0x1338] sm:$0xff]  ;;  %v1352_v50 = vld [vmem:[#allocation5 + $0x19c8] sm:$0xff] }
 0x1a8   :  { %2190 = vmatpush.msrb.mxu0 %v950_v55  ;;  %2210 = vmatpush.msrb.mxu1 %v1046_v56  ;;  %v1238_v49 = vld [vmem:[#allocation5 + $0x1638] sm:$0xff]  ;;  %v1448_v54 = vld [vmem:[#allocation5 + $0x1cc8] sm:$0xff] }
 0x1a9   :  { %2154 = vmatpush.msra.mxu2 %v734_v58  ;;  %2174 = vmatpush.msra.mxu3 %v830_v59  ;;  %v1136_v55 = vld [vmem:[#allocation5 + $0x1308] sm:$0xff]  ;;  %v1346_v58 = vld [vmem:[#allocation5 + $0x1998] sm:$0xff] }
 0x1aa   :  { %2191 = vmatpush.msrb.mxu0 %v944_v60  ;;  %2211 = vmatpush.msrb.mxu1 %v1040_v61  ;;  %v1232_v56 = vld [vmem:[#allocation5 + $0x1608] sm:$0xff]  ;;  %v1442_v59 = vld [vmem:[#allocation5 + $0x1c98] sm:$0xff] }
 0x1ab   :  { %2155 = vmatpush.msra.mxu2 %v728_v0  ;;  %2175 = vmatpush.msra.mxu3 %v824_v1  ;;  %v1130_v60 = vld [vmem:[#allocation5 + $0x12d8] sm:$0xff]  ;;  %v1340_v0 = vld [vmem:[#allocation5 + $0x1968] sm:$0xff] }
 0x1ac   :  { %2192 = vmatpush.msrb.mxu0 %v938_v2  ;;  %2212 = vmatpush.msrb.mxu1 %v1034_v3  ;;  %v1226_v61 = vld [vmem:[#allocation5 + $0x15d8] sm:$0xff]  ;;  %v1436_v1 = vld [vmem:[#allocation5 + $0x1c68] sm:$0xff] }
 0x1ad   :  { %2156 = vmatpush.msra.mxu2 %v722_v4  ;;  %2176 = vmatpush.msra.mxu3 %v818_v5  ;;  %v1124_v2 = vld [vmem:[#allocation5 + $0x12a8] sm:$0xff]  ;;  %v1334_v4 = vld [vmem:[#allocation5 + $0x1938] sm:$0xff] }
 0x1ae   :  { %2193 = vmatpush.msrb.mxu0 %v932_v6  ;;  %2213 = vmatpush.msrb.mxu1 %v1028_v7  ;;  %v1220_v3 = vld [vmem:[#allocation5 + $0x15a8] sm:$0xff]  ;;  %v1430_v5 = vld [vmem:[#allocation5 + $0x1c38] sm:$0xff] }
 0x1af   :  { %2157 = vmatmul.f32.vlgmr.msra.gmra.mxu2 %v3464_v62  ;;  %2177 = vmatmul.f32.vlgmr.msra.gmra.mxu3 %v3466_v63  ;;  %v1118_v6 = vld [vmem:[#allocation5 + $0x1278] sm:$0xff] }
 0x1b0   :  { %2221 = vmatpush.msrb.mxu2 %v1196_v8  ;;  %2241 = vmatpush.msrb.mxu3 %v1292_v9  ;;  %v1214_v7 = vld [vmem:[#allocation5 + $0x1578] sm:$0xff]  ;;  %v1328_v8 = vld [vmem:[#allocation5 + $0x1908] sm:$0xff] }
 0x1b1   :  { %2194 = vmatpush.msrb.mxu0 %v926_v10  ;;  %2214 = vmatpush.msrb.mxu1 %v1022_v11  ;;  %v1424_v9 = vld [vmem:[#allocation5 + $0x1c08] sm:$0xff] }
 0x1b2   :  { %2222 = vmatpush.msrb.mxu2 %v1190_v12  ;;  %2242 = vmatpush.msrb.mxu3 %v1286_v13  ;;  %v1112_v10 = vld [vmem:[#allocation5 + $0x1248] sm:$0xff]  ;;  %v1322_v12 = vld [vmem:[#allocation5 + $0x18d8] sm:$0xff] }
 0x1b3   :  { %2195 = vmatpush.msrb.mxu0 %v920_v14  ;;  %2215 = vmatpush.msrb.mxu1 %v1016_v15  ;;  %v1208_v11 = vld [vmem:[#allocation5 + $0x1548] sm:$0xff]  ;;  %v1418_v13 = vld [vmem:[#allocation5 + $0x1bd8] sm:$0xff] }
 0x1b4   :  { %2223 = vmatpush.msrb.mxu2 %v1184_v16  ;;  %2243 = vmatpush.msrb.mxu3 %v1280_v17  ;;  %v1106_v14 = vld [vmem:[#allocation5 + $0x1218] sm:$0xff]  ;;  %v1316_v16 = vld [vmem:[#allocation5 + $0x18a8] sm:$0xff] }
 0x1b5   :  { %2196 = vmatpush.msrb.mxu0 %v914_v18  ;;  %2216 = vmatpush.msrb.mxu1 %v1010_v19  ;;  %v1202_v15 = vld [vmem:[#allocation5 + $0x1518] sm:$0xff]  ;;  %v1412_v17 = vld [vmem:[#allocation5 + $0x1ba8] sm:$0xff]  ;;  %v621_v18 = vld [vmem:[#allocation5 + $0x2f0] sm:$0xff] }
 0x1b6   :  { %2197 = vmatmul.f32.vlgmr.msrb.gmra.mxu0 %v3470_v32  ;;  %2217 = vmatmul.f32.vlgmr.msrb.gmra.mxu1 %v3472_v37  ;;  %v717_v19 = vld [vmem:[#allocation5 + $0x5f0] sm:$0xff] }
 0x1b7   :  { %2224 = vmatpush.msrb.mxu2 %v1178_v20  ;;  %2244 = vmatpush.msrb.mxu3 %v1274_v21  ;;  %v1310_v20 = vld [vmem:[#allocation5 + $0x1878] sm:$0xff] }
 0x1b8   :  { %2261 = vmatpush.msra.mxu0 %v1388_v46  ;;  %2281 = vmatpush.msra.mxu1 %v1484_v23  ;;  %v1406_v21 = vld [vmem:[#allocation5 + $0x1b78] sm:$0xff]  ;;  %v615_v46 = vld [vmem:[#allocation5 + $0x2c0] sm:$0xff] }
 0x1b9   :  { %2225 = vmatpush.msrb.mxu2 %v1172_v24  ;;  %2245 = vmatpush.msrb.mxu3 %v1268_v25  ;;  %v711_v23 = vld [vmem:[#allocation5 + $0x5c0] sm:$0xff]  ;;  %v1304_v24 = vld [vmem:[#allocation5 + $0x1848] sm:$0xff] }
 0x1ba   :  { %2262 = vmatpush.msra.mxu0 %v1382_v26  ;;  %2282 = vmatpush.msra.mxu1 %v1478_v28  ;;  %v1400_v25 = vld [vmem:[#allocation5 + $0x1b48] sm:$0xff]  ;;  %v609_v26 = vld [vmem:[#allocation5 + $0x290] sm:$0xff] }
 0x1bb   :  { %2226 = vmatpush.msrb.mxu2 %v1166_v29  ;;  %2246 = vmatpush.msrb.mxu3 %v1262_v30  ;;  %v705_v28 = vld [vmem:[#allocation5 + $0x590] sm:$0xff]  ;;  %v1298_v29 = vld [vmem:[#allocation5 + $0x1818] sm:$0xff] }
 0x1bc   :  { %2263 = vmatpush.msra.mxu0 %v1376_v31  ;;  %2283 = vmatpush.msra.mxu1 %v1472_v33  ;;  %v1394_v30 = vld [vmem:[#allocation5 + $0x1b18] sm:$0xff]  ;;  %v603_v31 = vld [vmem:[#allocation5 + $0x260] sm:$0xff] }
 0x1bd   :  { %2227 = vmatpush.msrb.mxu2 %v1160_v34  ;;  %2247 = vmatpush.msrb.mxu3 %v1256_v35  ;;  %v699_v33 = vld [vmem:[#allocation5 + $0x560] sm:$0xff]  ;;  %v813_v34 = vld [vmem:[#allocation5 + $0x8f0] sm:$0xff] }
 0x1be   :  { %2264 = vmatpush.msra.mxu0 %v1370_v36  ;;  %2284 = vmatpush.msra.mxu1 %v1466_v38  ;;  %v909_v35 = vld [vmem:[#allocation5 + $0xbf0] sm:$0xff] }
 0x1bf   :  { %2228 = vmatpush.msrb.mxu2 %v1154_v39  ;;  %2248 = vmatpush.msrb.mxu3 %v1250_v40  ;;  %v597_v36 = vld [vmem:[#allocation5 + $0x230] sm:$0xff]  ;;  %v807_v39 = vld [vmem:[#allocation5 + $0x8c0] sm:$0xff] }
 0x1c0   :  { %2265 = vmatpush.msra.mxu0 %v1364_v41  ;;  %2285 = vmatpush.msra.mxu1 %v1460_v42  ;;  %v693_v38 = vld [vmem:[#allocation5 + $0x530] sm:$0xff]  ;;  %v903_v40 = vld [vmem:[#allocation5 + $0xbc0] sm:$0xff] }
 0x1c1   :  { %2229 = vmatpush.msrb.mxu2 %v1148_v43  ;;  %2249 = vmatpush.msrb.mxu3 %v1244_v44  ;;  %v591_v41 = vld [vmem:[#allocation5 + $0x200] sm:$0xff]  ;;  %v801_v43 = vld [vmem:[#allocation5 + $0x890] sm:$0xff] }
 0x1c2   :  { %2266 = vmatpush.msra.mxu0 %v1358_v45  ;;  %2286 = vmatpush.msra.mxu1 %v1454_v47  ;;  %v687_v42 = vld [vmem:[#allocation5 + $0x500] sm:$0xff]  ;;  %v897_v44 = vld [vmem:[#allocation5 + $0xb90] sm:$0xff] }
 0x1c3   :  { %2230 = vmatpush.msrb.mxu2 %v1142_v48  ;;  %2250 = vmatpush.msrb.mxu3 %v1238_v49  ;;  %v585_v45 = vld [vmem:[#allocation5 + $0x1d0] sm:$0xff]  ;;  %v795_v48 = vld [vmem:[#allocation5 + $0x860] sm:$0xff] }
 0x1c4   :  { %2267 = vmatpush.msra.mxu0 %v1352_v50  ;;  %2287 = vmatpush.msra.mxu1 %v1448_v54  ;;  %v681_v47 = vld [vmem:[#allocation5 + $0x4d0] sm:$0xff]  ;;  %v891_v49 = vld [vmem:[#allocation5 + $0xb60] sm:$0xff] }
 0x1c5   :  { %2231 = vmatpush.msrb.mxu2 %v1136_v55  ;;  %2251 = vmatpush.msrb.mxu3 %v1232_v56  ;;  %v579_v50 = vld [vmem:[#allocation5 + $0x1a0] sm:$0xff]  ;;  %v789_v55 = vld [vmem:[#allocation5 + $0x830] sm:$0xff] }
 0x1c6   :  { %2268 = vmatpush.msra.mxu0 %v1346_v58  ;;  %2288 = vmatpush.msra.mxu1 %v1442_v59  ;;  %v675_v54 = vld [vmem:[#allocation5 + $0x4a0] sm:$0xff]  ;;  %v885_v56 = vld [vmem:[#allocation5 + $0xb30] sm:$0xff] }
 0x1c7   :  { %2232 = vmatpush.msrb.mxu2 %v1130_v60  ;;  %2252 = vmatpush.msrb.mxu3 %v1226_v61  ;;  %v573_v58 = vld [vmem:[#allocation5 + $0x170] sm:$0xff]  ;;  %v783_v60 = vld [vmem:[#allocation5 + $0x800] sm:$0xff] }
 0x1c8   :  { %2269 = vmatpush.msra.mxu0 %v1340_v0  ;;  %2289 = vmatpush.msra.mxu1 %v1436_v1  ;;  %v669_v59 = vld [vmem:[#allocation5 + $0x470] sm:$0xff]  ;;  %v879_v61 = vld [vmem:[#allocation5 + $0xb00] sm:$0xff] }
 0x1c9   :  { %2233 = vmatpush.msrb.mxu2 %v1124_v2  ;;  %2253 = vmatpush.msrb.mxu3 %v1220_v3  ;;  %v567_v0 = vld [vmem:[#allocation5 + $0x140] sm:$0xff]  ;;  %v777_v2 = vld [vmem:[#allocation5 + $0x7d0] sm:$0xff] }
 0x1ca   :  { %2270 = vmatpush.msra.mxu0 %v1334_v4  ;;  %2290 = vmatpush.msra.mxu1 %v1430_v5  ;;  %v663_v1 = vld [vmem:[#allocation5 + $0x440] sm:$0xff]  ;;  %v873_v3 = vld [vmem:[#allocation5 + $0xad0] sm:$0xff] }
 0x1cb   :  { %2234 = vmatpush.msrb.mxu2 %v1118_v6  ;;  %2254 = vmatpush.msrb.mxu3 %v1214_v7  ;;  %v561_v4 = vld [vmem:[#allocation5 + $0x110] sm:$0xff]  ;;  %v771_v6 = vld [vmem:[#allocation5 + $0x7a0] sm:$0xff] }
 0x1cc   :  { %2271 = vmatpush.msra.mxu0 %v1328_v8  ;;  %2291 = vmatpush.msra.mxu1 %v1424_v9  ;;  %v657_v5 = vld [vmem:[#allocation5 + $0x410] sm:$0xff]  ;;  %v867_v7 = vld [vmem:[#allocation5 + $0xaa0] sm:$0xff] }
 0x1cd   :  { %2235 = vmatpush.msrb.mxu2 %v1112_v10  ;;  %2255 = vmatpush.msrb.mxu3 %v1208_v11  ;;  %v555_v8 = vld [vmem:[#allocation5 + $0xe0] sm:$0xff]  ;;  %v765_v10 = vld [vmem:[#allocation5 + $0x770] sm:$0xff] }
 0x1ce   :  { %2272 = vmatpush.msra.mxu0 %v1322_v12  ;;  %2292 = vmatpush.msra.mxu1 %v1418_v13  ;;  %v651_v9 = vld [vmem:[#allocation5 + $0x3e0] sm:$0xff]  ;;  %v861_v11 = vld [vmem:[#allocation5 + $0xa70] sm:$0xff] }
 0x1cf   :  { %2236 = vmatpush.msrb.mxu2 %v1106_v14  ;;  %2256 = vmatpush.msrb.mxu3 %v1202_v15  ;;  %v549_v12 = vld [vmem:[#allocation5 + $0xb0] sm:$0xff]  ;;  %v759_v14 = vld [vmem:[#allocation5 + $0x740] sm:$0xff] }
 0x1d0   :  { %2273 = vmatpush.msra.mxu0 %v1316_v16  ;;  %2293 = vmatpush.msra.mxu1 %v1412_v17  ;;  %v645_v13 = vld [vmem:[#allocation5 + $0x3b0] sm:$0xff]  ;;  %v855_v15 = vld [vmem:[#allocation5 + $0xa40] sm:$0xff] }
 0x1d1   :  { %2237 = vmatmul.f32.vlgmr.msrb.gmra.mxu2 %v3476_v51  ;;  %2257 = vmatmul.f32.vlgmr.msrb.gmra.mxu3 %v3478_v57  ;;  %v543_v16 = vld [vmem:[#allocation5 + $0x80] sm:$0xff] }
 0x1d2   :  { %2301 = vmatpush.msra.mxu2 %v621_v18  ;;  %2321 = vmatpush.msra.mxu3 %v717_v19  ;;  %v639_v17 = vld [vmem:[#allocation5 + $0x380] sm:$0xff]  ;;  %v753_v18 = vld [vmem:[#allocation5 + $0x710] sm:$0xff] }
 0x1d3   :  { %2274 = vmatpush.msra.mxu0 %v1310_v20  ;;  %2294 = vmatpush.msra.mxu1 %v1406_v21  ;;  %v849_v19 = vld [vmem:[#allocation5 + $0xa10] sm:$0xff] }
 0x1d4   :  { %2302 = vmatpush.msra.mxu2 %v615_v46  ;;  %2322 = vmatpush.msra.mxu3 %v711_v23  ;;  %v537_v20 = vld [vmem:[#allocation5 + $0x50] sm:$0xff]  ;;  %v747_v46 = vld [vmem:[#allocation5 + $0x6e0] sm:$0xff] }
 0x1d5   :  { %2275 = vmatpush.msra.mxu0 %v1304_v24  ;;  %2295 = vmatpush.msra.mxu1 %v1400_v25  ;;  %v633_v21 = vld [vmem:[#allocation5 + $0x350] sm:$0xff]  ;;  %v843_v23 = vld [vmem:[#allocation5 + $0x9e0] sm:$0xff] }
 0x1d6   :  { %2303 = vmatpush.msra.mxu2 %v609_v26  ;;  %2323 = vmatpush.msra.mxu3 %v705_v28  ;;  %v531_v24 = vld [vmem:[#allocation5 + $0x20] sm:$0xff]  ;;  %v741_v26 = vld [vmem:[#allocation5 + $0x6b0] sm:$0xff] }
 0x1d7   :  { %2276 = vmatpush.msra.mxu0 %v1298_v29  ;;  %2296 = vmatpush.msra.mxu1 %v1394_v30  ;;  %v627_v25 = vld [vmem:[#allocation5 + $0x320] sm:$0xff]  ;;  %v837_v28 = vld [vmem:[#allocation5 + $0x9b0] sm:$0xff] }
 0x1d8   :  { %2277 = vmatmul.f32.vlgmr.msra.gmra.mxu0 %v3484_v22  ;;  %2297 = vmatmul.f32.vlgmr.msra.gmra.mxu1 %v3486_v27  ;;  %v1005_v29 = vld [vmem:[#allocation5 + $0xef0] sm:$0xff] }
 0x1d9   :  { %2304 = vmatpush.msra.mxu2 %v603_v31  ;;  %2324 = vmatpush.msra.mxu3 %v699_v33  ;;  %v1101_v30 = vld [vmem:[#allocation5 + $0x11f0] sm:$0xff]  ;;  %v735_v31 = vld [vmem:[#allocation5 + $0x680] sm:$0xff] }
 0x1da   :  { %2341 = vmatpush.msrb.mxu0 %v813_v34  ;;  %2361 = vmatpush.msrb.mxu1 %v909_v35  ;;  %v831_v33 = vld [vmem:[#allocation5 + $0x980] sm:$0xff] }
 0x1db   :  { %2305 = vmatpush.msra.mxu2 %v597_v36  ;;  %2325 = vmatpush.msra.mxu3 %v693_v38  ;;  %v999_v34 = vld [vmem:[#allocation5 + $0xec0] sm:$0xff]  ;;  %v729_v36 = vld [vmem:[#allocation5 + $0x650] sm:$0xff] }
 0x1dc   :  { %2342 = vmatpush.msrb.mxu0 %v807_v39  ;;  %2362 = vmatpush.msrb.mxu1 %v903_v40  ;;  %v1095_v35 = vld [vmem:[#allocation5 + $0x11c0] sm:$0xff]  ;;  %v825_v38 = vld [vmem:[#allocation5 + $0x950] sm:$0xff] }
 0x1dd   :  { %2306 = vmatpush.msra.mxu2 %v591_v41  ;;  %2326 = vmatpush.msra.mxu3 %v687_v42  ;;  %v993_v39 = vld [vmem:[#allocation5 + $0xe90] sm:$0xff]  ;;  %v723_v41 = vld [vmem:[#allocation5 + $0x620] sm:$0xff] }
 0x1de   :  { %2343 = vmatpush.msrb.mxu0 %v801_v43  ;;  %2363 = vmatpush.msrb.mxu1 %v897_v44  ;;  %v1089_v40 = vld [vmem:[#allocation5 + $0x1190] sm:$0xff]  ;;  %v819_v42 = vld [vmem:[#allocation5 + $0x920] sm:$0xff] }
 0x1df   :  { %2307 = vmatpush.msra.mxu2 %v585_v45  ;;  %2327 = vmatpush.msra.mxu3 %v681_v47  ;;  %v987_v43 = vld [vmem:[#allocation5 + $0xe60] sm:$0xff]  ;;  %v1197_v45 = vld [vmem:[#allocation5 + $0x14f0] sm:$0xff] }
 0x1e0   :  { %2344 = vmatpush.msrb.mxu0 %v795_v48  ;;  %2364 = vmatpush.msrb.mxu1 %v891_v49  ;;  %v1083_v44 = vld [vmem:[#allocation5 + $0x1160] sm:$0xff]  ;;  %v1293_v47 = vld [vmem:[#allocation5 + $0x17f0] sm:$0xff] }
 0x1e1   :  { %2308 = vmatpush.msra.mxu2 %v579_v50  ;;  %2328 = vmatpush.msra.mxu3 %v675_v54  ;;  %v981_v48 = vld [vmem:[#allocation5 + $0xe30] sm:$0xff]  ;;  %v1191_v50 = vld [vmem:[#allocation5 + $0x14c0] sm:$0xff] }
 0x1e2   :  { %2345 = vmatpush.msrb.mxu0 %v789_v55  ;;  %2365 = vmatpush.msrb.mxu1 %v885_v56  ;;  %v1077_v49 = vld [vmem:[#allocation5 + $0x1130] sm:$0xff]  ;;  %v1287_v54 = vld [vmem:[#allocation5 + $0x17c0] sm:$0xff] }
 0x1e3   :  { %2309 = vmatpush.msra.mxu2 %v573_v58  ;;  %2329 = vmatpush.msra.mxu3 %v669_v59  ;;  %v975_v55 = vld [vmem:[#allocation5 + $0xe00] sm:$0xff]  ;;  %v1185_v58 = vld [vmem:[#allocation5 + $0x1490] sm:$0xff] }
 0x1e4   :  { %2346 = vmatpush.msrb.mxu0 %v783_v60  ;;  %2366 = vmatpush.msrb.mxu1 %v879_v61  ;;  %v1071_v56 = vld [vmem:[#allocation5 + $0x1100] sm:$0xff]  ;;  %v1281_v59 = vld [vmem:[#allocation5 + $0x1790] sm:$0xff] }
 0x1e5   :  { %2310 = vmatpush.msra.mxu2 %v567_v0  ;;  %2330 = vmatpush.msra.mxu3 %v663_v1  ;;  %v969_v60 = vld [vmem:[#allocation5 + $0xdd0] sm:$0xff]  ;;  %v1179_v0 = vld [vmem:[#allocation5 + $0x1460] sm:$0xff] }
 0x1e6   :  { %2347 = vmatpush.msrb.mxu0 %v777_v2  ;;  %2367 = vmatpush.msrb.mxu1 %v873_v3  ;;  %v1065_v61 = vld [vmem:[#allocation5 + $0x10d0] sm:$0xff]  ;;  %v1275_v1 = vld [vmem:[#allocation5 + $0x1760] sm:$0xff] }
 0x1e7   :  { %2311 = vmatpush.msra.mxu2 %v561_v4  ;;  %2331 = vmatpush.msra.mxu3 %v657_v5  ;;  %v963_v2 = vld [vmem:[#allocation5 + $0xda0] sm:$0xff]  ;;  %v1173_v4 = vld [vmem:[#allocation5 + $0x1430] sm:$0xff] }
 0x1e8   :  { %2348 = vmatpush.msrb.mxu0 %v771_v6  ;;  %2368 = vmatpush.msrb.mxu1 %v867_v7  ;;  %v1059_v3 = vld [vmem:[#allocation5 + $0x10a0] sm:$0xff]  ;;  %v1269_v5 = vld [vmem:[#allocation5 + $0x1730] sm:$0xff] }
 0x1e9   :  { %2312 = vmatpush.msra.mxu2 %v555_v8  ;;  %2332 = vmatpush.msra.mxu3 %v651_v9  ;;  %v957_v6 = vld [vmem:[#allocation5 + $0xd70] sm:$0xff]  ;;  %v1167_v8 = vld [vmem:[#allocation5 + $0x1400] sm:$0xff] }
 0x1ea   :  { %2349 = vmatpush.msrb.mxu0 %v765_v10  ;;  %2369 = vmatpush.msrb.mxu1 %v861_v11  ;;  %v1053_v7 = vld [vmem:[#allocation5 + $0x1070] sm:$0xff]  ;;  %v1263_v9 = vld [vmem:[#allocation5 + $0x1700] sm:$0xff] }
 0x1eb   :  { %2313 = vmatpush.msra.mxu2 %v549_v12  ;;  %2333 = vmatpush.msra.mxu3 %v645_v13  ;;  %v951_v10 = vld [vmem:[#allocation5 + $0xd40] sm:$0xff]  ;;  %v1161_v12 = vld [vmem:[#allocation5 + $0x13d0] sm:$0xff] }
 0x1ec   :  { %2350 = vmatpush.msrb.mxu0 %v759_v14  ;;  %2370 = vmatpush.msrb.mxu1 %v855_v15  ;;  %v1047_v11 = vld [vmem:[#allocation5 + $0x1040] sm:$0xff]  ;;  %v1257_v13 = vld [vmem:[#allocation5 + $0x16d0] sm:$0xff] }
 0x1ed   :  { %2314 = vmatpush.msra.mxu2 %v543_v16  ;;  %2334 = vmatpush.msra.mxu3 %v639_v17  ;;  %v945_v14 = vld [vmem:[#allocation5 + $0xd10] sm:$0xff]  ;;  %v1155_v16 = vld [vmem:[#allocation5 + $0x13a0] sm:$0xff] }
 0x1ee   :  { %2351 = vmatpush.msrb.mxu0 %v753_v18  ;;  %2371 = vmatpush.msrb.mxu1 %v849_v19  ;;  %v1041_v15 = vld [vmem:[#allocation5 + $0x1010] sm:$0xff]  ;;  %v1251_v17 = vld [vmem:[#allocation5 + $0x16a0] sm:$0xff] }
 0x1ef   :  { %2315 = vmatpush.msra.mxu2 %v537_v20  ;;  %2335 = vmatpush.msra.mxu3 %v633_v21  ;;  %v939_v18 = vld [vmem:[#allocation5 + $0xce0] sm:$0xff]  ;;  %v1149_v20 = vld [vmem:[#allocation5 + $0x1370] sm:$0xff] }
 0x1f0   :  { %2352 = vmatpush.msrb.mxu0 %v747_v46  ;;  %2372 = vmatpush.msrb.mxu1 %v843_v23  ;;  %v1035_v19 = vld [vmem:[#allocation5 + $0xfe0] sm:$0xff]  ;;  %v1245_v21 = vld [vmem:[#allocation5 + $0x1670] sm:$0xff] }
 0x1f1   :  { %2316 = vmatpush.msra.mxu2 %v531_v24  ;;  %2336 = vmatpush.msra.mxu3 %v627_v25  ;;  %v933_v46 = vld [vmem:[#allocation5 + $0xcb0] sm:$0xff]  ;;  %v1143_v24 = vld [vmem:[#allocation5 + $0x1340] sm:$0xff] }
 0x1f2   :  { %2353 = vmatpush.msrb.mxu0 %v741_v26  ;;  %2373 = vmatpush.msrb.mxu1 %v837_v28  ;;  %v1029_v23 = vld [vmem:[#allocation5 + $0xfb0] sm:$0xff]  ;;  %v1239_v25 = vld [vmem:[#allocation5 + $0x1640] sm:$0xff] }
 0x1f3   :  { %2317 = vmatmul.f32.vlgmr.msra.gmra.mxu2 %v3458_v52  ;;  %2337 = vmatmul.f32.vlgmr.msra.gmra.mxu3 %v3460_v53  ;;  %v927_v26 = vld [vmem:[#allocation5 + $0xc80] sm:$0xff] }
 0x1f4   :  { %2381 = vmatpush.msrb.mxu2 %v1005_v29  ;;  %2401 = vmatpush.msrb.mxu3 %v1101_v30  ;;  %v1023_v28 = vld [vmem:[#allocation5 + $0xf80] sm:$0xff]  ;;  %v1137_v29 = vld [vmem:[#allocation5 + $0x1310] sm:$0xff] }
 0x1f5   :  { %2354 = vmatpush.msrb.mxu0 %v735_v31  ;;  %2374 = vmatpush.msrb.mxu1 %v831_v33  ;;  %v1233_v30 = vld [vmem:[#allocation5 + $0x1610] sm:$0xff] }
 0x1f6   :  { %2382 = vmatpush.msrb.mxu2 %v999_v34  ;;  %2402 = vmatpush.msrb.mxu3 %v1095_v35  ;;  %v921_v31 = vld [vmem:[#allocation5 + $0xc50] sm:$0xff]  ;;  %v1131_v34 = vld [vmem:[#allocation5 + $0x12e0] sm:$0xff] }
 0x1f7   :  { %2355 = vmatpush.msrb.mxu0 %v729_v36  ;;  %2375 = vmatpush.msrb.mxu1 %v825_v38  ;;  %v1017_v33 = vld [vmem:[#allocation5 + $0xf50] sm:$0xff]  ;;  %v1227_v35 = vld [vmem:[#allocation5 + $0x15e0] sm:$0xff] }
 0x1f8   :  { %2383 = vmatpush.msrb.mxu2 %v993_v39  ;;  %2403 = vmatpush.msrb.mxu3 %v1089_v40  ;;  %v915_v36 = vld [vmem:[#allocation5 + $0xc20] sm:$0xff]  ;;  %v1125_v39 = vld [vmem:[#allocation5 + $0x12b0] sm:$0xff] }
 0x1f9   :  { %2356 = vmatpush.msrb.mxu0 %v723_v41  ;;  %2376 = vmatpush.msrb.mxu1 %v819_v42  ;;  %v1011_v38 = vld [vmem:[#allocation5 + $0xf20] sm:$0xff]  ;;  %v1221_v40 = vld [vmem:[#allocation5 + $0x15b0] sm:$0xff] }
 0x1fa   :  { %2357 = vmatmul.f32.vlgmr.msrb.gmra.mxu0 %v3464_v62  ;;  %2377 = vmatmul.f32.vlgmr.msrb.gmra.mxu1 %v3466_v63  ;;  %v1389_v41 = vld [vmem:[#allocation5 + $0x1af0] sm:$0xff] }
 0x1fb   :  { %2384 = vmatpush.msrb.mxu2 %v987_v43  ;;  %2404 = vmatpush.msrb.mxu3 %v1083_v44  ;;  %v1485_v42 = vld [vmem:[#allocation5 + $0x1df0] sm:$0xff]  ;;  %v1119_v43 = vld [vmem:[#allocation5 + $0x1280] sm:$0xff] }
 0x1fc   :  { %2421 = vmatpush.msra.mxu0 %v1197_v45  ;;  %2441 = vmatpush.msra.mxu1 %v1293_v47  ;;  %v1215_v44 = vld [vmem:[#allocation5 + $0x1580] sm:$0xff] }
 0x1fd   :  { %2385 = vmatpush.msrb.mxu2 %v981_v48  ;;  %2405 = vmatpush.msrb.mxu3 %v1077_v49  ;;  %v1383_v45 = vld [vmem:[#allocation5 + $0x1ac0] sm:$0xff]  ;;  %v1113_v48 = vld [vmem:[#allocation5 + $0x1250] sm:$0xff] }
 0x1fe   :  { %2422 = vmatpush.msra.mxu0 %v1191_v50  ;;  %2442 = vmatpush.msra.mxu1 %v1287_v54  ;;  %v1479_v47 = vld [vmem:[#allocation5 + $0x1dc0] sm:$0xff]  ;;  %v1209_v49 = vld [vmem:[#allocation5 + $0x1550] sm:$0xff] }
 0x1ff   :  { %2386 = vmatpush.msrb.mxu2 %v975_v55  ;;  %2406 = vmatpush.msrb.mxu3 %v1071_v56  ;;  %v1377_v50 = vld [vmem:[#allocation5 + $0x1a90] sm:$0xff]  ;;  %v1107_v55 = vld [vmem:[#allocation5 + $0x1220] sm:$0xff] }
 0x200   :  { %2423 = vmatpush.msra.mxu0 %v1185_v58  ;;  %2443 = vmatpush.msra.mxu1 %v1281_v59  ;;  %v1473_v54 = vld [vmem:[#allocation5 + $0x1d90] sm:$0xff]  ;;  %v1203_v56 = vld [vmem:[#allocation5 + $0x1520] sm:$0xff] }
 0x201   :  { %2387 = vmatpush.msrb.mxu2 %v969_v60  ;;  %2407 = vmatpush.msrb.mxu3 %v1065_v61  ;;  %v1371_v58 = vld [vmem:[#allocation5 + $0x1a60] sm:$0xff]  ;;  %v622_v60 = vld [vmem:[#allocation5 + $0x2f8] sm:$0xff] }
 0x202   :  { %2424 = vmatpush.msra.mxu0 %v1179_v0  ;;  %2444 = vmatpush.msra.mxu1 %v1275_v1  ;;  %v1467_v59 = vld [vmem:[#allocation5 + $0x1d60] sm:$0xff]  ;;  %v718_v61 = vld [vmem:[#allocation5 + $0x5f8] sm:$0xff]  ;;  %v1365_v0 = vld [vmem:[#allocation5 + $0x1a30] sm:$0xff] }
 0x203   :  { %2388 = vmatpush.msrb.mxu2 %v963_v2  ;;  %2408 = vmatpush.msrb.mxu3 %v1059_v3  ;;  %v1461_v1 = vld [vmem:[#allocation5 + $0x1d30] sm:$0xff]  ;;  %v616_v2 = vld [vmem:[#allocation5 + $0x2c8] sm:$0xff] }
 0x204   :  { %2425 = vmatpush.msra.mxu0 %v1173_v4  ;;  %2445 = vmatpush.msra.mxu1 %v1269_v5  ;;  %v712_v3 = vld [vmem:[#allocation5 + $0x5c8] sm:$0xff]  ;;  %v1359_v4 = vld [vmem:[#allocation5 + $0x1a00] sm:$0xff] }
 0x205   :  { %2389 = vmatpush.msrb.mxu2 %v957_v6  ;;  %2409 = vmatpush.msrb.mxu3 %v1053_v7  ;;  %v1455_v5 = vld [vmem:[#allocation5 + $0x1d00] sm:$0xff]  ;;  %v610_v6 = vld [vmem:[#allocation5 + $0x298] sm:$0xff] }
 0x206   :  { %2426 = vmatpush.msra.mxu0 %v1167_v8  ;;  %2446 = vmatpush.msra.mxu1 %v1263_v9  ;;  %v706_v7 = vld [vmem:[#allocation5 + $0x598] sm:$0xff]  ;;  %v1353_v8 = vld [vmem:[#allocation5 + $0x19d0] sm:$0xff] }
 0x207   :  { %2390 = vmatpush.msrb.mxu2 %v951_v10  ;;  %2410 = vmatpush.msrb.mxu3 %v1047_v11  ;;  %v1449_v9 = vld [vmem:[#allocation5 + $0x1cd0] sm:$0xff]  ;;  %v604_v10 = vld [vmem:[#allocation5 + $0x268] sm:$0xff] }
 0x208   :  { %2427 = vmatpush.msra.mxu0 %v1161_v12  ;;  %2447 = vmatpush.msra.mxu1 %v1257_v13  ;;  %v700_v11 = vld [vmem:[#allocation5 + $0x568] sm:$0xff]  ;;  %v1347_v12 = vld [vmem:[#allocation5 + $0x19a0] sm:$0xff] }
 0x209   :  { %2391 = vmatpush.msrb.mxu2 %v945_v14  ;;  %2411 = vmatpush.msrb.mxu3 %v1041_v15  ;;  %v1443_v13 = vld [vmem:[#allocation5 + $0x1ca0] sm:$0xff]  ;;  %v598_v14 = vld [vmem:[#allocation5 + $0x238] sm:$0xff] }
 0x20a   :  { %2428 = vmatpush.msra.mxu0 %v1155_v16  ;;  %2448 = vmatpush.msra.mxu1 %v1251_v17  ;;  %v694_v15 = vld [vmem:[#allocation5 + $0x538] sm:$0xff]  ;;  %v1341_v16 = vld [vmem:[#allocation5 + $0x1970] sm:$0xff] }
 0x20b   :  { %2392 = vmatpush.msrb.mxu2 %v939_v18  ;;  %2412 = vmatpush.msrb.mxu3 %v1035_v19  ;;  %v1437_v17 = vld [vmem:[#allocation5 + $0x1c70] sm:$0xff]  ;;  %v592_v18 = vld [vmem:[#allocation5 + $0x208] sm:$0xff] }
 0x20c   :  { %2429 = vmatpush.msra.mxu0 %v1149_v20  ;;  %2449 = vmatpush.msra.mxu1 %v1245_v21  ;;  %v688_v19 = vld [vmem:[#allocation5 + $0x508] sm:$0xff]  ;;  %v1335_v20 = vld [vmem:[#allocation5 + $0x1940] sm:$0xff] }
 0x20d   :  { %2393 = vmatpush.msrb.mxu2 %v933_v46  ;;  %2413 = vmatpush.msrb.mxu3 %v1029_v23  ;;  %v1431_v21 = vld [vmem:[#allocation5 + $0x1c40] sm:$0xff]  ;;  %v586_v46 = vld [vmem:[#allocation5 + $0x1d8] sm:$0xff] }
 0x20e   :  { %2430 = vmatpush.msra.mxu0 %v1143_v24  ;;  %2450 = vmatpush.msra.mxu1 %v1239_v25  ;;  %v682_v23 = vld [vmem:[#allocation5 + $0x4d8] sm:$0xff]  ;;  %v1329_v24 = vld [vmem:[#allocation5 + $0x1910] sm:$0xff] }
 0x20f   :  { %2394 = vmatpush.msrb.mxu2 %v927_v26  ;;  %2414 = vmatpush.msrb.mxu3 %v1023_v28  ;;  %v1425_v25 = vld [vmem:[#allocation5 + $0x1c10] sm:$0xff]  ;;  %v580_v26 = vld [vmem:[#allocation5 + $0x1a8] sm:$0xff] }
 0x210   :  { %2431 = vmatpush.msra.mxu0 %v1137_v29  ;;  %2451 = vmatpush.msra.mxu1 %v1233_v30  ;;  %v676_v28 = vld [vmem:[#allocation5 + $0x4a8] sm:$0xff]  ;;  %v1323_v29 = vld [vmem:[#allocation5 + $0x18e0] sm:$0xff] }
 0x211   :  { %2395 = vmatpush.msrb.mxu2 %v921_v31  ;;  %2415 = vmatpush.msrb.mxu3 %v1017_v33  ;;  %v1419_v30 = vld [vmem:[#allocation5 + $0x1be0] sm:$0xff]  ;;  %v574_v31 = vld [vmem:[#allocation5 + $0x178] sm:$0xff] }
 0x212   :  { %2432 = vmatpush.msra.mxu0 %v1131_v34  ;;  %2452 = vmatpush.msra.mxu1 %v1227_v35  ;;  %v670_v33 = vld [vmem:[#allocation5 + $0x478] sm:$0xff]  ;;  %v1317_v34 = vld [vmem:[#allocation5 + $0x18b0] sm:$0xff] }
 0x213   :  { %2396 = vmatpush.msrb.mxu2 %v915_v36  ;;  %2416 = vmatpush.msrb.mxu3 %v1011_v38  ;;  %v1413_v35 = vld [vmem:[#allocation5 + $0x1bb0] sm:$0xff]  ;;  %v568_v36 = vld [vmem:[#allocation5 + $0x148] sm:$0xff] }
 0x214   :  { %2433 = vmatpush.msra.mxu0 %v1125_v39  ;;  %2453 = vmatpush.msra.mxu1 %v1221_v40  ;;  %v664_v38 = vld [vmem:[#allocation5 + $0x448] sm:$0xff]  ;;  %v1311_v39 = vld [vmem:[#allocation5 + $0x1880] sm:$0xff] }
 0x215   :  { %2397 = vmatmul.f32.vlgmr.msrb.gmra.mxu2 %v3470_v32  ;;  %2417 = vmatmul.f32.vlgmr.msrb.gmra.mxu3 %v3472_v37  ;;  %v1407_v40 = vld [vmem:[#allocation5 + $0x1b80] sm:$0xff] }
 0x216   :  { %2461 = vmatpush.msra.mxu2 %v1389_v41  ;;  %2481 = vmatpush.msra.mxu3 %v1485_v42  ;;  %v562_v41 = vld [vmem:[#allocation5 + $0x118] sm:$0xff] }
 0x217   :  { %2434 = vmatpush.msra.mxu0 %v1119_v43  ;;  %2454 = vmatpush.msra.mxu1 %v1215_v44  ;;  %v658_v42 = vld [vmem:[#allocation5 + $0x418] sm:$0xff]  ;;  %v1305_v43 = vld [vmem:[#allocation5 + $0x1850] sm:$0xff] }
 0x218   :  { %2462 = vmatpush.msra.mxu2 %v1383_v45  ;;  %2482 = vmatpush.msra.mxu3 %v1479_v47  ;;  %v1401_v44 = vld [vmem:[#allocation5 + $0x1b50] sm:$0xff]  ;;  %v556_v45 = vld [vmem:[#allocation5 + $0xe8] sm:$0xff] }
 0x219   :  { %2435 = vmatpush.msra.mxu0 %v1113_v48  ;;  %2455 = vmatpush.msra.mxu1 %v1209_v49  ;;  %v652_v47 = vld [vmem:[#allocation5 + $0x3e8] sm:$0xff]  ;;  %v1299_v48 = vld [vmem:[#allocation5 + $0x1820] sm:$0xff] }
 0x21a   :  { %2463 = vmatpush.msra.mxu2 %v1377_v50  ;;  %2483 = vmatpush.msra.mxu3 %v1473_v54  ;;  %v1395_v49 = vld [vmem:[#allocation5 + $0x1b20] sm:$0xff]  ;;  %v550_v50 = vld [vmem:[#allocation5 + $0xb8] sm:$0xff] }
 0x21b   :  { %2436 = vmatpush.msra.mxu0 %v1107_v55  ;;  %2456 = vmatpush.msra.mxu1 %v1203_v56  ;;  %v646_v54 = vld [vmem:[#allocation5 + $0x3b8] sm:$0xff] }
 0x21c   :  { %2437 = vmatmul.f32.vlgmr.msra.gmra.mxu0 %v3476_v51  ;;  %2457 = vmatmul.f32.vlgmr.msra.gmra.mxu1 %v3478_v57  ;;  %v814_v55 = vld [vmem:[#allocation5 + $0x8f8] sm:$0xff] }
 0x21d   :  { %2464 = vmatpush.msra.mxu2 %v1371_v58  ;;  %2484 = vmatpush.msra.mxu3 %v1467_v59  ;;  %v910_v56 = vld [vmem:[#allocation5 + $0xbf8] sm:$0xff]  ;;  %v544_v58 = vld [vmem:[#allocation5 + $0x88] sm:$0xff] }
 0x21e   :  { %2501 = vmatpush.msrb.mxu0 %v622_v60  ;;  %2521 = vmatpush.msrb.mxu1 %v718_v61  ;;  %v640_v59 = vld [vmem:[#allocation5 + $0x388] sm:$0xff] }
 0x21f   :  { %2465 = vmatpush.msra.mxu2 %v1365_v0  ;;  %2485 = vmatpush.msra.mxu3 %v1461_v1  ;;  %v808_v60 = vld [vmem:[#allocation5 + $0x8c8] sm:$0xff]  ;;  %v538_v0 = vld [vmem:[#allocation5 + $0x58] sm:$0xff] }
 0x220   :  { %2502 = vmatpush.msrb.mxu0 %v616_v2  ;;  %2522 = vmatpush.msrb.mxu1 %v712_v3  ;;  %v904_v61 = vld [vmem:[#allocation5 + $0xbc8] sm:$0xff]  ;;  %v634_v1 = vld [vmem:[#allocation5 + $0x358] sm:$0xff] }
 0x221   :  { %2466 = vmatpush.msra.mxu2 %v1359_v4  ;;  %2486 = vmatpush.msra.mxu3 %v1455_v5  ;;  %v802_v2 = vld [vmem:[#allocation5 + $0x898] sm:$0xff]  ;;  %v532_v4 = vld [vmem:[#allocation5 + $0x28] sm:$0xff] }
 0x222   :  { %2503 = vmatpush.msrb.mxu0 %v610_v6  ;;  %2523 = vmatpush.msrb.mxu1 %v706_v7  ;;  %v898_v3 = vld [vmem:[#allocation5 + $0xb98] sm:$0xff]  ;;  %v628_v5 = vld [vmem:[#allocation5 + $0x328] sm:$0xff] }
 0x223   :  { %2467 = vmatpush.msra.mxu2 %v1353_v8  ;;  %2487 = vmatpush.msra.mxu3 %v1449_v9  ;;  %v796_v6 = vld [vmem:[#allocation5 + $0x868] sm:$0xff]  ;;  %v1006_v8 = vld [vmem:[#allocation5 + $0xef8] sm:$0xff] }
 0x224   :  { %2504 = vmatpush.msrb.mxu0 %v604_v10  ;;  %2524 = vmatpush.msrb.mxu1 %v700_v11  ;;  %v892_v7 = vld [vmem:[#allocation5 + $0xb68] sm:$0xff]  ;;  %v1102_v9 = vld [vmem:[#allocation5 + $0x11f8] sm:$0xff] }
 0x225   :  { %2468 = vmatpush.msra.mxu2 %v1347_v12  ;;  %2488 = vmatpush.msra.mxu3 %v1443_v13  ;;  %v790_v10 = vld [vmem:[#allocation5 + $0x838] sm:$0xff]  ;;  %v1000_v12 = vld [vmem:[#allocation5 + $0xec8] sm:$0xff] }
 0x226   :  { %2505 = vmatpush.msrb.mxu0 %v598_v14  ;;  %2525 = vmatpush.msrb.mxu1 %v694_v15  ;;  %v886_v11 = vld [vmem:[#allocation5 + $0xb38] sm:$0xff]  ;;  %v1096_v13 = vld [vmem:[#allocation5 + $0x11c8] sm:$0xff]  ;;  %v3530_v14 = vpop.f32.mrf.mxu2  ;;  %v3532_v15 = vpop.f32.mrf.mxu0 }
 0x227   :  { %2469 = vmatpush.msra.mxu2 %v1341_v16  ;;  %2489 = vmatpush.msra.mxu3 %v1437_v17  ;;  %v784_v16 = vld [vmem:[#allocation5 + $0x808] sm:$0xff] }
 0x228   :  { %2506 = vmatpush.msrb.mxu0 %v592_v18  ;;  %2526 = vmatpush.msrb.mxu1 %v688_v19  ;;  %v880_v17 = vld [vmem:[#allocation5 + $0xb08] sm:$0xff]  ;;  %v994_v18 = vld [vmem:[#allocation5 + $0xe98] sm:$0xff] }
 0x229   :  { %2470 = vmatpush.msra.mxu2 %v1335_v20  ;;  %2490 = vmatpush.msra.mxu3 %v1431_v21  ;;  %v874_v19 = vld [vmem:[#allocation5 + $0xad8] sm:$0xff]  ;;  %v988_v20 = vld [vmem:[#allocation5 + $0xe68] sm:$0xff] }
 0x22a   :  { %2507 = vmatpush.msrb.mxu0 %v586_v46  ;;  %2527 = vmatpush.msrb.mxu1 %v682_v23  ;;  %v1084_v21 = vld [vmem:[#allocation5 + $0x1168] sm:$0xff] }
 0x22b   :  { %2471 = vmatpush.msra.mxu2 %v1329_v24  ;;  %2491 = vmatpush.msra.mxu3 %v1425_v25  ;;  %v772_v46 = vld [vmem:[#allocation5 + $0x7a8] sm:$0xff]  ;;  %v982_v24 = vld [vmem:[#allocation5 + $0xe38] sm:$0xff] }
 0x22c   :  { %2508 = vmatpush.msrb.mxu0 %v580_v26  ;;  %2528 = vmatpush.msrb.mxu1 %v676_v28  ;;  %v868_v23 = vld [vmem:[#allocation5 + $0xaa8] sm:$0xff]  ;;  %v1078_v25 = vld [vmem:[#allocation5 + $0x1138] sm:$0xff]  ;;  %v3534_v26 = vpop.f32.mrf.mxu3  ;;  %v3536_v28 = vpop.f32.mrf.mxu1 }
 0x22d   :  { %2472 = vmatpush.msra.mxu2 %v1323_v29  ;;  %2492 = vmatpush.msra.mxu3 %v1419_v30  ;;  %v766_v29 = vld [vmem:[#allocation5 + $0x778] sm:$0xff] }
 0x22e   :  { %2509 = vmatpush.msrb.mxu0 %v574_v31  ;;  %2529 = vmatpush.msrb.mxu1 %v670_v33  ;;  %v862_v30 = vld [vmem:[#allocation5 + $0xa78] sm:$0xff]  ;;  %v976_v31 = vld [vmem:[#allocation5 + $0xe08] sm:$0xff] }
 0x22f   :  { %2473 = vmatpush.msra.mxu2 %v1317_v34  ;;  %2493 = vmatpush.msra.mxu3 %v1413_v35  ;;  %v1072_v33 = vld [vmem:[#allocation5 + $0x1108] sm:$0xff]  ;;  %v3538_v34 = vpop.f32.mrf.mxu2  ;;  %v3540_v35 = vpop.f32.mrf.mxu0 }
 0x230   :  { %2510 = vmatpush.msrb.mxu0 %v568_v36  ;;  %2530 = vmatpush.msrb.mxu1 %v664_v38  ;;  %v760_v36 = vld [vmem:[#allocation5 + $0x748] sm:$0xff] }
 0x231   :  { %2474 = vmatpush.msra.mxu2 %v1311_v39  ;;  %2494 = vmatpush.msra.mxu3 %v1407_v40  ;;  %v856_v38 = vld [vmem:[#allocation5 + $0xa48] sm:$0xff]  ;;  %v970_v39 = vld [vmem:[#allocation5 + $0xdd8] sm:$0xff] }
 0x232   :  { %2511 = vmatpush.msrb.mxu0 %v562_v41  ;;  %2531 = vmatpush.msrb.mxu1 %v658_v42  ;;  %v1066_v40 = vld [vmem:[#allocation5 + $0x10d8] sm:$0xff] }
 0x233   :  { %2475 = vmatpush.msra.mxu2 %v1305_v43  ;;  %2495 = vmatpush.msra.mxu3 %v1401_v44  ;;  %v754_v41 = vld [vmem:[#allocation5 + $0x718] sm:$0xff]  ;;  %v964_v43 = vld [vmem:[#allocation5 + $0xda8] sm:$0xff] }
 0x234   :  { %2512 = vmatpush.msrb.mxu0 %v556_v45  ;;  %2532 = vmatpush.msrb.mxu1 %v652_v47  ;;  %v850_v42 = vld [vmem:[#allocation5 + $0xa18] sm:$0xff]  ;;  %v1060_v44 = vld [vmem:[#allocation5 + $0x10a8] sm:$0xff] }
 0x235   :  { %2476 = vmatpush.msra.mxu2 %v1299_v48  ;;  %2496 = vmatpush.msra.mxu3 %v1395_v49  ;;  %v748_v45 = vld [vmem:[#allocation5 + $0x6e8] sm:$0xff]  ;;  %v958_v48 = vld [vmem:[#allocation5 + $0xd78] sm:$0xff] }
 0x236   :  { %2513 = vmatpush.msrb.mxu0 %v550_v50  ;;  %2533 = vmatpush.msrb.mxu1 %v646_v54  ;;  %v844_v47 = vld [vmem:[#allocation5 + $0x9e8] sm:$0xff]  ;;  %v1054_v49 = vld [vmem:[#allocation5 + $0x1078] sm:$0xff]  ;;  %v3542_v50 = vpop.f32.mrf.mxu3  ;;  %v3544_v54 = vpop.f32.mrf.mxu1 }
 0x237   :  { %2477 = vmatmul.f32.vlgmr.msra.gmra.mxu2 %v3484_v22  ;;  %2497 = vmatmul.f32.vlgmr.msra.gmra.mxu3 %v3486_v27 }
 0x238   :  { %2541 = vmatpush.msrb.mxu2 %v814_v55  ;;  %2561 = vmatpush.msrb.mxu3 %v910_v56  ;;  %v742_v55 = vld [vmem:[#allocation5 + $0x6b8] sm:$0xff] }
 0x239   :  { %2514 = vmatpush.msrb.mxu0 %v544_v58  ;;  %2534 = vmatpush.msrb.mxu1 %v640_v59  ;;  %v838_v56 = vld [vmem:[#allocation5 + $0x9b8] sm:$0xff]  ;;  %v952_v58 = vld [vmem:[#allocation5 + $0xd48] sm:$0xff] }
 0x23a   :  { %2542 = vmatpush.msrb.mxu2 %v808_v60  ;;  %2562 = vmatpush.msrb.mxu3 %v904_v61  ;;  %v1048_v59 = vld [vmem:[#allocation5 + $0x1048] sm:$0xff]  ;;  %v3546_v60 = vpop.f32.mrf.mxu2 }
 0x23b   :  { %2515 = vmatpush.msrb.mxu0 %v538_v0  ;;  %2535 = vmatpush.msrb.mxu1 %v634_v1  ;;  %v736_v61 = vld [vmem:[#allocation5 + $0x688] sm:$0xff]  ;;  %v946_v1 = vld [vmem:[#allocation5 + $0xd18] sm:$0xff] }
 0x23c   :  { %2543 = vmatpush.msrb.mxu2 %v802_v2  ;;  %2563 = vmatpush.msrb.mxu3 %v898_v3  ;;  %v832_v0 = vld [vmem:[#allocation5 + $0x988] sm:$0xff]  ;;  %v1042_v2 = vld [vmem:[#allocation5 + $0x1018] sm:$0xff]  ;;  %v3548_v3 = vpop.f32.mrf.mxu0 }
 0x23d   :  { %2516 = vmatpush.msrb.mxu0 %v532_v4  ;;  %2536 = vmatpush.msrb.mxu1 %v628_v5  ;;  %v730_v4 = vld [vmem:[#allocation5 + $0x658] sm:$0xff] }
 0x23e   :  { %2517 = vmatmul.f32.vlgmr.msrb.gmra.mxu0 %v3458_v52  ;;  %2537 = vmatmul.f32.vlgmr.msrb.gmra.mxu1 %v3460_v53  ;;  %v1090_v52 = vld [vmem:[#allocation5 + $0x1198] sm:$0xff] }
 0x23f   :  { %2544 = vmatpush.msrb.mxu2 %v796_v6  ;;  %2564 = vmatpush.msrb.mxu3 %v892_v7  ;;  %v778_v53 = vld [vmem:[#allocation5 + $0x7d8] sm:$0xff]  ;;  %v940_v6 = vld [vmem:[#allocation5 + $0xce8] sm:$0xff] }
 0x240   :  { %2581 = vmatpush.msra.mxu0 %v1006_v8  ;;  %2601 = vmatpush.msra.mxu1 %v1102_v9  ;;  %v826_v5 = vld [vmem:[#allocation5 + $0x958] sm:$0xff]  ;;  %v1036_v7 = vld [vmem:[#allocation5 + $0xfe8] sm:$0xff] }
 0x241   :  { %2545 = vmatpush.msrb.mxu2 %v790_v10  ;;  %2565 = vmatpush.msrb.mxu3 %v886_v11  ;;  %v724_v8 = vld [vmem:[#allocation5 + $0x628] sm:$0xff]  ;;  %v934_v10 = vld [vmem:[#allocation5 + $0xcb8] sm:$0xff] }
 0x242   :  { %2582 = vmatpush.msra.mxu0 %v1000_v12  ;;  %2602 = vmatpush.msra.mxu1 %v1096_v13  ;;  %v820_v9 = vld [vmem:[#allocation5 + $0x928] sm:$0xff]  ;;  %v1030_v11 = vld [vmem:[#allocation5 + $0xfb8] sm:$0xff]  ;;  %v3550_v12 = vpop.f32.mrf.mxu3 }
 0x243   :  { %2546 = vmatpush.msrb.mxu2 %v784_v16  ;;  %2566 = vmatpush.msrb.mxu3 %v880_v17  ;;  %v1198_v13 = vld [vmem:[#allocation5 + $0x14f8] sm:$0xff]  ;;  %v3552_v17 = vpop.f32.mrf.mxu1 }
 0x244   :  { %2583 = vmatpush.msra.mxu0 %v994_v18  ;;  %2603 = vmatpush.msra.mxu1 %v1090_v52  ;;  %v1294_v16 = vld [vmem:[#allocation5 + $0x17f8] sm:$0xff]  ;;  %v3554_v18 = vpop.f32.mrf.mxu2  ;;  %v928_v52 = vld [vmem:[#allocation5 + $0xc88] sm:$0xff] }
 0x245   :  { %2547 = vmatpush.msrb.mxu2 %v778_v53  ;;  %2567 = vmatpush.msrb.mxu3 %v874_v19  ;;  %v1024_v53 = vld [vmem:[#allocation5 + $0xf88] sm:$0xff] }
 0x246   :  { %2584 = vmatpush.msra.mxu0 %v988_v20  ;;  %2604 = vmatpush.msra.mxu1 %v1084_v21  ;;  %v1192_v19 = vld [vmem:[#allocation5 + $0x14c8] sm:$0xff]  ;;  %v3558_v21 = vpop.f32.mrf.mxu0 }
 0x247   :  { %2548 = vmatpush.msrb.mxu2 %v772_v46  ;;  %2568 = vmatpush.msrb.mxu3 %v868_v23  ;;  %v1288_v20 = vld [vmem:[#allocation5 + $0x17c8] sm:$0xff]  ;;  %v922_v46 = vld [vmem:[#allocation5 + $0xc58] sm:$0xff] }
 0x248   :  { %2585 = vmatpush.msra.mxu0 %v982_v24  ;;  %2605 = vmatpush.msra.mxu1 %v1078_v25  ;;  %v1018_v23 = vld [vmem:[#allocation5 + $0xf58] sm:$0xff] }
 0x249   :  { %2549 = vmatpush.msrb.mxu2 %v766_v29  ;;  %2569 = vmatpush.msrb.mxu3 %v862_v30  ;;  %v1186_v24 = vld [vmem:[#allocation5 + $0x1498] sm:$0xff]  ;;  %v916_v29 = vld [vmem:[#allocation5 + $0xc28] sm:$0xff] }
 0x24a   :  { %2586 = vmatpush.msra.mxu0 %v976_v31  ;;  %2606 = vmatpush.msra.mxu1 %v1072_v33  ;;  %v1282_v25 = vld [vmem:[#allocation5 + $0x1798] sm:$0xff]  ;;  %v1012_v30 = vld [vmem:[#allocation5 + $0xf28] sm:$0xff] }
 0x24b   :  { %2550 = vmatpush.msrb.mxu2 %v760_v36  ;;  %2570 = vmatpush.msrb.mxu3 %v856_v38  ;;  %v1276_v31 = vld [vmem:[#allocation5 + $0x1768] sm:$0xff]  ;;  %v1390_v33 = vld [vmem:[#allocation5 + $0x1af8] sm:$0xff]  ;;  %v3562_v38 = vpop.f32.mrf.mxu1 }
 0x24c   :  { %2587 = vmatpush.msra.mxu0 %v970_v39  ;;  %2607 = vmatpush.msra.mxu1 %v1066_v40  ;;  %v1486_v36 = vld [vmem:[#allocation5 + $0x1df8] sm:$0xff]  ;;  %v3564_v39 = vpop.f32.mrf.mxu2 }
 0x24d   :  { %2551 = vmatpush.msrb.mxu2 %v754_v41  ;;  %2571 = vmatpush.msrb.mxu3 %v850_v42  ;;  %v1174_v40 = vld [vmem:[#allocation5 + $0x1438] sm:$0xff]  ;;  %v1384_v42 = vld [vmem:[#allocation5 + $0x1ac8] sm:$0xff] }
 0x24e   :  { %2588 = vmatpush.msra.mxu0 %v964_v43  ;;  %2608 = vmatpush.msra.mxu1 %v1060_v44  ;;  %v1270_v41 = vld [vmem:[#allocation5 + $0x1738] sm:$0xff]  ;;  %v1480_v43 = vld [vmem:[#allocation5 + $0x1dc8] sm:$0xff]  ;;  %v3568_v44 = vpop.f32.mrf.mxu0 }
 0x24f   :  { %2552 = vmatpush.msrb.mxu2 %v748_v45  ;;  %2572 = vmatpush.msrb.mxu3 %v844_v47  ;;  %v1168_v45 = vld [vmem:[#allocation5 + $0x1408] sm:$0xff] }
 0x250   :  { %2589 = vmatpush.msra.mxu0 %v958_v48  ;;  %2609 = vmatpush.msra.mxu1 %v1054_v49  ;;  %v1264_v47 = vld [vmem:[#allocation5 + $0x1708] sm:$0xff]  ;;  %v1378_v48 = vld [vmem:[#allocation5 + $0x1a98] sm:$0xff] }
 0x251   :  { %2553 = vmatpush.msrb.mxu2 %v742_v55  ;;  %2573 = vmatpush.msrb.mxu3 %v838_v56  ;;  %v1474_v49 = vld [vmem:[#allocation5 + $0x1d98] sm:$0xff]  ;;  %v1372_v55 = vld [vmem:[#allocation5 + $0x1a68] sm:$0xff] }
 0x252   :  { %2590 = vmatpush.msra.mxu0 %v952_v58  ;;  %2610 = vmatpush.msra.mxu1 %v1048_v59  ;;  %v1468_v56 = vld [vmem:[#allocation5 + $0x1d68] sm:$0xff] }
 0x253   :  { %2554 = vmatpush.msrb.mxu2 %v736_v61  ;;  %2574 = vmatpush.msrb.mxu3 %v832_v0  ;;  %v1156_v59 = vld [vmem:[#allocation5 + $0x13a8] sm:$0xff]  ;;  %v1366_v0 = vld [vmem:[#allocation5 + $0x1a38] sm:$0xff] }
 0x254   :  { %2591 = vmatpush.msra.mxu0 %v946_v1  ;;  %2611 = vmatpush.msra.mxu1 %v1042_v2  ;;  %v1252_v61 = vld [vmem:[#allocation5 + $0x16a8] sm:$0xff]  ;;  %v1462_v1 = vld [vmem:[#allocation5 + $0x1d38] sm:$0xff]  ;;  %v3572_v2 = vpop.f32.mrf.mxu1 }
 0x255   :  { %2555 = vmatpush.msrb.mxu2 %v730_v4  ;;  %2575 = vmatpush.msrb.mxu3 %v826_v5  ;;  %v3574_v4 = vpop.f32.mrf.mxu2  ;;  %v1150_v5 = vld [vmem:[#allocation5 + $0x1378] sm:$0xff] }
 0x256   :  { %2592 = vmatpush.msra.mxu0 %v940_v6  ;;  %2612 = vmatpush.msra.mxu1 %v1036_v7  ;;  %v1246_v6 = vld [vmem:[#allocation5 + $0x1678] sm:$0xff]  ;;  %v1360_v7 = vld [vmem:[#allocation5 + $0x1a08] sm:$0xff] }
 0x257   :  { %2556 = vmatpush.msrb.mxu2 %v724_v8  ;;  %2576 = vmatpush.msrb.mxu3 %v820_v9  ;;  %v1456_v8 = vld [vmem:[#allocation5 + $0x1d08] sm:$0xff]  ;;  %v3576_v9 = vpop.f32.mrf.mxu0 }
 0x258   :  { %2593 = vmatpush.msra.mxu0 %v934_v10  ;;  %2613 = vmatpush.msra.mxu1 %v1030_v11  ;;  %v1144_v10 = vld [vmem:[#allocation5 + $0x1348] sm:$0xff] }
 0x259   :  { %2557 = vmatmul.f32.vlgmr.msrb.gmra.mxu2 %v3464_v62  ;;  %2577 = vmatmul.f32.vlgmr.msrb.gmra.mxu3 %v3466_v63  ;;  %v3560_v62 = vpop.f32.mrf.mxu3  ;;  %v1180_v63 = vld [vmem:[#allocation5 + $0x1468] sm:$0xff] }
 0x25a   :  { %2621 = vmatpush.msra.mxu2 %v1198_v13  ;;  %2641 = vmatpush.msra.mxu3 %v1294_v16  ;;  %v1240_v11 = vld [vmem:[#allocation5 + $0x1648] sm:$0xff]  ;;  %v1354_v13 = vld [vmem:[#allocation5 + $0x19d8] sm:$0xff] }
 0x25b   :  { %2594 = vmatpush.msra.mxu0 %v928_v52  ;;  %2614 = vmatpush.msra.mxu1 %v1024_v53  ;;  %v1450_v16 = vld [vmem:[#allocation5 + $0x1cd8] sm:$0xff] }
 0x25c   :  { %2622 = vmatpush.msra.mxu2 %v1192_v19  ;;  %2642 = vmatpush.msra.mxu3 %v1288_v20  ;;  %v1138_v52 = vld [vmem:[#allocation5 + $0x1318] sm:$0xff]  ;;  %v1348_v19 = vld [vmem:[#allocation5 + $0x19a8] sm:$0xff] }
 0x25d   :  { %2595 = vmatpush.msra.mxu0 %v922_v46  ;;  %2615 = vmatpush.msra.mxu1 %v1018_v23  ;;  %v1234_v53 = vld [vmem:[#allocation5 + $0x1618] sm:$0xff]  ;;  %v1444_v20 = vld [vmem:[#allocation5 + $0x1ca8] sm:$0xff] }
 0x25e   :  { %2623 = vmatpush.msra.mxu2 %v1186_v24  ;;  %2643 = vmatpush.msra.mxu3 %v1282_v25  ;;  %v1132_v23 = vld [vmem:[#allocation5 + $0x12e8] sm:$0xff]  ;;  %v1342_v25 = vld [vmem:[#allocation5 + $0x1978] sm:$0xff] }
 0x25f   :  { %2596 = vmatpush.msra.mxu0 %v916_v29  ;;  %2616 = vmatpush.msra.mxu1 %v1012_v30  ;;  %v1228_v24 = vld [vmem:[#allocation5 + $0x15e8] sm:$0xff]  ;;  %v1438_v29 = vld [vmem:[#allocation5 + $0x1c78] sm:$0xff]  ;;  %v3580_v30 = vld [vmem:[#allocation7] sm:$0x3f] }
 0x260   :  { %2597 = vmatmul.f32.vlgmr.msra.gmra.mxu0 %v3470_v32  ;;  %2617 = vmatmul.f32.vlgmr.msra.gmra.mxu1 %v3472_v37  ;;  %v1162_v32 = vld [vmem:[#allocation5 + $0x13d8] sm:$0xff] }
 0x261   :  { %2624 = vmatpush.msra.mxu2 %v1180_v63  ;;  %2644 = vmatpush.msra.mxu3 %v1276_v31  ;;  %v1258_v37 = vld [vmem:[#allocation5 + $0x16d8] sm:$0xff]  ;;  %v3570_v58 = vpop.f32.mrf.mxu3  ;;  %v3582_v63 = vpop.f32.mrf.mxu1 }
 0x262   :  { %2661 = vmatpush.msrb.mxu0 %v1390_v33  ;;  %2681 = vmatpush.msrb.mxu1 %v1486_v36  ;;  %v3584_v31 = vpop.f32.mrf.mxu2  ;;  %v1126_v33 = vld [vmem:[#allocation5 + $0x12b8] sm:$0xff] }
 0x263   :  { %2625 = vmatpush.msra.mxu2 %v1174_v40  ;;  %2645 = vmatpush.msra.mxu3 %v1270_v41  ;;  %v1222_v36 = vld [vmem:[#allocation5 + $0x15b8] sm:$0xff]  ;;  %v1336_v40 = vld [vmem:[#allocation5 + $0x1948] sm:$0xff] }
 0x264   :  { %2662 = vmatpush.msrb.mxu0 %v1384_v42  ;;  %2682 = vmatpush.msrb.mxu1 %v1480_v43  ;;  %v1432_v41 = vld [vmem:[#allocation5 + $0x1c48] sm:$0xff]  ;;  %v3586_v42 = vpop.f32.mrf.mxu0 }
 0x265   :  { %2626 = vmatpush.msra.mxu2 %v1168_v45  ;;  %2646 = vmatpush.msra.mxu3 %v1264_v47  ;;  %v1120_v43 = vld [vmem:[#allocation5 + $0x1288] sm:$0xff]  ;;  %v1489_v47 = vperm.slane %v3580_v30, 0 }
 0x266   :  { %2663 = vmatpush.msrb.mxu0 %v1378_v48  ;;  %2683 = vmatpush.msrb.mxu1 %v1474_v49  ;;  %v1216_v45 = vld [vmem:[#allocation5 + $0x1588] sm:$0xff]  ;;  %v1490_v48 = vperm.slane %v3580_v30, 1  ;;  %v1330_v49 = vld [vmem:[#allocation5 + $0x1918] sm:$0xff] }
 0x267   :  { %2627 = vmatpush.msra.mxu2 %v1162_v32  ;;  %2647 = vmatpush.msra.mxu3 %v1258_v37  ;;  %v1426_v32 = vld [vmem:[#allocation5 + $0x1c18] sm:$0xff] }
 0x268   :  { %2664 = vmatpush.msrb.mxu0 %v1372_v55  ;;  %2684 = vmatpush.msrb.mxu1 %v1468_v56  ;;  %v1114_v37 = vld [vmem:[#allocation5 + $0x1258] sm:$0xff]  ;;  %v1324_v56 = vld [vmem:[#allocation5 + $0x18e8] sm:$0xff] }
 0x269   :  { %2628 = vmatpush.msra.mxu2 %v1156_v59  ;;  %2648 = vmatpush.msra.mxu3 %v1252_v61  ;;  %v3578_v46 = vpop.f32.mrf.mxu3  ;;  %v1210_v55 = vld [vmem:[#allocation5 + $0x1558] sm:$0xff]  ;;  %v1420_v59 = vld [vmem:[#allocation5 + $0x1be8] sm:$0xff] }
 0x26a   :  { %2665 = vmatpush.msrb.mxu0 %v1366_v0  ;;  %2685 = vmatpush.msrb.mxu1 %v1462_v1  ;;  %v1108_v0 = vld [vmem:[#allocation5 + $0x1228] sm:$0xff] }
 0x26b   :  { %2629 = vmatpush.msra.mxu2 %v1150_v5  ;;  %2649 = vmatpush.msra.mxu3 %v1246_v6  ;;  %v1204_v1 = vld [vmem:[#allocation5 + $0x1528] sm:$0xff]  ;;  %v1519_v5 = vadd.f32 %v3530_v14, %v1489_v47  ;;  %v1719_v6 = vadd.f32 %v3548_v3, %v1490_v48  ;;  %v2738_v14 = vld [vmem:[#allocation8 + $0xf8] sm:$0xff] }
 0x26c   :  { %2666 = vmatpush.msrb.mxu0 %v1360_v7  ;;  %2686 = vmatpush.msrb.mxu1 %v1456_v8  ;;  %v1318_v7 = vld [vmem:[#allocation5 + $0x18b8] sm:$0xff]  ;;  %v1312_v3 = vld [vmem:[#allocation5 + $0x1888] sm:$0xff] }
 0x26d   :  { %2630 = vmatpush.msra.mxu2 %v1144_v10  ;;  %2650 = vmatpush.msra.mxu3 %v1240_v11  ;;  %v1414_v8 = vld [vmem:[#allocation5 + $0x1bb8] sm:$0xff]  ;;  %v3594_v10 = vpop.f32.mrf.mxu1  ;;  %v3596_v11 = vpop.f32.mrf.mxu2 }
 0x26e   :  { %2667 = vmatpush.msrb.mxu0 %v1354_v13  ;;  %2687 = vmatpush.msrb.mxu1 %v1450_v16  ;;  %v1491_v13 = vperm.slane %v3580_v30, 2  ;;  %v1492_v16 = vperm.slane %v3580_v30, 3 }
 0x26f   :  { %2631 = vmatpush.msra.mxu2 %v1138_v52  ;;  %2651 = vmatpush.msra.mxu3 %v1234_v53  ;;  %v2722_v52 = vld [vmem:[#allocation8 + $0x78] sm:$0xff]  ;;  %v2118_v53 = vpop.f32.mrf.mxu0 }
 0x270   :  { %2668 = vmatpush.msrb.mxu0 %v1348_v19  ;;  %2688 = vmatpush.msrb.mxu1 %v1444_v20  ;;  %v1408_v19 = vld [vmem:[#allocation5 + $0x1b88] sm:$0xff]  ;;  %v1539_v20 = vadd.f32 %v3534_v26, %v1519_v5  ;;  %v2753_v5 = vld [vmem:[#allocation8 + $0x170] sm:$0xff] }
 0x271   :  { %2632 = vmatpush.msra.mxu2 %v1132_v23  ;;  %2652 = vmatpush.msra.mxu3 %v1228_v24  ;;  %v3590_v61 = vpop.f32.mrf.mxu3  ;;  %v1739_v23 = vadd.f32 %v3552_v17, %v1719_v6  ;;  %v2721_v24 = vld [vmem:[#allocation8 + $0x70] sm:$0xff]  ;;  %v2720_v26 = vld [vmem:[#allocation8 + $0x68] sm:$0xff] }
 0x272   :  { %2669 = vmatpush.msrb.mxu0 %v1342_v25  ;;  %2689 = vmatpush.msrb.mxu1 %v1438_v29  ;;  %v2737_v25 = vld [vmem:[#allocation8 + $0xf0] sm:$0xff] }
 0x273   :  { %2633 = vmatpush.msra.mxu2 %v1126_v33  ;;  %2653 = vmatpush.msra.mxu3 %v1222_v36  ;;  %v1306_v29 = vld [vmem:[#allocation5 + $0x1858] sm:$0xff]  ;;  %v1759_v36 = vadd.f32 %v3554_v18, %v1739_v23  ;;  %v2719_v18 = vld [vmem:[#allocation8 + $0x60] sm:$0xff] }
 0x274   :  { %2670 = vmatpush.msrb.mxu0 %v1336_v40  ;;  %2690 = vmatpush.msrb.mxu1 %v1432_v41  ;;  %v1402_v33 = vld [vmem:[#allocation5 + $0x1b58] sm:$0xff]  ;;  %v1919_v40 = vadd.f32 %v3574_v4, %v1491_v13  ;;  %v2119_v41 = vadd.f32 %v2118_v53, %v1492_v16  ;;  %v2735_v4 = vld [vmem:[#allocation8 + $0xe0] sm:$0xff]  ;;  %v2768_v13 = vld [vmem:[#allocation8 + $0x1e8] sm:$0xff] }
 0x275   :  { %2634 = vmatpush.msra.mxu2 %v1120_v43  ;;  %2654 = vmatpush.msra.mxu3 %v1216_v45  ;;  %v2736_v43 = vld [vmem:[#allocation8 + $0xe8] sm:$0xff]  ;;  %v1559_v45 = vadd.f32 %v3532_v15, %v1539_v20  ;;  %v2138_v47 = vpop.f32.mrf.mxu1  ;;  %v2158_v48 = vpop.f32.mrf.mxu2  ;;  %v2718_v15 = vld [vmem:[#allocation8 + $0x58] sm:$0xff]  ;;  %v2733_v6 = vld [vmem:[#allocation8 + $0xd0] sm:$0xff] }
 0x276   :  { %2671 = vmatpush.msrb.mxu0 %v1330_v49  ;;  %2691 = vmatpush.msrb.mxu1 %v1426_v32  ;;  %v1779_v49 = vadd.f32 %v3560_v62, %v1759_v36  ;;  %v1939_v32 = vadd.f32 %v3578_v46, %v1919_v40  ;;  %v2769_v62 = vld [vmem:[#allocation8 + $0x1f0] sm:$0xff]  ;;  %v2716_v16 = vld [vmem:[#allocation8 + $0x48] sm:$0xff]  ;;  %v2751_v53 = vld [vmem:[#allocation8 + $0x160] sm:$0xff] }
 0x277   :  { %2635 = vmatpush.msra.mxu2 %v1114_v37  ;;  %2655 = vmatpush.msra.mxu3 %v1210_v55  ;;  %v2139_v37 = vadd.f32 %v2138_v47, %v2119_v41  ;;  %v2754_v55 = vld [vmem:[#allocation8 + $0x178] sm:$0xff]  ;;  %v2717_v46 = vld [vmem:[#allocation8 + $0x50] sm:$0xff] }
 0x278   :  { %2672 = vmatpush.msrb.mxu0 %v1324_v56  ;;  %2692 = vmatpush.msrb.mxu1 %v1420_v59  ;;  %v2770_v56 = vld [vmem:[#allocation8 + $0x1f8] sm:$0xff] }
 0x279   :  { %2636 = vmatpush.msra.mxu2 %v1108_v0  ;;  %2656 = vmatpush.msra.mxu3 %v1204_v1  ;;  %v3606_v17 = vpop.f32.mrf.mxu3  ;;  %v2734_v59 = vld [vmem:[#allocation8 + $0xd8] sm:$0xff]  ;;  %v1579_v0 = vadd.f32 %v3536_v28, %v1559_v45  ;;  %v2159_v1 = vadd.f32 %v2158_v48, %v2139_v37  ;;  %v2727_v37 = vld [vmem:[#allocation8 + $0xa0] sm:$0xff] }
 0x27a   :  { %2673 = vmatpush.msrb.mxu0 %v1318_v7  ;;  %2693 = vmatpush.msrb.mxu1 %v1414_v8  ;;  %v1799_v8 = vadd.f32 %v3558_v21, %v1779_v49  ;;  %v2731_v21 = vld [vmem:[#allocation8 + $0xc0] sm:$0xff]  ;;  %v2750_v23 = vld [vmem:[#allocation8 + $0x158] sm:$0xff] }
 0x27b   :  { %2637 = vmatmul.f32.vlgmr.msra.gmra.mxu2 %v3476_v51  ;;  %2657 = vmatmul.f32.vlgmr.msra.gmra.mxu3 %v3478_v57  ;;  %v1300_v51 = vld [vmem:[#allocation5 + $0x1828] sm:$0xff]  ;;  %v1599_v7 = vadd.f32 %v3538_v34, %v1579_v0 }
 0x27c   :  { %2807 = vmatpush.msrb.mxu2 %v2722_v52  ;;  %2827 = vmatpush.msrb.mxu3 %v2738_v14  ;;  %v1396_v57 = vld [vmem:[#allocation5 + $0x1b28] sm:$0xff] }
 0x27d   :  { %2674 = vmatpush.msrb.mxu0 %v1312_v3  ;;  %2694 = vmatpush.msrb.mxu1 %v1408_v19  ;;  %v2732_v52 = vld [vmem:[#allocation8 + $0xc8] sm:$0xff]  ;;  %v2767_v3 = vld [vmem:[#allocation8 + $0x1e0] sm:$0xff]  ;;  %v1819_v19 = vadd.f32 %v3562_v38, %v1799_v8  ;;  %v2765_v38 = vld [vmem:[#allocation8 + $0x1d0] sm:$0xff]  ;;  %v2218_v45 = vpop.f32.mrf.mxu1  ;;  %v2238_v47 = vpop.f32.mrf.mxu2 }
 0x27e   :  { %2808 = vmatpush.msrb.mxu2 %v2721_v24  ;;  %2828 = vmatpush.msrb.mxu3 %v2737_v25  ;;  %v2715_v34 = vld [vmem:[#allocation8 + $0x40] sm:$0xff]  ;;  %v2766_v24 = vld [vmem:[#allocation8 + $0x1d8] sm:$0xff]  ;;  %v2198_v25 = vpop.f32.mrf.mxu0 }
 0x27f   :  { %2675 = vmatpush.msrb.mxu0 %v1306_v29  ;;  %2695 = vmatpush.msrb.mxu1 %v1402_v33  ;;  %v2714_v29 = vld [vmem:[#allocation8 + $0x38] sm:$0xff]  ;;  %v1839_v36 = vadd.f32 %v3564_v39, %v1819_v19  ;;  %v2712_v39 = vld [vmem:[#allocation8 + $0x28] sm:$0xff]  ;;  %v2747_v49 = vld [vmem:[#allocation8 + $0x140] sm:$0xff]  ;;  %v1493_v19 = vperm.slane %v3580_v30, 4 }
 0x280   :  { %2809 = vmatpush.msrb.mxu2 %v2720_v26  ;;  %2829 = vmatpush.msrb.mxu3 %v2736_v43  ;;  %v2730_v33 = vld [vmem:[#allocation8 + $0xb8] sm:$0xff]  ;;  %v2729_v26 = vld [vmem:[#allocation8 + $0xb0] sm:$0xff] }
 0x281   :  { %2676 = vmatpush.msrb.mxu0 %v1300_v51  ;;  %2696 = vmatpush.msrb.mxu1 %v1396_v57  ;;  %v2178_v28 = vpop.f32.mrf.mxu3  ;;  %v2748_v51 = vld [vmem:[#allocation8 + $0x148] sm:$0xff]  ;;  %v1859_v48 = vadd.f32 %v3570_v58, %v1839_v36  ;;  %v2710_v58 = vld [vmem:[#allocation8 + $0x18] sm:$0xff] }
 0x282   :  { %2677 = vmatmul.f32.vlgmr.msrb.gmra.mxu0 %v3484_v22  ;;  %2697 = vmatmul.f32.vlgmr.msrb.gmra.mxu1 %v3486_v27  ;;  %v1959_v22 = vadd.f32 %v3576_v9, %v1939_v32  ;;  %v2752_v27 = vld [vmem:[#allocation8 + $0x168] sm:$0xff]  ;;  %v2179_v14 = vadd.f32 %v2178_v28, %v2159_v1  ;;  %v1619_v9 = vadd.f32 %v3542_v50, %v1599_v7  ;;  %v2749_v50 = vld [vmem:[#allocation8 + $0x150] sm:$0xff]  ;;  %v2763_v32 = vld [vmem:[#allocation8 + $0x1c0] sm:$0xff] }
 0x283   :  { %2810 = vmatpush.msrb.mxu2 %v2719_v18  ;;  %2830 = vmatpush.msrb.mxu3 %v2735_v4  ;;  %v2764_v57 = vld [vmem:[#allocation8 + $0x1c8] sm:$0xff]  ;;  %v1879_v1 = vadd.f32 %v3568_v44, %v1859_v48  ;;  %v2725_v7 = vld [vmem:[#allocation8 + $0x90] sm:$0xff] }
 0x284   :  { %2847 = vmatpush.msra.mxu0 %v2754_v55  ;;  %2867 = vmatpush.msra.mxu1 %v2770_v56  ;;  %v1979_v20 = vadd.f32 %v3582_v63, %v1959_v22  ;;  %v2199_v41 = vadd.f32 %v2198_v25, %v2179_v14  ;;  %v2713_v63 = vld [vmem:[#allocation8 + $0x30] sm:$0xff]  ;;  %v1639_v43 = vadd.f32 %v3540_v35, %v1619_v9  ;;  %v2711_v35 = vld [vmem:[#allocation8 + $0x20] sm:$0xff]  ;;  %v2744_v22 = vld [vmem:[#allocation8 + $0x128] sm:$0xff] }
 0x285   :  { %2811 = vmatpush.msrb.mxu2 %v2718_v15  ;;  %2831 = vmatpush.msrb.mxu3 %v2734_v59  ;;  %v2746_v15 = vld [vmem:[#allocation8 + $0x138] sm:$0xff]  ;;  %v2724_v44 = vld [vmem:[#allocation8 + $0x88] sm:$0xff]  ;;  %v2318_v25 = vpop.f32.mrf.mxu2  ;;  %v2781_v48 = vld [vmem:[#allocation8 + $0x250] sm:$0xff] }
 0x286   :  { %2848 = vmatpush.msra.mxu0 %v2753_v5  ;;  %2868 = vmatpush.msra.mxu1 %v2769_v62  ;;  %v1999_v40 = vadd.f32 %v3584_v31, %v1979_v20  ;;  %v2728_v31 = vld [vmem:[#allocation8 + $0xa8] sm:$0xff]  ;;  %v2219_v4 = vadd.f32 %v2218_v45, %v2199_v41  ;;  %v1659_v55 = vadd.f32 %v3544_v54, %v1639_v43  ;;  %v2762_v59 = vld [vmem:[#allocation8 + $0x1b8] sm:$0xff]  ;;  %v2745_v62 = vld [vmem:[#allocation8 + $0x130] sm:$0xff]  ;;  %v2278_v14 = vpop.f32.mrf.mxu0 }
 0x287   :  { %2812 = vmatpush.msrb.mxu2 %v2717_v46  ;;  %2832 = vmatpush.msrb.mxu3 %v2733_v6  ;;  %v2761_v46 = vld [vmem:[#allocation8 + $0x1b0] sm:$0xff]  ;;  %v2742_v9 = vld [vmem:[#allocation8 + $0x118] sm:$0xff]  ;;  %v2740_v36 = vld [vmem:[#allocation8 + $0x108] sm:$0xff] }
 0x288   :  { %2849 = vmatpush.msra.mxu0 %v2752_v27  ;;  %2869 = vmatpush.msra.mxu1 %v2768_v13  ;;  %v2019_v18 = vadd.f32 %v3590_v61, %v1999_v40  ;;  %v2239_v56 = vadd.f32 %v2238_v47, %v2219_v4  ;;  %v2726_v61 = vld [vmem:[#allocation8 + $0x98] sm:$0xff]  ;;  %v1679_v0 = vadd.f32 %v3546_v60, %v1659_v55  ;;  %v2709_v6 = vld [vmem:[#allocation8 + $0x10] sm:$0xff]  ;;  %v2760_v27 = vld [vmem:[#allocation8 + $0x1a8] sm:$0xff] }
 0x289   :  { %2813 = vmatpush.msrb.mxu2 %v2716_v16  ;;  %2833 = vmatpush.msrb.mxu3 %v2732_v52  ;;  %v2258_v54 = vpop.f32.mrf.mxu3  ;;  %v2708_v60 = vld [vmem:[#allocation8 + $0x8] sm:$0xff]  ;;  %v1899_v13 = vadd.f32 %v3572_v2, %v1879_v1  ;;  %v2743_v16 = vld [vmem:[#allocation8 + $0x120] sm:$0xff]  ;;  %v2741_v20 = vld [vmem:[#allocation8 + $0x110] sm:$0xff] }
 0x28a   :  { %2850 = vmatpush.msra.mxu0 %v2751_v53  ;;  %2870 = vmatpush.msra.mxu1 %v2767_v3  ;;  %v2039_v5 = vadd.f32 %v3586_v42, %v2019_v18  ;;  %v2259_v8 = vadd.f32 %v2258_v54, %v2239_v56  ;;  %v1699_v42 = vadd.f32 %v3550_v12, %v1679_v0  ;;  %v2759_v52 = vld [vmem:[#allocation8 + $0x1a0] sm:$0xff]  ;;  %v2758_v12 = vld [vmem:[#allocation8 + $0x198] sm:$0xff]  ;;  %v2756_v40 = vld [vmem:[#allocation8 + $0x188] sm:$0xff] }
 0x28b   :  { %2814 = vmatpush.msrb.mxu2 %v2715_v34  ;;  %2834 = vmatpush.msrb.mxu3 %v2731_v21  ;;  %v2707_v53 = vld [vmem:[#allocation8] sm:$0xff]  ;;  %v2785_v41 = vld [vmem:[#allocation8 + $0x270] sm:$0xff]  ;;  %v2782_v47 = vld [vmem:[#allocation8 + $0x258] sm:$0xff] }
 0x28c   :  { %2851 = vmatpush.msra.mxu0 %v2750_v23  ;;  %2871 = vmatpush.msra.mxu1 %v2766_v24  ;;  %v2059_v28 = vadd.f32 %v3594_v10, %v2039_v5  ;;  %v2723_v3 = vld [vmem:[#allocation8 + $0x80] sm:$0xff]  ;;  %v2279_v21 = vadd.f32 %v2278_v14, %v2259_v8  ;;  %v2701_v2 = vmax.f32 %v1699_v42, 0.0  ;;  %v2702_v10 = vmax.f32 %v1899_v13, 0.0  ;;  %v2757_v23 = vld [vmem:[#allocation8 + $0x190] sm:$0xff]  ;;  %v2298_v24 = vpop.f32.mrf.mxu1  ;;  %v2780_v18 = vld [vmem:[#allocation8 + $0x248] sm:$0xff] }
 0x28d   :  { %2815 = vmatpush.msrb.mxu2 %v2714_v29  ;;  %2835 = vmatpush.msrb.mxu3 %v2730_v33  ;;  %v2783_v45 = vld [vmem:[#allocation8 + $0x260] sm:$0xff]  ;;  %v2778_v55 = vld [vmem:[#allocation8 + $0x238] sm:$0xff]  ;;  %v2777_v56 = vld [vmem:[#allocation8 + $0x230] sm:$0xff] }
 0x28e   :  { %2852 = vmatpush.msra.mxu0 %v2749_v50  ;;  %2872 = vmatpush.msra.mxu1 %v2765_v38  ;;  %v2079_v34 = vadd.f32 %v3596_v11, %v2059_v28  ;;  %v2786_v11 = vld [vmem:[#allocation8 + $0x278] sm:$0xff]  ;;  %v2299_v33 = vadd.f32 %v2298_v24, %v2279_v21  ;;  %v2319_v50 = vadd.f32 %v2318_v25, %v1493_v19  ;;  %v2739_v38 = vld [vmem:[#allocation8 + $0x100] sm:$0xff]  ;;  %v2801_v13 = vld [vmem:[#allocation8 + $0x2f0] sm:$0xff]  ;;  %v1494_v19 = vperm.slane %v3580_v30, 5 }
 0x28f   :  { %2816 = vmatpush.msrb.mxu2 %v2713_v63  ;;  %2836 = vmatpush.msrb.mxu3 %v2729_v26  ;;  %v2755_v63 = vld [vmem:[#allocation8 + $0x180] sm:$0xff]  ;;  %v2774_v5 = vld [vmem:[#allocation8 + $0x218] sm:$0xff]  ;;  %v2800_v28 = vld [vmem:[#allocation8 + $0x2e8] sm:$0xff] }
 0x290   :  { %2853 = vmatpush.msra.mxu0 %v2748_v51  ;;  %2873 = vmatpush.msra.mxu1 %v2764_v57  ;;  %v2099_v29 = vadd.f32 %v3606_v17, %v2079_v34  ;;  %v2704_v43 = vmax.f32 %v2299_v33, 0.0  ;;  %v2784_v51 = vld [vmem:[#allocation8 + $0x268] sm:$0xff]  ;;  %v2802_v42 = vld [vmem:[#allocation8 + $0x2f8] sm:$0xff]  ;;  %v2797_v14 = vld [vmem:[#allocation8 + $0x2d0] sm:$0xff] }
 0x291   :  { %2817 = vmatpush.msrb.mxu2 %v2712_v39  ;;  %2837 = vmatpush.msrb.mxu3 %v2728_v31  ;;  %v2338_v57 = vpop.f32.mrf.mxu3  ;;  %v2358_v39 = vpop.f32.mrf.mxu0  ;;  %v2794_v34 = vld [vmem:[#allocation8 + $0x2b8] sm:$0xff]  ;;  %v2793_v21 = vld [vmem:[#allocation8 + $0x2b0] sm:$0xff]  ;;  %v2787_v24 = vld [vmem:[#allocation8 + $0x280] sm:$0xff] }
 0x292   :  { %2854 = vmatpush.msra.mxu0 %v2747_v49  ;;  %2874 = vmatpush.msra.mxu1 %v2763_v32  ;;  %v2703_v26 = vmax.f32 %v2099_v29, 0.0  ;;  %v2339_v17 = vadd.f32 %v2338_v57, %v2319_v50 }
 0x293   :  { %2818 = vmatpush.msrb.mxu2 %v2711_v35  ;;  %2838 = vmatpush.msrb.mxu3 %v2727_v37  ;;  %v2779_v35 = vld [vmem:[#allocation8 + $0x240] sm:$0xff] }
 0x294   :  { %2855 = vmatpush.msra.mxu0 %v2746_v15  ;;  %2875 = vmatpush.msra.mxu1 %v2762_v59  ;;  %v2359_v31 = vadd.f32 %v2358_v39, %v2339_v17  ;;  %v2378_v4 = vpop.f32.mrf.mxu1 }
 0x295   :  { %2819 = vmatpush.msrb.mxu2 %v2710_v58  ;;  %2839 = vmatpush.msrb.mxu3 %v2726_v61  ;;  %v2776_v58 = vld [vmem:[#allocation8 + $0x228] sm:$0xff]  ;;  %v2775_v61 = vld [vmem:[#allocation8 + $0x220] sm:$0xff] }
 0x296   :  { %2856 = vmatpush.msra.mxu0 %v2745_v62  ;;  %2876 = vmatpush.msra.mxu1 %v2761_v46  ;;  %v2379_v32 = vadd.f32 %v2378_v4, %v2359_v31  ;;  %v2773_v62 = vld [vmem:[#allocation8 + $0x210] sm:$0xff] }
 0x297   :  { %2820 = vmatpush.msrb.mxu2 %v2709_v6  ;;  %2840 = vmatpush.msrb.mxu3 %v2725_v7  ;;  %v2772_v6 = vld [vmem:[#allocation8 + $0x208] sm:$0xff] }
 0x298   :  { %2857 = vmatpush.msra.mxu0 %v2744_v22  ;;  %2877 = vmatpush.msra.mxu1 %v2760_v27  ;;  %v2398_v49 = vpop.f32.mrf.mxu2  ;;  %v2771_v22 = vld [vmem:[#allocation8 + $0x200] sm:$0xff]  ;;  %v2941_v4 = vld [vmem:[#allocation11 + $0x68] sm:$0xff] }
 0x299   :  { %2821 = vmatpush.msrb.mxu2 %v2708_v60  ;;  %2841 = vmatpush.msrb.mxu3 %v2724_v44  ;;  %v2399_v37 = vadd.f32 %v2398_v49, %v2379_v32  ;;  %v2418_v15 = vpop.f32.mrf.mxu3  ;;  %v2438_v0 = vpop.f32.mrf.mxu0  ;;  %v2940_v49 = vld [vmem:[#allocation11 + $0x60] sm:$0xff]  ;;  %v2939_v32 = vld [vmem:[#allocation11 + $0x58] sm:$0xff] }
 0x29a   :  { %2858 = vmatpush.msra.mxu0 %v2743_v16  ;;  %2878 = vmatpush.msra.mxu1 %v2759_v52  ;;  %v2799_v16 = vld [vmem:[#allocation8 + $0x2e0] sm:$0xff]  ;;  %v2798_v52 = vld [vmem:[#allocation8 + $0x2d8] sm:$0xff] }
 0x29b   :  { %2822 = vmatpush.msrb.mxu2 %v2707_v53  ;;  %2842 = vmatpush.msrb.mxu3 %v2723_v3  ;;  %v2419_v59 = vadd.f32 %v2418_v15, %v2399_v37  ;;  %v2796_v53 = vld [vmem:[#allocation8 + $0x2c8] sm:$0xff]  ;;  %v2795_v3 = vld [vmem:[#allocation8 + $0x2c0] sm:$0xff]  ;;  %v2934_v15 = vld [vmem:[#allocation11 + $0x30] sm:$0xff] }
 0x29c   :  { %2859 = vmatpush.msra.mxu0 %v2742_v9  ;;  %2879 = vmatpush.msra.mxu1 %v2758_v12  ;;  %v2458_v46 = vpop.f32.mrf.mxu1  ;;  %v2792_v9 = vld [vmem:[#allocation8 + $0x2a8] sm:$0xff]  ;;  %v2791_v12 = vld [vmem:[#allocation8 + $0x2a0] sm:$0xff] }
 0x29d   :  { %2823 = vmatmul.f32.vlgmr.msrb.gmra.mxu2 %v2701_v2  ;;  %2843 = vmatmul.f32.vlgmr.msrb.gmra.mxu3 %v2702_v10  ;;  %v2439_v1 = vadd.f32 %v2438_v0, %v2419_v59  ;;  %v2790_v2 = vld [vmem:[#allocation8 + $0x298] sm:$0xff]  ;;  %v2789_v10 = vld [vmem:[#allocation8 + $0x290] sm:$0xff] }
 0x29e   :  { %2860 = vmatpush.msra.mxu0 %v2741_v20  ;;  %2880 = vmatpush.msra.mxu1 %v2757_v23  ;;  %v2788_v20 = vld [vmem:[#allocation8 + $0x288] sm:$0xff]  ;;  %v2930_v0 = vld [vmem:[#allocation11 + $0x10] sm:$0xff] }
 0x29f   :  { %2887 = vmatpush.msra.mxu2 %v2786_v11  ;;  %v2459_v54 = vadd.f32 %v2458_v46, %v2439_v1  ;;  %2907 = vmatpush.msra.mxu3 %v2802_v42  ;;  %v2937_v37 = vld [vmem:[#allocation11 + $0x48] sm:$0xff]  ;;  %v2983_v46 = vld [vmem:[#allocation14 + $0x70] sm:$0xff] }
 0x2a0   :  { %2861 = vmatpush.msra.mxu0 %v2740_v36  ;;  %2881 = vmatpush.msra.mxu1 %v2756_v40  ;;  %v2933_v59 = vld [vmem:[#allocation11 + $0x28] sm:$0xff] }
 0x2a1   :  { %2888 = vmatpush.msra.mxu2 %v2785_v41  ;;  %2908 = vmatpush.msra.mxu3 %v2801_v13  ;;  %v2929_v1 = vld [vmem:[#allocation11 + $0x8] sm:$0xff]  ;;  %v2976_v13 = vld [vmem:[#allocation14 + $0x38] sm:$0xff] }
 0x2a2   :  { %2862 = vmatpush.msra.mxu0 %v2739_v38  ;;  %2882 = vmatpush.msra.mxu1 %v2755_v63  ;;  %v2977_v42 = vld [vmem:[#allocation14 + $0x40] sm:$0xff] }
 0x2a3   :  { %2863 = vmatmul.f32.vlgmr.msra.gmra.mxu0 %v2703_v26  ;;  %2883 = vmatmul.f32.vlgmr.msra.gmra.mxu1 %v2704_v43 }
 0x2a4   :  { %2889 = vmatpush.msra.mxu2 %v2784_v51  ;;  %2909 = vmatpush.msra.mxu3 %v2800_v28 }
 0x2a6   :  { %2890 = vmatpush.msra.mxu2 %v2783_v45  ;;  %2910 = vmatpush.msra.mxu3 %v2799_v16 }
 0x2a8   :  { %2891 = vmatpush.msra.mxu2 %v2782_v47  ;;  %2911 = vmatpush.msra.mxu3 %v2798_v52  ;;  %v2975_v52 = vld [vmem:[#allocation14 + $0x30] sm:$0xff] }
 0x2aa   :  { %2892 = vmatpush.msra.mxu2 %v2781_v48  ;;  %2912 = vmatpush.msra.mxu3 %v2797_v14  ;;  %v2943_v48 = vld [vmem:[#allocation11 + $0x78] sm:$0xff]  ;;  %v2974_v14 = vld [vmem:[#allocation14 + $0x28] sm:$0xff] }
 0x2ab   :  { %2948 = vmatpush.msrb.mxu0 %v2943_v48 }
 0x2ac   :  { %2893 = vmatpush.msra.mxu2 %v2780_v18  ;;  %2913 = vmatpush.msra.mxu3 %v2796_v53  ;;  %v2942_v18 = vld [vmem:[#allocation11 + $0x70] sm:$0xff] }
 0x2ad   :  { %2949 = vmatpush.msrb.mxu0 %v2942_v18 }
 0x2ae   :  { %2894 = vmatpush.msra.mxu2 %v2779_v35  ;;  %2914 = vmatpush.msra.mxu3 %v2795_v3  ;;  %v2938_v35 = vld [vmem:[#allocation11 + $0x50] sm:$0xff] }
 0x2af   :  { %2950 = vmatpush.msrb.mxu0 %v2941_v4 }
 0x2b0   :  { %2895 = vmatpush.msra.mxu2 %v2778_v55  ;;  %2915 = vmatpush.msra.mxu3 %v2794_v34  ;;  %v2936_v55 = vld [vmem:[#allocation11 + $0x40] sm:$0xff] }
 0x2b1   :  { %2951 = vmatpush.msrb.mxu0 %v2940_v49  ;;  %v2973_v34 = vld [vmem:[#allocation14 + $0x20] sm:$0xff] }
 0x2b2   :  { %2896 = vmatpush.msra.mxu2 %v2777_v56  ;;  %2916 = vmatpush.msra.mxu3 %v2793_v21  ;;  %v2935_v56 = vld [vmem:[#allocation11 + $0x38] sm:$0xff] }
 0x2b3   :  { %2952 = vmatpush.msrb.mxu0 %v2939_v32  ;;  %v2972_v21 = vld [vmem:[#allocation14 + $0x18] sm:$0xff] }
 0x2b4   :  { %2897 = vmatpush.msra.mxu2 %v2776_v58  ;;  %2917 = vmatpush.msra.mxu3 %v2792_v9  ;;  %v2932_v58 = vld [vmem:[#allocation11 + $0x20] sm:$0xff] }
 0x2b5   :  { %2953 = vmatpush.msrb.mxu0 %v2938_v35 }
 0x2b6   :  { %2898 = vmatpush.msra.mxu2 %v2775_v61  ;;  %2918 = vmatpush.msra.mxu3 %v2791_v12  ;;  %v2931_v61 = vld [vmem:[#allocation11 + $0x18] sm:$0xff] }
 0x2b7   :  { %2954 = vmatpush.msrb.mxu0 %v2937_v37 }
 0x2b8   :  { %2899 = vmatpush.msra.mxu2 %v2774_v5  ;;  %2919 = vmatpush.msra.mxu3 %v2790_v2  ;;  %v2928_v5 = vld [vmem:[#allocation11] sm:$0xff] }
 0x2b9   :  { %2955 = vmatpush.msrb.mxu0 %v2936_v55 }
 0x2ba   :  { %v2478_v7 = vpop.f32.mrf.mxu2  ;;  %2900 = vmatpush.msra.mxu2 %v2773_v62  ;;  %v2498_v27 = vpop.f32.mrf.mxu3  ;;  %2920 = vmatpush.msra.mxu3 %v2789_v10  ;;  %v2984_v62 = vld [vmem:[#allocation14 + $0x78] sm:$0xff] }
 0x2bb   :  { %v2479_v8 = vadd.f32 %v2478_v7, %v2459_v54  ;;  %v2518_v23 = vpop.f32.mrf.mxu0  ;;  %v2538_v11 = vpop.f32.mrf.mxu1  ;;  %2956 = vmatpush.msrb.mxu0 %v2935_v56  ;;  %2989 = vmatpush.msrb.mxu1 %v2984_v62  ;;  %v2982_v54 = vld [vmem:[#allocation14 + $0x68] sm:$0xff]  ;;  %v2980_v7 = vld [vmem:[#allocation14 + $0x58] sm:$0xff] }
 0x2bc   :  { %2901 = vmatpush.msra.mxu2 %v2772_v6  ;;  %2921 = vmatpush.msra.mxu3 %v2788_v20  ;;  %v2519_v25 = vadd.f32 %v2518_v23, %v1494_v19  ;;  %v2981_v6 = vld [vmem:[#allocation14 + $0x60] sm:$0xff] }
 0x2bd   :  { %v2499_v60 = vadd.f32 %v2498_v27, %v2479_v8  ;;  %2957 = vmatpush.msrb.mxu0 %v2934_v15  ;;  %2990 = vmatpush.msrb.mxu1 %v2983_v46  ;;  %v3069_v8 = vld [vmem:[#allocation10] ss:$0 sm:$0xff] }
 0x2be   :  { %2902 = vmatpush.msra.mxu2 %v2771_v22  ;;  %2922 = vmatpush.msra.mxu3 %v2787_v24  ;;  %v2539_v33 = vadd.f32 %v2538_v11, %v2519_v25  ;;  %v2979_v22 = vld [vmem:[#allocation14 + $0x50] sm:$0xff]  ;;  %v2970_v25 = vld [vmem:[#allocation14 + $0x8] sm:$0xff]  ;;  %v2969_v11 = vld [vmem:[#allocation14] sm:$0xff] }
 0x2bf   :  { %v2705_v44 = vmax.f32 %v2499_v60, 0.0  ;;  %2958 = vmatpush.msrb.mxu0 %v2933_v59  ;;  %2991 = vmatpush.msrb.mxu1 %v2982_v54  ;;  %v2978_v60 = vld [vmem:[#allocation14 + $0x48] sm:$0xff]  ;;  %v2971_v24 = vld [vmem:[#allocation14 + $0x10] sm:$0xff] }
 0x2c1   :  { %2903 = vmatmul.f32.vlgmr.msra.gmra.mxu2 %v2705_v44  ;;  %2959 = vmatpush.msrb.mxu0 %v2932_v58 }
 0x2c2   :  { %2992 = vmatpush.msrb.mxu1 %v2981_v6 }
 0x2c3   :  { %2960 = vmatpush.msrb.mxu0 %v2931_v61 }
 0x2c4   :  { %2993 = vmatpush.msrb.mxu1 %v2980_v7 }
 0x2c5   :  { %2961 = vmatpush.msrb.mxu0 %v2930_v0 }
 0x2c6   :  { %2994 = vmatpush.msrb.mxu1 %v2979_v22 }
 0x2c7   :  { %2962 = vmatpush.msrb.mxu0 %v2929_v1 }
 0x2c8   :  { %2995 = vmatpush.msrb.mxu1 %v2978_v60 }
 0x2c9   :  { %2963 = vmatpush.msrb.mxu0 %v2928_v5 }
 0x2ca   :  { %2996 = vmatpush.msrb.mxu1 %v2977_v42 }
 0x2cc   :  { %2997 = vmatpush.msrb.mxu1 %v2976_v13 }
 0x2ce   :  { %2998 = vmatpush.msrb.mxu1 %v2975_v52 }
 0x2d0   :  { %2999 = vmatpush.msrb.mxu1 %v2974_v14 }
 0x2d2   :  { %3000 = vmatpush.msrb.mxu1 %v2973_v34 }
 0x2d4   :  { %3001 = vmatpush.msrb.mxu1 %v2972_v21 }
 0x2d6   :  { %3002 = vmatpush.msrb.mxu1 %v2971_v24 }
 0x2d8   :  { %3003 = vmatpush.msrb.mxu1 %v2970_v25 }
 0x2da   :  { %3004 = vmatpush.msrb.mxu1 %v2969_v11 }
 0x2dc   :  { %v2558_v29 = vpop.f32.mrf.mxu2  ;;  %v2578_v40 = vpop.f32.mrf.mxu3 }
 0x2dd   :  { %v2559_v36 = vadd.f32 %v2558_v29, %v2539_v33  ;;  %v2598_v50 = vpop.f32.mrf.mxu0  ;;  %v2618_v63 = vpop.f32.mrf.mxu1  ;;  %v3070_v29 = vld [vmem:[#allocation13] ss:$0 sm:$0xff] }
 0x2df   :  { %v2579_v41 = vadd.f32 %v2578_v40, %v2559_v36 }
 0x2e1   :  { %v2599_v38 = vadd.f32 %v2598_v50, %v2579_v41  ;;  %v3071_v41 = vld [vmem:[#allocation16] ss:$0 sm:$0xff] }
 0x2e3   :  { %v2619_v26 = vadd.f32 %v2618_v63, %v2599_v38 }
 0x2fe   :  { %v2638_v43 = vpop.f32.mrf.mxu2  ;;  %v2658_v30 = vpop.f32.mrf.mxu3 }
 0x2ff   :  { %v2639_v51 = vadd.f32 %v2638_v43, %v2619_v26  ;;  %v2678_v17 = vpop.f32.mrf.mxu0  ;;  %v2698_v47 = vpop.f32.mrf.mxu1 }
 0x301   :  { %v2659_v57 = vadd.f32 %v2658_v30, %v2639_v51 }
 0x303   :  { %v2679_v45 = vadd.f32 %v2678_v17, %v2659_v57 }
 0x305   :  { %v2699_v39 = vadd.f32 %v2698_v47, %v2679_v45 }
 0x307   :  { %v2706_v31 = vmax.f32 %v2699_v39, 0.0 }
 0x309   :  { %2923 = vmatmul.f32.vlgmr.msra.gmra.mxu3 %v2706_v31 }
 0x320   :  { %v2824_v27 = vpop.f32.mrf.mxu2  ;;  %v2844_v28 = vpop.f32.mrf.mxu3 }
 0x321   :  { %v2825_v44 = vadd.f32 %v3069_v8, %v2824_v27  ;;  %v2864_v53 = vpop.f32.mrf.mxu0  ;;  %v2884_v9 = vpop.f32.mrf.mxu1 }
 0x323   :  { %v2845_v16 = vadd.f32 %v2844_v28, %v2825_v44 }
 0x325   :  { %v2865_v3 = vadd.f32 %v2864_v53, %v2845_v16 }
 0x327   :  { %v2885_v2 = vadd.f32 %v2884_v9, %v2865_v3 }
 0x344   :  { %v2904_v12 = vpop.f32.mrf.mxu2 }
 0x345   :  { %v2905_v10 = vadd.f32 %v2904_v12, %v2885_v2 }
 0x38c   :  { %v2924_v19 = vpop.f32.mrf.mxu3 }
 0x38d   :  { %v2925_v20 = vadd.f32 %v2924_v19, %v2905_v10 }
 0x38f   :  { %v2927_v23 = vmax.f32 %v2925_v20, 0.0 }
 0x391   :  { %2964 = vmatmul.f32.vlgmr.msrb.gmra.mxu0 %v2927_v23 }
 0x40e   :  { %v2965_v33 = vpop.f32.mrf.mxu0 }
 0x40f   :  { %v2966_v36 = vadd.f32 %v3070_v29, %v2965_v33 }
 0x411   :  { %v2968_v40 = vmax.f32 %v2966_v36, 0.0 }
 0x413   :  { %3005 = vmatmul.f32.vlgmr.msrb.gmra.mxu1 %v2968_v40 }
 0x490   :  { %v3006_v50 = vpop.f32.mrf.mxu1 }
 0x491   :  { %v3007_v38 = vadd.f32 %v3071_v41, %v3006_v50 }
 0x493   :  { %3009 = vst [vmem:[#allocation17] sm:$0xf] %v3007_v38 }
 0x494   :  { %3020 = dma.vmem_to_hbm [thread:$0]  %s3016_s15, 64, %s3018_s6, [#allocation4]  }
 0x495   :  { %3322 = dma.done.wait [#allocation4], 64  }
 0x496   :  { %3323 = vsyncadd [#allocation4], 4294967232 }
 0x497   :  { %3025 = vsyncpa [#allocation3], 1 }
 0x498   :  { %3026 = vsyncpa [#allocation6], 1 }
 0x499   :  { %3027 = vsyncpa [#allocation9], 1 }
 0x49a   :  { %3028 = vsyncpa [#allocation12], 1 }
 0x49b   :  { %3029 = vsyncpa [#allocation15], 1 }
 0x49c   :  { %3030 = vsyncpa [#allocation4], 1 }

</bundles_post_ra>
